<compile_context>
chip_gen: v6e
topology: v6e:2x2x1
jax: 0.10.0
libtpu: 0.0.40
codegen_flags: <defaults>
</compile_context>

<pallas_src>
import jax
import jax.numpy as jnp
from jax.experimental import pallas as pl
from jax.experimental.pallas import tpu as pltpu

# ---------------- synthetic model config (small, lane-dense shapes) ----------------
VOCAB = 100
TYPE_VOCAB = 2
MAX_POS = 64
HIDDEN = 128           # lane-dense hidden (multiple of 128)
N_HEADS = 4
HEAD_DIM = HIDDEN // N_HEADS
INTERMEDIATE = 256     # lane-dense FFN width
N_LAYERS = 2           # ALBERT shares one set of encoder weights across layers
SEQ = 8
BATCH = 2
LN_EPS = 1e-12

ENC_PARAM_ORDER = [
    "attn_wq", "attn_bq", "attn_wk", "attn_bk", "attn_wv", "attn_bv",
    "attn_wo", "attn_bo", "ln1_g", "ln1_b",
    "ffn_w1", "ffn_b1", "ffn_w2", "ffn_b2", "ln2_g", "ln2_b",
]
HEAD_PARAM_ORDER = ["pool_w", "pool_b", "cls_w", "cls_b"]


def _layer_norm(x, g, b, eps=LN_EPS):
    mu = jnp.mean(x, axis=-1, keepdims=True)
    var = jnp.mean((x - mu) ** 2, axis=-1, keepdims=True)
    return (x - mu) * jax.lax.rsqrt(var + eps) * g + b


def _mm(a_bf16, w_bf16):
    # MXU matmul: bf16 operands (autocast-style), f32 accumulation. Callers cast once.
    return jnp.dot(a_bf16, w_bf16, preferred_element_type=jnp.float32)


def _bmm(eq, a_bf16, b_bf16):
    # batched (single batch dim, 3-D) contraction, bf16 operands, f32 accumulation.
    return jnp.einsum(eq, a_bf16, b_bf16, preferred_element_type=jnp.float32)


# ---------------- fused Pallas kernel: embeddings-in -> logits-out ----------------
def fused_forward_kernel(x_ref, bias_ref,
                         wq_ref, bq_ref, wk_ref, bk_ref, wv_ref, bv_ref,
                         wo_ref, bo_ref, ln1g_ref, ln1b_ref,
                         w1_ref, b1_ref, w2_ref, b2_ref, ln2g_ref, ln2b_ref,
                         wp_ref, bp_ref, wc_ref, bc_ref,
                         o_ref):
    B, S, H = x_ref.shape
    T = B * S
    scale = 1.0 / (HEAD_DIM ** 0.5)

    # Small constants only: hoisted out of the unrolled layer loop (materialized once).
    # Big weight matrices are deliberately NOT loaded here (point-of-use reads below).
    bias = bias_ref[...]                                   # (N_HEADS*B, 1, S) additive mask bias
    bq, bk, bv, bo = bq_ref[...], bk_ref[...], bv_ref[...], bo_ref[...]
    ln1g, ln1b = ln1g_ref[...], ln1b_ref[...]
    b1, b2 = b1_ref[...], b2_ref[...]
    ln2g, ln2b = ln2g_ref[...], ln2b_ref[...]

    x = x_ref[...].reshape(T, H)                           # f32 residual stream, (B*S, H)

    def split_heads(t2):
        # (T, H) -> (N_HEADS*B, S, HEAD_DIM) with g = head*B + b; lane slices + leading-axis
        # stack + leading-dim-only reshape (all cheap / proven lowerings).
        t3 = t2.reshape(B, S, H)
        parts = [t3[:, :, h * HEAD_DIM:(h + 1) * HEAD_DIM] for h in range(N_HEADS)]
        return jnp.stack(parts, axis=0).reshape(N_HEADS * B, S, HEAD_DIM)

    for _ in range(N_LAYERS):                              # static unroll; ALBERT weight sharing
        xb = x.astype(jnp.bfloat16)                        # cast activation once per layer

        # big (bf16) weights read right at the matmul use site -> short live ranges
        q = (_mm(xb, wq_ref[...]) + bq) * scale            # scale folded into q once per layer
        k = _mm(xb, wk_ref[...]) + bk
        v = _mm(xb, wv_ref[...]) + bv

        qg = split_heads(q).astype(jnp.bfloat16)           # (NH*B, S, D)
        kg = split_heads(k).astype(jnp.bfloat16)
        vg = split_heads(v).astype(jnp.bfloat16)

        # merged-head attention: 2 batched einsums per layer, mask bias applied once
        s = _bmm("gqd,gkd->gqk", qg, kg) + bias            # (NH*B, S, S) f32
        m = jnp.max(s, axis=-1, keepdims=True)
        e = jnp.exp(s - m)
        p = e * pl.reciprocal(jnp.sum(e, axis=-1, keepdims=True), approx=True)
        ctx = _bmm("gqk,gkd->gqd", p.astype(jnp.bfloat16), vg)   # (NH*B, S, D) f32

        ctx4 = ctx.reshape(N_HEADS, B, S, HEAD_DIM)        # leading-dim split only
        ctx_cat = jnp.concatenate([ctx4[h] for h in range(N_HEADS)], axis=-1)  # (B, S, H)
        ctx2 = ctx_cat.reshape(T, H).astype(jnp.bfloat16)

        attn_out = _mm(ctx2, wo_ref[...]) + bo
        x = _layer_norm(x + attn_out, ln1g, ln1b)

        xb2 = x.astype(jnp.bfloat16)                       # single cast reused by FFN
        h1 = jax.nn.gelu(_mm(xb2, w1_ref[...]) + b1)       # tanh-approx GELU == ALBERT gelu_new
        h2 = _mm(h1.astype(jnp.bfloat16), w2_ref[...]) + b2
        x = _layer_norm(x + h2, ln2g, ln2b)

    # ---- pooler + dropout(identity) + cls head fused into the epilogue (no HBM round trip) ----
    h_cls = x.reshape(B, S, H)[:, 0, :]                    # CLS token per sequence   (B, H)
    pooled = jnp.tanh(_mm(h_cls.astype(jnp.bfloat16), wp_ref[...]) + bp_ref[...])
    # Linear(H, 1): VPU multiply + lane reduce instead of an N=1 MXU matmul.
    logits = jnp.sum(pooled * wc_ref[...], axis=-1, keepdims=True) + bc_ref[...]
    o_ref[...] = logits                                    # (B, 1) f32


def fused_forward(x_emb, mask_bias_g, enc_params, head_params):
    B, S, H = x_emb.shape

    def full_spec(a):
        nd = a.ndim
        return pl.BlockSpec(a.shape, lambda i, nd=nd: (0,) * nd)

    operands = [x_emb, mask_bias_g] + list(enc_params) + list(head_params)
    in_specs = [full_spec(a) for a in operands]

    # NOTE: at real ALBERT dims (H=768, I=3072) the weight set should additionally use
    # pipeline_mode=pl.Buffered(1) on the weight BlockSpecs and a raised vmem_limit_bytes,
    # and a leading "parallel" grid axis over token tiles for v7x's 2 TensorCores.
    return pl.pallas_call(
        fused_forward_kernel,
        out_shape=jax.ShapeDtypeStruct((B, 1), jnp.float32),
        grid=(1,),                                         # one step: whole batch at once
        in_specs=in_specs,
        out_specs=pl.BlockSpec((B, 1), lambda i: (0, 0)),
        compiler_params=pltpu.CompilerParams(
            dimension_semantics=("arbitrary",)),
    )(*operands)


# ---------------- parameter init (deterministic, synthetic) ----------------
def init_params(key):
    keys = iter(jax.random.split(key, 16))

    def norm(shape, dtype=jnp.float32, scale=0.02):
        return (scale * jax.random.normal(next(keys), shape)).astype(dtype)

    bf16 = jnp.bfloat16
    p = {}
    # embedding tables stay f32 (gather + LN run in plain JAX outside the kernel)
    p["word_emb"] = norm((VOCAB, HIDDEN))
    p["type_emb"] = norm((TYPE_VOCAB, HIDDEN))
    p["pos_emb"] = norm((MAX_POS, HIDDEN))
    p["emb_ln_g"] = jnp.ones((HIDDEN,), jnp.float32)
    p["emb_ln_b"] = jnp.zeros((HIDDEN,), jnp.float32)

    # matmul weight matrices stored in bf16 (halve weight DMA / VMEM); biases & LN stay f32
    p["attn_wq"] = norm((HIDDEN, HIDDEN), bf16); p["attn_bq"] = jnp.zeros((1, HIDDEN), jnp.float32)
    p["attn_wk"] = norm((HIDDEN, HIDDEN), bf16); p["attn_bk"] = jnp.zeros((1, HIDDEN), jnp.float32)
    p["attn_wv"] = norm((HIDDEN, HIDDEN), bf16); p["attn_bv"] = jnp.zeros((1, HIDDEN), jnp.float32)
    p["attn_wo"] = norm((HIDDEN, HIDDEN), bf16); p["attn_bo"] = jnp.zeros((1, HIDDEN), jnp.float32)
    p["ln1_g"] = jnp.ones((1, HIDDEN), jnp.float32); p["ln1_b"] = jnp.zeros((1, HIDDEN), jnp.float32)
    p["ffn_w1"] = norm((HIDDEN, INTERMEDIATE), bf16); p["ffn_b1"] = jnp.zeros((1, INTERMEDIATE), jnp.float32)
    p["ffn_w2"] = norm((INTERMEDIATE, HIDDEN), bf16); p["ffn_b2"] = jnp.zeros((1, HIDDEN), jnp.float32)
    p["ln2_g"] = jnp.ones((1, HIDDEN), jnp.float32); p["ln2_b"] = jnp.zeros((1, HIDDEN), jnp.float32)

    p["pool_w"] = norm((HIDDEN, HIDDEN), bf16); p["pool_b"] = jnp.zeros((1, HIDDEN), jnp.float32)
    p["cls_w"] = norm((1, HIDDEN))               # Linear(H,1) weight as a row vector (VPU reduce form)
    p["cls_b"] = jnp.zeros((1, 1), jnp.float32)
    return p


# ---------------- full forward (embedding gather as glue, everything else fused) ----------------
def sentence_pair_classifier_forward(params, input_ids, attn_masks, token_type_ids):
    B, S = input_ids.shape
    # embeddings (data-dependent gather + layernorm: glue in plain JAX)
    word_emb = jnp.take(params["word_emb"], input_ids, axis=0)
    type_emb = jnp.take(params["type_emb"], token_type_ids, axis=0)
    pos_emb = params["pos_emb"][:S][None, :, :]
    x = _layer_norm(word_emb + type_emb + pos_emb, params["emb_ln_g"], params["emb_ln_b"])

    # additive attention bias: 0 where attended, -1e4 where padded.
    # Pre-tiled to the merged-head batch dim g = head*B + b: (N_HEADS*B, 1, S).
    mask_bias = ((1.0 - attn_masks.astype(jnp.float32)) * -10000.0)[:, None, :]
    mask_bias_g = jnp.broadcast_to(
        mask_bias[None], (N_HEADS, B, 1, S)).reshape(N_HEADS * B, 1, S)

    enc_params = [params[k] for k in ENC_PARAM_ORDER]
    head_params = [params[k] for k in HEAD_PARAM_ORDER]
    logits = fused_forward(x.astype(jnp.float32), mask_bias_g, enc_params, head_params)
    return logits                                           # (B, 1), matches torch module output


if __name__ == "__main__":
    key = jax.random.PRNGKey(0)
    pkey, ikey = jax.random.split(key, 2)
    params = init_params(pkey)

    input_ids = jax.random.randint(ikey, (BATCH, SEQ), 0, VOCAB, dtype=jnp.int32)
    attn_masks = jnp.ones((BATCH, SEQ), dtype=jnp.int32).at[:, SEQ - 2:].set(0)
    token_type_ids = jnp.concatenate(
        [jnp.zeros((BATCH, SEQ // 2), jnp.int32), jnp.ones((BATCH, SEQ // 2), jnp.int32)],
        axis=1,
    )

    logits = sentence_pair_classifier_forward(params, input_ids, attn_masks, token_type_ids)
    jax.block_until_ready(logits)
    assert logits.shape == (BATCH, 1) and logits.dtype == jnp.float32
    print("KERNEL_OK")
</pallas_src>

<mosaic_0001>
module attributes {stable_mosaic.version = 11 : i64} {
  func.func @fused_forward_kernel(%arg0: i32, %arg1: memref<2x8x128xf32, #tpu.memory_space<vmem>>, %arg2: memref<8x1x8xf32, #tpu.memory_space<vmem>>, %arg3: memref<128x128xbf16, #tpu.memory_space<vmem>>, %arg4: memref<1x128xf32, #tpu.memory_space<vmem>>, %arg5: memref<128x128xbf16, #tpu.memory_space<vmem>>, %arg6: memref<1x128xf32, #tpu.memory_space<vmem>>, %arg7: memref<128x128xbf16, #tpu.memory_space<vmem>>, %arg8: memref<1x128xf32, #tpu.memory_space<vmem>>, %arg9: memref<128x128xbf16, #tpu.memory_space<vmem>>, %arg10: memref<1x128xf32, #tpu.memory_space<vmem>>, %arg11: memref<1x128xf32, #tpu.memory_space<vmem>>, %arg12: memref<1x128xf32, #tpu.memory_space<vmem>>, %arg13: memref<128x256xbf16, #tpu.memory_space<vmem>>, %arg14: memref<1x256xf32, #tpu.memory_space<vmem>>, %arg15: memref<256x128xbf16, #tpu.memory_space<vmem>>, %arg16: memref<1x128xf32, #tpu.memory_space<vmem>>, %arg17: memref<1x128xf32, #tpu.memory_space<vmem>>, %arg18: memref<1x128xf32, #tpu.memory_space<vmem>>, %arg19: memref<128x128xbf16, #tpu.memory_space<vmem>>, %arg20: memref<1x128xf32, #tpu.memory_space<vmem>>, %arg21: memref<1x128xf32, #tpu.memory_space<vmem>>, %arg22: memref<1x1xf32, #tpu.memory_space<vmem>>, %arg23: memref<2x1xf32, #tpu.memory_space<vmem>>) attributes {dimension_semantics = [#tpu.dimension_semantics<arbitrary>], iteration_bounds = array<i64: 1>, scalar_prefetch = 0 : i64, scratch_operands = 0 : i64, tpu.core_type = #tpu.core_type<tc>, window_params = [{pipeline_mode = #tpu.pipeline_mode<synchronous>, transform_indices = @transform_0, window_bounds = array<i64: 2, 8, 128>}, {pipeline_mode = #tpu.pipeline_mode<synchronous>, transform_indices = @transform_1, window_bounds = array<i64: 8, 1, 8>}, {pipeline_mode = #tpu.pipeline_mode<synchronous>, transform_indices = @transform_2, window_bounds = array<i64: 128, 128>}, {pipeline_mode = #tpu.pipeline_mode<synchronous>, transform_indices = @transform_3, window_bounds = array<i64: 1, 128>}, {pipeline_mode = #tpu.pipeline_mode<synchronous>, transform_indices = @transform_4, window_bounds = array<i64: 128, 128>}, {pipeline_mode = #tpu.pipeline_mode<synchronous>, transform_indices = @transform_5, window_bounds = array<i64: 1, 128>}, {pipeline_mode = #tpu.pipeline_mode<synchronous>, transform_indices = @transform_6, window_bounds = array<i64: 128, 128>}, {pipeline_mode = #tpu.pipeline_mode<synchronous>, transform_indices = @transform_7, window_bounds = array<i64: 1, 128>}, {pipeline_mode = #tpu.pipeline_mode<synchronous>, transform_indices = @transform_8, window_bounds = array<i64: 128, 128>}, {pipeline_mode = #tpu.pipeline_mode<synchronous>, transform_indices = @transform_9, window_bounds = array<i64: 1, 128>}, {pipeline_mode = #tpu.pipeline_mode<synchronous>, transform_indices = @transform_10, window_bounds = array<i64: 1, 128>}, {pipeline_mode = #tpu.pipeline_mode<synchronous>, transform_indices = @transform_11, window_bounds = array<i64: 1, 128>}, {pipeline_mode = #tpu.pipeline_mode<synchronous>, transform_indices = @transform_12, window_bounds = array<i64: 128, 256>}, {pipeline_mode = #tpu.pipeline_mode<synchronous>, transform_indices = @transform_13, window_bounds = array<i64: 1, 256>}, {pipeline_mode = #tpu.pipeline_mode<synchronous>, transform_indices = @transform_14, window_bounds = array<i64: 256, 128>}, {pipeline_mode = #tpu.pipeline_mode<synchronous>, transform_indices = @transform_15, window_bounds = array<i64: 1, 128>}, {pipeline_mode = #tpu.pipeline_mode<synchronous>, transform_indices = @transform_16, window_bounds = array<i64: 1, 128>}, {pipeline_mode = #tpu.pipeline_mode<synchronous>, transform_indices = @transform_17, window_bounds = array<i64: 1, 128>}, {pipeline_mode = #tpu.pipeline_mode<synchronous>, transform_indices = @transform_18, window_bounds = array<i64: 128, 128>}, {pipeline_mode = #tpu.pipeline_mode<synchronous>, transform_indices = @transform_19, window_bounds = array<i64: 1, 128>}, {pipeline_mode = #tpu.pipeline_mode<synchronous>, transform_indices = @transform_20, window_bounds = array<i64: 1, 128>}, {pipeline_mode = #tpu.pipeline_mode<synchronous>, transform_indices = @transform_21, window_bounds = array<i64: 1, 1>}, {pipeline_mode = #tpu.pipeline_mode<synchronous>, transform_indices = @transform_22, window_bounds = array<i64: 2, 1>}]} {
    %c0 = arith.constant 0 : index
    %c0_0 = arith.constant 0 : index
    %c0_1 = arith.constant 0 : index
    %0 = vector.load %arg2[%c0, %c0_0, %c0_1] : memref<8x1x8xf32, #tpu.memory_space<vmem>>, vector<8x1x8xf32>
    %c0_2 = arith.constant 0 : index
    %c0_3 = arith.constant 0 : index
    %1 = vector.load %arg4[%c0_2, %c0_3] : memref<1x128xf32, #tpu.memory_space<vmem>>, vector<1x128xf32>
    %c0_4 = arith.constant 0 : index
    %c0_5 = arith.constant 0 : index
    %2 = vector.load %arg6[%c0_4, %c0_5] : memref<1x128xf32, #tpu.memory_space<vmem>>, vector<1x128xf32>
    %c0_6 = arith.constant 0 : index
    %c0_7 = arith.constant 0 : index
    %3 = vector.load %arg8[%c0_6, %c0_7] : memref<1x128xf32, #tpu.memory_space<vmem>>, vector<1x128xf32>
    %c0_8 = arith.constant 0 : index
    %c0_9 = arith.constant 0 : index
    %4 = vector.load %arg10[%c0_8, %c0_9] : memref<1x128xf32, #tpu.memory_space<vmem>>, vector<1x128xf32>
    %c0_10 = arith.constant 0 : index
    %c0_11 = arith.constant 0 : index
    %5 = vector.load %arg11[%c0_10, %c0_11] : memref<1x128xf32, #tpu.memory_space<vmem>>, vector<1x128xf32>
    %c0_12 = arith.constant 0 : index
    %c0_13 = arith.constant 0 : index
    %6 = vector.load %arg12[%c0_12, %c0_13] : memref<1x128xf32, #tpu.memory_space<vmem>>, vector<1x128xf32>
    %c0_14 = arith.constant 0 : index
    %c0_15 = arith.constant 0 : index
    %7 = vector.load %arg14[%c0_14, %c0_15] : memref<1x256xf32, #tpu.memory_space<vmem>>, vector<1x256xf32>
    %c0_16 = arith.constant 0 : index
    %c0_17 = arith.constant 0 : index
    %8 = vector.load %arg16[%c0_16, %c0_17] : memref<1x128xf32, #tpu.memory_space<vmem>>, vector<1x128xf32>
    %c0_18 = arith.constant 0 : index
    %c0_19 = arith.constant 0 : index
    %9 = vector.load %arg17[%c0_18, %c0_19] : memref<1x128xf32, #tpu.memory_space<vmem>>, vector<1x128xf32>
    %c0_20 = arith.constant 0 : index
    %c0_21 = arith.constant 0 : index
    %10 = vector.load %arg18[%c0_20, %c0_21] : memref<1x128xf32, #tpu.memory_space<vmem>>, vector<1x128xf32>
    %c0_22 = arith.constant 0 : index
    %c0_23 = arith.constant 0 : index
    %c0_24 = arith.constant 0 : index
    %11 = vector.load %arg1[%c0_22, %c0_23, %c0_24] : memref<2x8x128xf32, #tpu.memory_space<vmem>>, vector<2x8x128xf32>
    %12 = vector.shape_cast %11 : vector<2x8x128xf32> to vector<16x128xf32>
    %13 = arith.truncf %12 : vector<16x128xf32> to vector<16x128xbf16>
    %c0_25 = arith.constant 0 : index
    %c0_26 = arith.constant 0 : index
    %14 = vector.load %arg3[%c0_25, %c0_26] : memref<128x128xbf16, #tpu.memory_space<vmem>>, vector<128x128xbf16>
    %cst = arith.constant dense<0.000000e+00> : vector<16x128xf32>
    %15 = tpu.matmul %13, %14, %cst {dimension_numbers = #tpu.dot_dimension_numbers<[1], [0], [0], [1], [0, 0, 1, 1], [], []>} : vector<16x128xbf16>, vector<128x128xbf16>, vector<16x128xf32> -> vector<16x128xf32>
    %16 = vector.broadcast %1 : vector<1x128xf32> to vector<16x128xf32>
    %17 = arith.addf %15, %16 : vector<16x128xf32>
    %cst_27 = arith.constant 0.176776692 : f32
    %18 = vector.broadcast %cst_27 : f32 to vector<16x128xf32>
    %19 = arith.mulf %17, %18 : vector<16x128xf32>
    %c0_28 = arith.constant 0 : index
    %c0_29 = arith.constant 0 : index
    %20 = vector.load %arg5[%c0_28, %c0_29] : memref<128x128xbf16, #tpu.memory_space<vmem>>, vector<128x128xbf16>
    %cst_30 = arith.constant dense<0.000000e+00> : vector<16x128xf32>
    %21 = tpu.matmul %13, %20, %cst_30 {dimension_numbers = #tpu.dot_dimension_numbers<[1], [0], [0], [1], [0, 0, 1, 1], [], []>} : vector<16x128xbf16>, vector<128x128xbf16>, vector<16x128xf32> -> vector<16x128xf32>
    %22 = vector.broadcast %2 : vector<1x128xf32> to vector<16x128xf32>
    %23 = arith.addf %21, %22 : vector<16x128xf32>
    %c0_31 = arith.constant 0 : index
    %c0_32 = arith.constant 0 : index
    %24 = vector.load %arg7[%c0_31, %c0_32] : memref<128x128xbf16, #tpu.memory_space<vmem>>, vector<128x128xbf16>
    %cst_33 = arith.constant dense<0.000000e+00> : vector<16x128xf32>
    %25 = tpu.matmul %13, %24, %cst_33 {dimension_numbers = #tpu.dot_dimension_numbers<[1], [0], [0], [1], [0, 0, 1, 1], [], []>} : vector<16x128xbf16>, vector<128x128xbf16>, vector<16x128xf32> -> vector<16x128xf32>
    %26 = vector.broadcast %3 : vector<1x128xf32> to vector<16x128xf32>
    %27 = arith.addf %25, %26 : vector<16x128xf32>
    %28 = vector.shape_cast %19 : vector<16x128xf32> to vector<2x8x128xf32>
    %29 = vector.extract_strided_slice %28 {offsets = [0, 0, 0], sizes = [2, 8, 32], strides = [1, 1, 1]} : vector<2x8x128xf32> to vector<2x8x32xf32>
    %30 = vector.extract_strided_slice %28 {offsets = [0, 0, 32], sizes = [2, 8, 32], strides = [1, 1, 1]} : vector<2x8x128xf32> to vector<2x8x32xf32>
    %31 = vector.extract_strided_slice %28 {offsets = [0, 0, 64], sizes = [2, 8, 32], strides = [1, 1, 1]} : vector<2x8x128xf32> to vector<2x8x32xf32>
    %32 = vector.extract_strided_slice %28 {offsets = [0, 0, 96], sizes = [2, 8, 32], strides = [1, 1, 1]} : vector<2x8x128xf32> to vector<2x8x32xf32>
    %33 = vector.shape_cast %29 : vector<2x8x32xf32> to vector<1x2x8x32xf32>
    %34 = vector.shape_cast %30 : vector<2x8x32xf32> to vector<1x2x8x32xf32>
    %35 = vector.shape_cast %31 : vector<2x8x32xf32> to vector<1x2x8x32xf32>
    %36 = vector.shape_cast %32 : vector<2x8x32xf32> to vector<1x2x8x32xf32>
    %37 = tpu.concatenate %33, %34, %35, %36 in 0 : vector<1x2x8x32xf32>, vector<1x2x8x32xf32>, vector<1x2x8x32xf32>, vector<1x2x8x32xf32> -> vector<4x2x8x32xf32>
    %38 = vector.shape_cast %37 : vector<4x2x8x32xf32> to vector<8x8x32xf32>
    %39 = arith.truncf %38 : vector<8x8x32xf32> to vector<8x8x32xbf16>
    %40 = vector.shape_cast %23 : vector<16x128xf32> to vector<2x8x128xf32>
    %41 = vector.extract_strided_slice %40 {offsets = [0, 0, 0], sizes = [2, 8, 32], strides = [1, 1, 1]} : vector<2x8x128xf32> to vector<2x8x32xf32>
    %42 = vector.extract_strided_slice %40 {offsets = [0, 0, 32], sizes = [2, 8, 32], strides = [1, 1, 1]} : vector<2x8x128xf32> to vector<2x8x32xf32>
    %43 = vector.extract_strided_slice %40 {offsets = [0, 0, 64], sizes = [2, 8, 32], strides = [1, 1, 1]} : vector<2x8x128xf32> to vector<2x8x32xf32>
    %44 = vector.extract_strided_slice %40 {offsets = [0, 0, 96], sizes = [2, 8, 32], strides = [1, 1, 1]} : vector<2x8x128xf32> to vector<2x8x32xf32>
    %45 = vector.shape_cast %41 : vector<2x8x32xf32> to vector<1x2x8x32xf32>
    %46 = vector.shape_cast %42 : vector<2x8x32xf32> to vector<1x2x8x32xf32>
    %47 = vector.shape_cast %43 : vector<2x8x32xf32> to vector<1x2x8x32xf32>
    %48 = vector.shape_cast %44 : vector<2x8x32xf32> to vector<1x2x8x32xf32>
    %49 = tpu.concatenate %45, %46, %47, %48 in 0 : vector<1x2x8x32xf32>, vector<1x2x8x32xf32>, vector<1x2x8x32xf32>, vector<1x2x8x32xf32> -> vector<4x2x8x32xf32>
    %50 = vector.shape_cast %49 : vector<4x2x8x32xf32> to vector<8x8x32xf32>
    %51 = arith.truncf %50 : vector<8x8x32xf32> to vector<8x8x32xbf16>
    %52 = vector.shape_cast %27 : vector<16x128xf32> to vector<2x8x128xf32>
    %53 = vector.extract_strided_slice %52 {offsets = [0, 0, 0], sizes = [2, 8, 32], strides = [1, 1, 1]} : vector<2x8x128xf32> to vector<2x8x32xf32>
    %54 = vector.extract_strided_slice %52 {offsets = [0, 0, 32], sizes = [2, 8, 32], strides = [1, 1, 1]} : vector<2x8x128xf32> to vector<2x8x32xf32>
    %55 = vector.extract_strided_slice %52 {offsets = [0, 0, 64], sizes = [2, 8, 32], strides = [1, 1, 1]} : vector<2x8x128xf32> to vector<2x8x32xf32>
    %56 = vector.extract_strided_slice %52 {offsets = [0, 0, 96], sizes = [2, 8, 32], strides = [1, 1, 1]} : vector<2x8x128xf32> to vector<2x8x32xf32>
    %57 = vector.shape_cast %53 : vector<2x8x32xf32> to vector<1x2x8x32xf32>
    %58 = vector.shape_cast %54 : vector<2x8x32xf32> to vector<1x2x8x32xf32>
    %59 = vector.shape_cast %55 : vector<2x8x32xf32> to vector<1x2x8x32xf32>
    %60 = vector.shape_cast %56 : vector<2x8x32xf32> to vector<1x2x8x32xf32>
    %61 = tpu.concatenate %57, %58, %59, %60 in 0 : vector<1x2x8x32xf32>, vector<1x2x8x32xf32>, vector<1x2x8x32xf32>, vector<1x2x8x32xf32> -> vector<4x2x8x32xf32>
    %62 = vector.shape_cast %61 : vector<4x2x8x32xf32> to vector<8x8x32xf32>
    %63 = arith.truncf %62 : vector<8x8x32xf32> to vector<8x8x32xbf16>
    "tpu.trace_start"() <{level = 10 : i32, message = "gqd,gkd->gqk"}> : () -> ()
    %cst_34 = arith.constant dense<0.000000e+00> : vector<8x8x8xf32>
    %64 = tpu.matmul %39, %51, %cst_34 {dimension_numbers = #tpu.dot_dimension_numbers<[2], [2], [1], [1], [0, 0, 0, 1, 1, 1], [0], [0]>} : vector<8x8x32xbf16>, vector<8x8x32xbf16>, vector<8x8x8xf32> -> vector<8x8x8xf32>
    "tpu.trace_stop"() : () -> ()
    %65 = vector.broadcast %0 : vector<8x1x8xf32> to vector<8x8x8xf32>
    %66 = arith.addf %64, %65 : vector<8x8x8xf32>
    %cst_35 = arith.constant dense<0xFF800000> : vector<8x8xf32>
    %67 = vector.multi_reduction <maximumf>, %66, %cst_35 [2] : vector<8x8x8xf32> to vector<8x8xf32>
    %68 = vector.shape_cast %67 : vector<8x8xf32> to vector<8x8x1xf32>
    %69 = vector.broadcast %68 : vector<8x8x1xf32> to vector<8x8x8xf32>
    %70 = arith.subf %66, %69 : vector<8x8x8xf32>
    %71 = math.exp %70 : vector<8x8x8xf32>
    %cst_36 = arith.constant dense<0.000000e+00> : vector<8x8xf32>
    %72 = vector.multi_reduction <add>, %71, %cst_36 [2] : vector<8x8x8xf32> to vector<8x8xf32>
    %73 = vector.shape_cast %72 : vector<8x8xf32> to vector<8x8x1xf32>
    %74 = tpu.reciprocal %73 {approx = true} : vector<8x8x1xf32> -> vector<8x8x1xf32>
    %75 = vector.broadcast %74 : vector<8x8x1xf32> to vector<8x8x8xf32>
    %76 = arith.mulf %71, %75 : vector<8x8x8xf32>
    %77 = arith.truncf %76 : vector<8x8x8xf32> to vector<8x8x8xbf16>
    "tpu.trace_start"() <{level = 10 : i32, message = "gqk,gkd->gqd"}> : () -> ()
    %cst_37 = arith.constant dense<0.000000e+00> : vector<8x8x32xf32>
    %78 = tpu.matmul %77, %63, %cst_37 {dimension_numbers = #tpu.dot_dimension_numbers<[2], [1], [1], [2], [0, 0, 0, 1, 1, 2], [0], [0]>} : vector<8x8x8xbf16>, vector<8x8x32xbf16>, vector<8x8x32xf32> -> vector<8x8x32xf32>
    "tpu.trace_stop"() : () -> ()
    %79 = vector.shape_cast %78 : vector<8x8x32xf32> to vector<4x2x8x32xf32>
    %80 = vector.extract_strided_slice %79 {offsets = [0, 0, 0, 0], sizes = [1, 2, 8, 32], strides = [1, 1, 1, 1]} : vector<4x2x8x32xf32> to vector<1x2x8x32xf32>
    %81 = vector.shape_cast %80 : vector<1x2x8x32xf32> to vector<2x8x32xf32>
    %82 = vector.extract_strided_slice %79 {offsets = [1, 0, 0, 0], sizes = [1, 2, 8, 32], strides = [1, 1, 1, 1]} : vector<4x2x8x32xf32> to vector<1x2x8x32xf32>
    %83 = vector.shape_cast %82 : vector<1x2x8x32xf32> to vector<2x8x32xf32>
    %84 = vector.extract_strided_slice %79 {offsets = [2, 0, 0, 0], sizes = [1, 2, 8, 32], strides = [1, 1, 1, 1]} : vector<4x2x8x32xf32> to vector<1x2x8x32xf32>
    %85 = vector.shape_cast %84 : vector<1x2x8x32xf32> to vector<2x8x32xf32>
    %86 = vector.extract_strided_slice %79 {offsets = [3, 0, 0, 0], sizes = [1, 2, 8, 32], strides = [1, 1, 1, 1]} : vector<4x2x8x32xf32> to vector<1x2x8x32xf32>
    %87 = vector.shape_cast %86 : vector<1x2x8x32xf32> to vector<2x8x32xf32>
    %88 = tpu.concatenate %81, %83, %85, %87 in 2 : vector<2x8x32xf32>, vector<2x8x32xf32>, vector<2x8x32xf32>, vector<2x8x32xf32> -> vector<2x8x128xf32>
    %89 = vector.shape_cast %88 : vector<2x8x128xf32> to vector<16x128xf32>
    %90 = arith.truncf %89 : vector<16x128xf32> to vector<16x128xbf16>
    %c0_38 = arith.constant 0 : index
    %c0_39 = arith.constant 0 : index
    %91 = vector.load %arg9[%c0_38, %c0_39] : memref<128x128xbf16, #tpu.memory_space<vmem>>, vector<128x128xbf16>
    %cst_40 = arith.constant dense<0.000000e+00> : vector<16x128xf32>
    %92 = tpu.matmul %90, %91, %cst_40 {dimension_numbers = #tpu.dot_dimension_numbers<[1], [0], [0], [1], [0, 0, 1, 1], [], []>} : vector<16x128xbf16>, vector<128x128xbf16>, vector<16x128xf32> -> vector<16x128xf32>
    %93 = vector.broadcast %4 : vector<1x128xf32> to vector<16x128xf32>
    %94 = arith.addf %92, %93 : vector<16x128xf32>
    %95 = arith.addf %12, %94 : vector<16x128xf32>
    %cst_41 = arith.constant dense<0.000000e+00> : vector<16xf32>
    %96 = vector.multi_reduction <add>, %95, %cst_41 [1] : vector<16x128xf32> to vector<16xf32>
    %97 = vector.shape_cast %96 : vector<16xf32> to vector<16x1xf32>
    %cst_42 = arith.constant 1.280000e+02 : f32
    %98 = vector.broadcast %cst_42 : f32 to vector<16x1xf32>
    %99 = arith.divf %97, %98 : vector<16x1xf32>
    %100 = vector.broadcast %99 : vector<16x1xf32> to vector<16x128xf32>
    %101 = arith.subf %95, %100 : vector<16x128xf32>
    %102 = arith.mulf %101, %101 : vector<16x128xf32>
    %cst_43 = arith.constant dense<0.000000e+00> : vector<16xf32>
    %103 = vector.multi_reduction <add>, %102, %cst_43 [1] : vector<16x128xf32> to vector<16xf32>
    %104 = vector.shape_cast %103 : vector<16xf32> to vector<16x1xf32>
    %cst_44 = arith.constant 1.280000e+02 : f32
    %105 = vector.broadcast %cst_44 : f32 to vector<16x1xf32>
    %106 = arith.divf %104, %105 : vector<16x1xf32>
    %107 = vector.broadcast %99 : vector<16x1xf32> to vector<16x128xf32>
    %108 = arith.subf %95, %107 : vector<16x128xf32>
    %cst_45 = arith.constant 9.99999996E-13 : f32
    %109 = vector.broadcast %cst_45 : f32 to vector<16x1xf32>
    %110 = arith.addf %106, %109 : vector<16x1xf32>
    %111 = math.rsqrt %110 : vector<16x1xf32>
    %112 = vector.broadcast %111 : vector<16x1xf32> to vector<16x128xf32>
    %113 = arith.mulf %108, %112 : vector<16x128xf32>
    %114 = vector.broadcast %5 : vector<1x128xf32> to vector<16x128xf32>
    %115 = arith.mulf %113, %114 : vector<16x128xf32>
    %116 = vector.broadcast %6 : vector<1x128xf32> to vector<16x128xf32>
    %117 = arith.addf %115, %116 : vector<16x128xf32>
    %118 = arith.truncf %117 : vector<16x128xf32> to vector<16x128xbf16>
    %c0_46 = arith.constant 0 : index
    %c0_47 = arith.constant 0 : index
    %119 = vector.load %arg13[%c0_46, %c0_47] : memref<128x256xbf16, #tpu.memory_space<vmem>>, vector<128x256xbf16>
    %cst_48 = arith.constant dense<0.000000e+00> : vector<16x256xf32>
    %120 = tpu.matmul %118, %119, %cst_48 {dimension_numbers = #tpu.dot_dimension_numbers<[1], [0], [0], [1], [0, 0, 1, 1], [], []>} : vector<16x128xbf16>, vector<128x256xbf16>, vector<16x256xf32> -> vector<16x256xf32>
    %121 = vector.broadcast %7 : vector<1x256xf32> to vector<16x256xf32>
    %122 = arith.addf %120, %121 : vector<16x256xf32>
    %123 = arith.mulf %122, %122 : vector<16x256xf32>
    %124 = arith.mulf %122, %123 : vector<16x256xf32>
    %cst_49 = arith.constant 4.471500e-02 : f32
    %125 = vector.broadcast %cst_49 : f32 to vector<16x256xf32>
    %126 = arith.mulf %125, %124 : vector<16x256xf32>
    %127 = arith.addf %122, %126 : vector<16x256xf32>
    %cst_50 = arith.constant 0.797884583 : f32
    %128 = vector.broadcast %cst_50 : f32 to vector<16x256xf32>
    %129 = arith.mulf %128, %127 : vector<16x256xf32>
    %130 = math.tanh %129 : vector<16x256xf32>
    %cst_51 = arith.constant 1.000000e+00 : f32
    %131 = vector.broadcast %cst_51 : f32 to vector<16x256xf32>
    %132 = arith.addf %131, %130 : vector<16x256xf32>
    %cst_52 = arith.constant 5.000000e-01 : f32
    %133 = vector.broadcast %cst_52 : f32 to vector<16x256xf32>
    %134 = arith.mulf %133, %132 : vector<16x256xf32>
    %135 = arith.mulf %122, %134 : vector<16x256xf32>
    %136 = arith.truncf %135 : vector<16x256xf32> to vector<16x256xbf16>
    %c0_53 = arith.constant 0 : index
    %c0_54 = arith.constant 0 : index
    %137 = vector.load %arg15[%c0_53, %c0_54] : memref<256x128xbf16, #tpu.memory_space<vmem>>, vector<256x128xbf16>
    %cst_55 = arith.constant dense<0.000000e+00> : vector<16x128xf32>
    %138 = tpu.matmul %136, %137, %cst_55 {dimension_numbers = #tpu.dot_dimension_numbers<[1], [0], [0], [1], [0, 0, 1, 1], [], []>} : vector<16x256xbf16>, vector<256x128xbf16>, vector<16x128xf32> -> vector<16x128xf32>
    %139 = vector.broadcast %8 : vector<1x128xf32> to vector<16x128xf32>
    %140 = arith.addf %138, %139 : vector<16x128xf32>
    %141 = arith.addf %117, %140 : vector<16x128xf32>
    %cst_56 = arith.constant dense<0.000000e+00> : vector<16xf32>
    %142 = vector.multi_reduction <add>, %141, %cst_56 [1] : vector<16x128xf32> to vector<16xf32>
    %143 = vector.shape_cast %142 : vector<16xf32> to vector<16x1xf32>
    %cst_57 = arith.constant 1.280000e+02 : f32
    %144 = vector.broadcast %cst_57 : f32 to vector<16x1xf32>
    %145 = arith.divf %143, %144 : vector<16x1xf32>
    %146 = vector.broadcast %145 : vector<16x1xf32> to vector<16x128xf32>
    %147 = arith.subf %141, %146 : vector<16x128xf32>
    %148 = arith.mulf %147, %147 : vector<16x128xf32>
    %cst_58 = arith.constant dense<0.000000e+00> : vector<16xf32>
    %149 = vector.multi_reduction <add>, %148, %cst_58 [1] : vector<16x128xf32> to vector<16xf32>
    %150 = vector.shape_cast %149 : vector<16xf32> to vector<16x1xf32>
    %cst_59 = arith.constant 1.280000e+02 : f32
    %151 = vector.broadcast %cst_59 : f32 to vector<16x1xf32>
    %152 = arith.divf %150, %151 : vector<16x1xf32>
    %153 = vector.broadcast %145 : vector<16x1xf32> to vector<16x128xf32>
    %154 = arith.subf %141, %153 : vector<16x128xf32>
    %cst_60 = arith.constant 9.99999996E-13 : f32
    %155 = vector.broadcast %cst_60 : f32 to vector<16x1xf32>
    %156 = arith.addf %152, %155 : vector<16x1xf32>
    %157 = math.rsqrt %156 : vector<16x1xf32>
    %158 = vector.broadcast %157 : vector<16x1xf32> to vector<16x128xf32>
    %159 = arith.mulf %154, %158 : vector<16x128xf32>
    %160 = vector.broadcast %9 : vector<1x128xf32> to vector<16x128xf32>
    %161 = arith.mulf %159, %160 : vector<16x128xf32>
    %162 = vector.broadcast %10 : vector<1x128xf32> to vector<16x128xf32>
    %163 = arith.addf %161, %162 : vector<16x128xf32>
    %164 = arith.truncf %163 : vector<16x128xf32> to vector<16x128xbf16>
    %c0_61 = arith.constant 0 : index
    %c0_62 = arith.constant 0 : index
    %165 = vector.load %arg3[%c0_61, %c0_62] : memref<128x128xbf16, #tpu.memory_space<vmem>>, vector<128x128xbf16>
    %cst_63 = arith.constant dense<0.000000e+00> : vector<16x128xf32>
    %166 = tpu.matmul %164, %165, %cst_63 {dimension_numbers = #tpu.dot_dimension_numbers<[1], [0], [0], [1], [0, 0, 1, 1], [], []>} : vector<16x128xbf16>, vector<128x128xbf16>, vector<16x128xf32> -> vector<16x128xf32>
    %167 = vector.broadcast %1 : vector<1x128xf32> to vector<16x128xf32>
    %168 = arith.addf %166, %167 : vector<16x128xf32>
    %cst_64 = arith.constant 0.176776692 : f32
    %169 = vector.broadcast %cst_64 : f32 to vector<16x128xf32>
    %170 = arith.mulf %168, %169 : vector<16x128xf32>
    %c0_65 = arith.constant 0 : index
    %c0_66 = arith.constant 0 : index
    %171 = vector.load %arg5[%c0_65, %c0_66] : memref<128x128xbf16, #tpu.memory_space<vmem>>, vector<128x128xbf16>
    %cst_67 = arith.constant dense<0.000000e+00> : vector<16x128xf32>
    %172 = tpu.matmul %164, %171, %cst_67 {dimension_numbers = #tpu.dot_dimension_numbers<[1], [0], [0], [1], [0, 0, 1, 1], [], []>} : vector<16x128xbf16>, vector<128x128xbf16>, vector<16x128xf32> -> vector<16x128xf32>
    %173 = vector.broadcast %2 : vector<1x128xf32> to vector<16x128xf32>
    %174 = arith.addf %172, %173 : vector<16x128xf32>
    %c0_68 = arith.constant 0 : index
    %c0_69 = arith.constant 0 : index
    %175 = vector.load %arg7[%c0_68, %c0_69] : memref<128x128xbf16, #tpu.memory_space<vmem>>, vector<128x128xbf16>
    %cst_70 = arith.constant dense<0.000000e+00> : vector<16x128xf32>
    %176 = tpu.matmul %164, %175, %cst_70 {dimension_numbers = #tpu.dot_dimension_numbers<[1], [0], [0], [1], [0, 0, 1, 1], [], []>} : vector<16x128xbf16>, vector<128x128xbf16>, vector<16x128xf32> -> vector<16x128xf32>
    %177 = vector.broadcast %3 : vector<1x128xf32> to vector<16x128xf32>
    %178 = arith.addf %176, %177 : vector<16x128xf32>
    %179 = vector.shape_cast %170 : vector<16x128xf32> to vector<2x8x128xf32>
    %180 = vector.extract_strided_slice %179 {offsets = [0, 0, 0], sizes = [2, 8, 32], strides = [1, 1, 1]} : vector<2x8x128xf32> to vector<2x8x32xf32>
    %181 = vector.extract_strided_slice %179 {offsets = [0, 0, 32], sizes = [2, 8, 32], strides = [1, 1, 1]} : vector<2x8x128xf32> to vector<2x8x32xf32>
    %182 = vector.extract_strided_slice %179 {offsets = [0, 0, 64], sizes = [2, 8, 32], strides = [1, 1, 1]} : vector<2x8x128xf32> to vector<2x8x32xf32>
    %183 = vector.extract_strided_slice %179 {offsets = [0, 0, 96], sizes = [2, 8, 32], strides = [1, 1, 1]} : vector<2x8x128xf32> to vector<2x8x32xf32>
    %184 = vector.shape_cast %180 : vector<2x8x32xf32> to vector<1x2x8x32xf32>
    %185 = vector.shape_cast %181 : vector<2x8x32xf32> to vector<1x2x8x32xf32>
    %186 = vector.shape_cast %182 : vector<2x8x32xf32> to vector<1x2x8x32xf32>
    %187 = vector.shape_cast %183 : vector<2x8x32xf32> to vector<1x2x8x32xf32>
    %188 = tpu.concatenate %184, %185, %186, %187 in 0 : vector<1x2x8x32xf32>, vector<1x2x8x32xf32>, vector<1x2x8x32xf32>, vector<1x2x8x32xf32> -> vector<4x2x8x32xf32>
    %189 = vector.shape_cast %188 : vector<4x2x8x32xf32> to vector<8x8x32xf32>
    %190 = arith.truncf %189 : vector<8x8x32xf32> to vector<8x8x32xbf16>
    %191 = vector.shape_cast %174 : vector<16x128xf32> to vector<2x8x128xf32>
    %192 = vector.extract_strided_slice %191 {offsets = [0, 0, 0], sizes = [2, 8, 32], strides = [1, 1, 1]} : vector<2x8x128xf32> to vector<2x8x32xf32>
    %193 = vector.extract_strided_slice %191 {offsets = [0, 0, 32], sizes = [2, 8, 32], strides = [1, 1, 1]} : vector<2x8x128xf32> to vector<2x8x32xf32>
    %194 = vector.extract_strided_slice %191 {offsets = [0, 0, 64], sizes = [2, 8, 32], strides = [1, 1, 1]} : vector<2x8x128xf32> to vector<2x8x32xf32>
    %195 = vector.extract_strided_slice %191 {offsets = [0, 0, 96], sizes = [2, 8, 32], strides = [1, 1, 1]} : vector<2x8x128xf32> to vector<2x8x32xf32>
    %196 = vector.shape_cast %192 : vector<2x8x32xf32> to vector<1x2x8x32xf32>
    %197 = vector.shape_cast %193 : vector<2x8x32xf32> to vector<1x2x8x32xf32>
    %198 = vector.shape_cast %194 : vector<2x8x32xf32> to vector<1x2x8x32xf32>
    %199 = vector.shape_cast %195 : vector<2x8x32xf32> to vector<1x2x8x32xf32>
    %200 = tpu.concatenate %196, %197, %198, %199 in 0 : vector<1x2x8x32xf32>, vector<1x2x8x32xf32>, vector<1x2x8x32xf32>, vector<1x2x8x32xf32> -> vector<4x2x8x32xf32>
    %201 = vector.shape_cast %200 : vector<4x2x8x32xf32> to vector<8x8x32xf32>
    %202 = arith.truncf %201 : vector<8x8x32xf32> to vector<8x8x32xbf16>
    %203 = vector.shape_cast %178 : vector<16x128xf32> to vector<2x8x128xf32>
    %204 = vector.extract_strided_slice %203 {offsets = [0, 0, 0], sizes = [2, 8, 32], strides = [1, 1, 1]} : vector<2x8x128xf32> to vector<2x8x32xf32>
    %205 = vector.extract_strided_slice %203 {offsets = [0, 0, 32], sizes = [2, 8, 32], strides = [1, 1, 1]} : vector<2x8x128xf32> to vector<2x8x32xf32>
    %206 = vector.extract_strided_slice %203 {offsets = [0, 0, 64], sizes = [2, 8, 32], strides = [1, 1, 1]} : vector<2x8x128xf32> to vector<2x8x32xf32>
    %207 = vector.extract_strided_slice %203 {offsets = [0, 0, 96], sizes = [2, 8, 32], strides = [1, 1, 1]} : vector<2x8x128xf32> to vector<2x8x32xf32>
    %208 = vector.shape_cast %204 : vector<2x8x32xf32> to vector<1x2x8x32xf32>
    %209 = vector.shape_cast %205 : vector<2x8x32xf32> to vector<1x2x8x32xf32>
    %210 = vector.shape_cast %206 : vector<2x8x32xf32> to vector<1x2x8x32xf32>
    %211 = vector.shape_cast %207 : vector<2x8x32xf32> to vector<1x2x8x32xf32>
    %212 = tpu.concatenate %208, %209, %210, %211 in 0 : vector<1x2x8x32xf32>, vector<1x2x8x32xf32>, vector<1x2x8x32xf32>, vector<1x2x8x32xf32> -> vector<4x2x8x32xf32>
    %213 = vector.shape_cast %212 : vector<4x2x8x32xf32> to vector<8x8x32xf32>
    %214 = arith.truncf %213 : vector<8x8x32xf32> to vector<8x8x32xbf16>
    "tpu.trace_start"() <{level = 10 : i32, message = "gqd,gkd->gqk"}> : () -> ()
    %cst_71 = arith.constant dense<0.000000e+00> : vector<8x8x8xf32>
    %215 = tpu.matmul %190, %202, %cst_71 {dimension_numbers = #tpu.dot_dimension_numbers<[2], [2], [1], [1], [0, 0, 0, 1, 1, 1], [0], [0]>} : vector<8x8x32xbf16>, vector<8x8x32xbf16>, vector<8x8x8xf32> -> vector<8x8x8xf32>
    "tpu.trace_stop"() : () -> ()
    %216 = vector.broadcast %0 : vector<8x1x8xf32> to vector<8x8x8xf32>
    %217 = arith.addf %215, %216 : vector<8x8x8xf32>
    %cst_72 = arith.constant dense<0xFF800000> : vector<8x8xf32>
    %218 = vector.multi_reduction <maximumf>, %217, %cst_72 [2] : vector<8x8x8xf32> to vector<8x8xf32>
    %219 = vector.shape_cast %218 : vector<8x8xf32> to vector<8x8x1xf32>
    %220 = vector.broadcast %219 : vector<8x8x1xf32> to vector<8x8x8xf32>
    %221 = arith.subf %217, %220 : vector<8x8x8xf32>
    %222 = math.exp %221 : vector<8x8x8xf32>
    %cst_73 = arith.constant dense<0.000000e+00> : vector<8x8xf32>
    %223 = vector.multi_reduction <add>, %222, %cst_73 [2] : vector<8x8x8xf32> to vector<8x8xf32>
    %224 = vector.shape_cast %223 : vector<8x8xf32> to vector<8x8x1xf32>
    %225 = tpu.reciprocal %224 {approx = true} : vector<8x8x1xf32> -> vector<8x8x1xf32>
    %226 = vector.broadcast %225 : vector<8x8x1xf32> to vector<8x8x8xf32>
    %227 = arith.mulf %222, %226 : vector<8x8x8xf32>
    %228 = arith.truncf %227 : vector<8x8x8xf32> to vector<8x8x8xbf16>
    "tpu.trace_start"() <{level = 10 : i32, message = "gqk,gkd->gqd"}> : () -> ()
    %cst_74 = arith.constant dense<0.000000e+00> : vector<8x8x32xf32>
    %229 = tpu.matmul %228, %214, %cst_74 {dimension_numbers = #tpu.dot_dimension_numbers<[2], [1], [1], [2], [0, 0, 0, 1, 1, 2], [0], [0]>} : vector<8x8x8xbf16>, vector<8x8x32xbf16>, vector<8x8x32xf32> -> vector<8x8x32xf32>
    "tpu.trace_stop"() : () -> ()
    %230 = vector.shape_cast %229 : vector<8x8x32xf32> to vector<4x2x8x32xf32>
    %231 = vector.extract_strided_slice %230 {offsets = [0, 0, 0, 0], sizes = [1, 2, 8, 32], strides = [1, 1, 1, 1]} : vector<4x2x8x32xf32> to vector<1x2x8x32xf32>
    %232 = vector.shape_cast %231 : vector<1x2x8x32xf32> to vector<2x8x32xf32>
    %233 = vector.extract_strided_slice %230 {offsets = [1, 0, 0, 0], sizes = [1, 2, 8, 32], strides = [1, 1, 1, 1]} : vector<4x2x8x32xf32> to vector<1x2x8x32xf32>
    %234 = vector.shape_cast %233 : vector<1x2x8x32xf32> to vector<2x8x32xf32>
    %235 = vector.extract_strided_slice %230 {offsets = [2, 0, 0, 0], sizes = [1, 2, 8, 32], strides = [1, 1, 1, 1]} : vector<4x2x8x32xf32> to vector<1x2x8x32xf32>
    %236 = vector.shape_cast %235 : vector<1x2x8x32xf32> to vector<2x8x32xf32>
    %237 = vector.extract_strided_slice %230 {offsets = [3, 0, 0, 0], sizes = [1, 2, 8, 32], strides = [1, 1, 1, 1]} : vector<4x2x8x32xf32> to vector<1x2x8x32xf32>
    %238 = vector.shape_cast %237 : vector<1x2x8x32xf32> to vector<2x8x32xf32>
    %239 = tpu.concatenate %232, %234, %236, %238 in 2 : vector<2x8x32xf32>, vector<2x8x32xf32>, vector<2x8x32xf32>, vector<2x8x32xf32> -> vector<2x8x128xf32>
    %240 = vector.shape_cast %239 : vector<2x8x128xf32> to vector<16x128xf32>
    %241 = arith.truncf %240 : vector<16x128xf32> to vector<16x128xbf16>
    %c0_75 = arith.constant 0 : index
    %c0_76 = arith.constant 0 : index
    %242 = vector.load %arg9[%c0_75, %c0_76] : memref<128x128xbf16, #tpu.memory_space<vmem>>, vector<128x128xbf16>
    %cst_77 = arith.constant dense<0.000000e+00> : vector<16x128xf32>
    %243 = tpu.matmul %241, %242, %cst_77 {dimension_numbers = #tpu.dot_dimension_numbers<[1], [0], [0], [1], [0, 0, 1, 1], [], []>} : vector<16x128xbf16>, vector<128x128xbf16>, vector<16x128xf32> -> vector<16x128xf32>
    %244 = vector.broadcast %4 : vector<1x128xf32> to vector<16x128xf32>
    %245 = arith.addf %243, %244 : vector<16x128xf32>
    %246 = arith.addf %163, %245 : vector<16x128xf32>
    %cst_78 = arith.constant dense<0.000000e+00> : vector<16xf32>
    %247 = vector.multi_reduction <add>, %246, %cst_78 [1] : vector<16x128xf32> to vector<16xf32>
    %248 = vector.shape_cast %247 : vector<16xf32> to vector<16x1xf32>
    %cst_79 = arith.constant 1.280000e+02 : f32
    %249 = vector.broadcast %cst_79 : f32 to vector<16x1xf32>
    %250 = arith.divf %248, %249 : vector<16x1xf32>
    %251 = vector.broadcast %250 : vector<16x1xf32> to vector<16x128xf32>
    %252 = arith.subf %246, %251 : vector<16x128xf32>
    %253 = arith.mulf %252, %252 : vector<16x128xf32>
    %cst_80 = arith.constant dense<0.000000e+00> : vector<16xf32>
    %254 = vector.multi_reduction <add>, %253, %cst_80 [1] : vector<16x128xf32> to vector<16xf32>
    %255 = vector.shape_cast %254 : vector<16xf32> to vector<16x1xf32>
    %cst_81 = arith.constant 1.280000e+02 : f32
    %256 = vector.broadcast %cst_81 : f32 to vector<16x1xf32>
    %257 = arith.divf %255, %256 : vector<16x1xf32>
    %258 = vector.broadcast %250 : vector<16x1xf32> to vector<16x128xf32>
    %259 = arith.subf %246, %258 : vector<16x128xf32>
    %cst_82 = arith.constant 9.99999996E-13 : f32
    %260 = vector.broadcast %cst_82 : f32 to vector<16x1xf32>
    %261 = arith.addf %257, %260 : vector<16x1xf32>
    %262 = math.rsqrt %261 : vector<16x1xf32>
    %263 = vector.broadcast %262 : vector<16x1xf32> to vector<16x128xf32>
    %264 = arith.mulf %259, %263 : vector<16x128xf32>
    %265 = vector.broadcast %5 : vector<1x128xf32> to vector<16x128xf32>
    %266 = arith.mulf %264, %265 : vector<16x128xf32>
    %267 = vector.broadcast %6 : vector<1x128xf32> to vector<16x128xf32>
    %268 = arith.addf %266, %267 : vector<16x128xf32>
    %269 = arith.truncf %268 : vector<16x128xf32> to vector<16x128xbf16>
    %c0_83 = arith.constant 0 : index
    %c0_84 = arith.constant 0 : index
    %270 = vector.load %arg13[%c0_83, %c0_84] : memref<128x256xbf16, #tpu.memory_space<vmem>>, vector<128x256xbf16>
    %cst_85 = arith.constant dense<0.000000e+00> : vector<16x256xf32>
    %271 = tpu.matmul %269, %270, %cst_85 {dimension_numbers = #tpu.dot_dimension_numbers<[1], [0], [0], [1], [0, 0, 1, 1], [], []>} : vector<16x128xbf16>, vector<128x256xbf16>, vector<16x256xf32> -> vector<16x256xf32>
    %272 = vector.broadcast %7 : vector<1x256xf32> to vector<16x256xf32>
    %273 = arith.addf %271, %272 : vector<16x256xf32>
    %274 = arith.mulf %273, %273 : vector<16x256xf32>
    %275 = arith.mulf %273, %274 : vector<16x256xf32>
    %cst_86 = arith.constant 4.471500e-02 : f32
    %276 = vector.broadcast %cst_86 : f32 to vector<16x256xf32>
    %277 = arith.mulf %276, %275 : vector<16x256xf32>
    %278 = arith.addf %273, %277 : vector<16x256xf32>
    %cst_87 = arith.constant 0.797884583 : f32
    %279 = vector.broadcast %cst_87 : f32 to vector<16x256xf32>
    %280 = arith.mulf %279, %278 : vector<16x256xf32>
    %281 = math.tanh %280 : vector<16x256xf32>
    %cst_88 = arith.constant 1.000000e+00 : f32
    %282 = vector.broadcast %cst_88 : f32 to vector<16x256xf32>
    %283 = arith.addf %282, %281 : vector<16x256xf32>
    %cst_89 = arith.constant 5.000000e-01 : f32
    %284 = vector.broadcast %cst_89 : f32 to vector<16x256xf32>
    %285 = arith.mulf %284, %283 : vector<16x256xf32>
    %286 = arith.mulf %273, %285 : vector<16x256xf32>
    %287 = arith.truncf %286 : vector<16x256xf32> to vector<16x256xbf16>
    %c0_90 = arith.constant 0 : index
    %c0_91 = arith.constant 0 : index
    %288 = vector.load %arg15[%c0_90, %c0_91] : memref<256x128xbf16, #tpu.memory_space<vmem>>, vector<256x128xbf16>
    %cst_92 = arith.constant dense<0.000000e+00> : vector<16x128xf32>
    %289 = tpu.matmul %287, %288, %cst_92 {dimension_numbers = #tpu.dot_dimension_numbers<[1], [0], [0], [1], [0, 0, 1, 1], [], []>} : vector<16x256xbf16>, vector<256x128xbf16>, vector<16x128xf32> -> vector<16x128xf32>
    %290 = vector.broadcast %8 : vector<1x128xf32> to vector<16x128xf32>
    %291 = arith.addf %289, %290 : vector<16x128xf32>
    %292 = arith.addf %268, %291 : vector<16x128xf32>
    %cst_93 = arith.constant dense<0.000000e+00> : vector<16xf32>
    %293 = vector.multi_reduction <add>, %292, %cst_93 [1] : vector<16x128xf32> to vector<16xf32>
    %294 = vector.shape_cast %293 : vector<16xf32> to vector<16x1xf32>
    %cst_94 = arith.constant 1.280000e+02 : f32
    %295 = vector.broadcast %cst_94 : f32 to vector<16x1xf32>
    %296 = arith.divf %294, %295 : vector<16x1xf32>
    %297 = vector.broadcast %296 : vector<16x1xf32> to vector<16x128xf32>
    %298 = arith.subf %292, %297 : vector<16x128xf32>
    %299 = arith.mulf %298, %298 : vector<16x128xf32>
    %cst_95 = arith.constant dense<0.000000e+00> : vector<16xf32>
    %300 = vector.multi_reduction <add>, %299, %cst_95 [1] : vector<16x128xf32> to vector<16xf32>
    %301 = vector.shape_cast %300 : vector<16xf32> to vector<16x1xf32>
    %cst_96 = arith.constant 1.280000e+02 : f32
    %302 = vector.broadcast %cst_96 : f32 to vector<16x1xf32>
    %303 = arith.divf %301, %302 : vector<16x1xf32>
    %304 = vector.broadcast %296 : vector<16x1xf32> to vector<16x128xf32>
    %305 = arith.subf %292, %304 : vector<16x128xf32>
    %cst_97 = arith.constant 9.99999996E-13 : f32
    %306 = vector.broadcast %cst_97 : f32 to vector<16x1xf32>
    %307 = arith.addf %303, %306 : vector<16x1xf32>
    %308 = math.rsqrt %307 : vector<16x1xf32>
    %309 = vector.broadcast %308 : vector<16x1xf32> to vector<16x128xf32>
    %310 = arith.mulf %305, %309 : vector<16x128xf32>
    %311 = vector.broadcast %9 : vector<1x128xf32> to vector<16x128xf32>
    %312 = arith.mulf %310, %311 : vector<16x128xf32>
    %313 = vector.broadcast %10 : vector<1x128xf32> to vector<16x128xf32>
    %314 = arith.addf %312, %313 : vector<16x128xf32>
    %315 = vector.shape_cast %314 : vector<16x128xf32> to vector<2x8x128xf32>
    %316 = vector.extract_strided_slice %315 {offsets = [0, 0, 0], sizes = [2, 1, 128], strides = [1, 1, 1]} : vector<2x8x128xf32> to vector<2x1x128xf32>
    %317 = vector.shape_cast %316 : vector<2x1x128xf32> to vector<2x128xf32>
    %318 = arith.truncf %317 : vector<2x128xf32> to vector<2x128xbf16>
    %c0_98 = arith.constant 0 : index
    %c0_99 = arith.constant 0 : index
    %319 = vector.load %arg19[%c0_98, %c0_99] : memref<128x128xbf16, #tpu.memory_space<vmem>>, vector<128x128xbf16>
    %cst_100 = arith.constant dense<0.000000e+00> : vector<2x128xf32>
    %320 = tpu.matmul %318, %319, %cst_100 {dimension_numbers = #tpu.dot_dimension_numbers<[1], [0], [0], [1], [0, 0, 1, 1], [], []>} : vector<2x128xbf16>, vector<128x128xbf16>, vector<2x128xf32> -> vector<2x128xf32>
    %c0_101 = arith.constant 0 : index
    %c0_102 = arith.constant 0 : index
    %321 = vector.load %arg20[%c0_101, %c0_102] : memref<1x128xf32, #tpu.memory_space<vmem>>, vector<1x128xf32>
    %322 = vector.broadcast %321 : vector<1x128xf32> to vector<2x128xf32>
    %323 = arith.addf %320, %322 : vector<2x128xf32>
    %324 = math.tanh %323 : vector<2x128xf32>
    %c0_103 = arith.constant 0 : index
    %c0_104 = arith.constant 0 : index
    %325 = vector.load %arg21[%c0_103, %c0_104] : memref<1x128xf32, #tpu.memory_space<vmem>>, vector<1x128xf32>
    %326 = vector.broadcast %325 : vector<1x128xf32> to vector<2x128xf32>
    %327 = arith.mulf %324, %326 : vector<2x128xf32>
    %cst_105 = arith.constant dense<0.000000e+00> : vector<2xf32>
    %328 = vector.multi_reduction <add>, %327, %cst_105 [1] : vector<2x128xf32> to vector<2xf32>
    %329 = vector.shape_cast %328 : vector<2xf32> to vector<2x1xf32>
    %c0_106 = arith.constant 0 : index
    %c0_107 = arith.constant 0 : index
    %330 = vector.load %arg22[%c0_106, %c0_107] : memref<1x1xf32, #tpu.memory_space<vmem>>, vector<1x1xf32>
    %331 = vector.broadcast %330 : vector<1x1xf32> to vector<2x1xf32>
    %332 = arith.addf %329, %331 : vector<2x1xf32>
    %c0_108 = arith.constant 0 : index
    %c0_109 = arith.constant 0 : index
    %333 = vector.load %arg23[%c0_108, %c0_109] : memref<2x1xf32, #tpu.memory_space<vmem>>, vector<2x1xf32>
    tpu.vector_store %arg23[%c0_108, %c0_109], %332 {strides = array<i32>} : memref<2x1xf32, #tpu.memory_space<vmem>>, vector<2x1xf32>,
    return
  }
  func.func @transform_0(%arg0: i32) -> (i32, i32, i32) {
    %c0_i32 = arith.constant 0 : i32
    %c0_i32_0 = arith.constant 0 : i32
    %c0_i32_1 = arith.constant 0 : i32
    %c0_i32_2 = arith.constant 0 : i32
    return %c0_i32, %c0_i32_0, %c0_i32_1 : i32, i32, i32
  }
  func.func @transform_1(%arg0: i32) -> (i32, i32, i32) {
    %c0_i32 = arith.constant 0 : i32
    %c0_i32_0 = arith.constant 0 : i32
    %c0_i32_1 = arith.constant 0 : i32
    %c0_i32_2 = arith.constant 0 : i32
    return %c0_i32, %c0_i32_0, %c0_i32_1 : i32, i32, i32
  }
  func.func @transform_2(%arg0: i32) -> (i32, i32) {
    %c0_i32 = arith.constant 0 : i32
    %c0_i32_0 = arith.constant 0 : i32
    %c0_i32_1 = arith.constant 0 : i32
    return %c0_i32, %c0_i32_0 : i32, i32
  }
  func.func @transform_3(%arg0: i32) -> (i32, i32) {
    %c0_i32 = arith.constant 0 : i32
    %c0_i32_0 = arith.constant 0 : i32
    %c0_i32_1 = arith.constant 0 : i32
    return %c0_i32, %c0_i32_0 : i32, i32
  }
  func.func @transform_4(%arg0: i32) -> (i32, i32) {
    %c0_i32 = arith.constant 0 : i32
    %c0_i32_0 = arith.constant 0 : i32
    %c0_i32_1 = arith.constant 0 : i32
    return %c0_i32, %c0_i32_0 : i32, i32
  }
  func.func @transform_5(%arg0: i32) -> (i32, i32) {
    %c0_i32 = arith.constant 0 : i32
    %c0_i32_0 = arith.constant 0 : i32
    %c0_i32_1 = arith.constant 0 : i32
    return %c0_i32, %c0_i32_0 : i32, i32
  }
  func.func @transform_6(%arg0: i32) -> (i32, i32) {
    %c0_i32 = arith.constant 0 : i32
    %c0_i32_0 = arith.constant 0 : i32
    %c0_i32_1 = arith.constant 0 : i32
    return %c0_i32, %c0_i32_0 : i32, i32
  }
  func.func @transform_7(%arg0: i32) -> (i32, i32) {
    %c0_i32 = arith.constant 0 : i32
    %c0_i32_0 = arith.constant 0 : i32
    %c0_i32_1 = arith.constant 0 : i32
    return %c0_i32, %c0_i32_0 : i32, i32
  }
  func.func @transform_8(%arg0: i32) -> (i32, i32) {
    %c0_i32 = arith.constant 0 : i32
    %c0_i32_0 = arith.constant 0 : i32
    %c0_i32_1 = arith.constant 0 : i32
    return %c0_i32, %c0_i32_0 : i32, i32
  }
  func.func @transform_9(%arg0: i32) -> (i32, i32) {
    %c0_i32 = arith.constant 0 : i32
    %c0_i32_0 = arith.constant 0 : i32
    %c0_i32_1 = arith.constant 0 : i32
    return %c0_i32, %c0_i32_0 : i32, i32
  }
  func.func @transform_10(%arg0: i32) -> (i32, i32) {
    %c0_i32 = arith.constant 0 : i32
    %c0_i32_0 = arith.constant 0 : i32
    %c0_i32_1 = arith.constant 0 : i32
    return %c0_i32, %c0_i32_0 : i32, i32
  }
  func.func @transform_11(%arg0: i32) -> (i32, i32) {
    %c0_i32 = arith.constant 0 : i32
    %c0_i32_0 = arith.constant 0 : i32
    %c0_i32_1 = arith.constant 0 : i32
    return %c0_i32, %c0_i32_0 : i32, i32
  }
  func.func @transform_12(%arg0: i32) -> (i32, i32) {
    %c0_i32 = arith.constant 0 : i32
    %c0_i32_0 = arith.constant 0 : i32
    %c0_i32_1 = arith.constant 0 : i32
    return %c0_i32, %c0_i32_0 : i32, i32
  }
  func.func @transform_13(%arg0: i32) -> (i32, i32) {
    %c0_i32 = arith.constant 0 : i32
    %c0_i32_0 = arith.constant 0 : i32
    %c0_i32_1 = arith.constant 0 : i32
    return %c0_i32, %c0_i32_0 : i32, i32
  }
  func.func @transform_14(%arg0: i32) -> (i32, i32) {
    %c0_i32 = arith.constant 0 : i32
    %c0_i32_0 = arith.constant 0 : i32
    %c0_i32_1 = arith.constant 0 : i32
    return %c0_i32, %c0_i32_0 : i32, i32
  }
  func.func @transform_15(%arg0: i32) -> (i32, i32) {
    %c0_i32 = arith.constant 0 : i32
    %c0_i32_0 = arith.constant 0 : i32
    %c0_i32_1 = arith.constant 0 : i32
    return %c0_i32, %c0_i32_0 : i32, i32
  }
  func.func @transform_16(%arg0: i32) -> (i32, i32) {
    %c0_i32 = arith.constant 0 : i32
    %c0_i32_0 = arith.constant 0 : i32
    %c0_i32_1 = arith.constant 0 : i32
    return %c0_i32, %c0_i32_0 : i32, i32
  }
  func.func @transform_17(%arg0: i32) -> (i32, i32) {
    %c0_i32 = arith.constant 0 : i32
    %c0_i32_0 = arith.constant 0 : i32
    %c0_i32_1 = arith.constant 0 : i32
    return %c0_i32, %c0_i32_0 : i32, i32
  }
  func.func @transform_18(%arg0: i32) -> (i32, i32) {
    %c0_i32 = arith.constant 0 : i32
    %c0_i32_0 = arith.constant 0 : i32
    %c0_i32_1 = arith.constant 0 : i32
    return %c0_i32, %c0_i32_0 : i32, i32
  }
  func.func @transform_19(%arg0: i32) -> (i32, i32) {
    %c0_i32 = arith.constant 0 : i32
    %c0_i32_0 = arith.constant 0 : i32
    %c0_i32_1 = arith.constant 0 : i32
    return %c0_i32, %c0_i32_0 : i32, i32
  }
  func.func @transform_20(%arg0: i32) -> (i32, i32) {
    %c0_i32 = arith.constant 0 : i32
    %c0_i32_0 = arith.constant 0 : i32
    %c0_i32_1 = arith.constant 0 : i32
    return %c0_i32, %c0_i32_0 : i32, i32
  }
  func.func @transform_21(%arg0: i32) -> (i32, i32) {
    %c0_i32 = arith.constant 0 : i32
    %c0_i32_0 = arith.constant 0 : i32
    %c0_i32_1 = arith.constant 0 : i32
    return %c0_i32, %c0_i32_0 : i32, i32
  }
  func.func @transform_22(%arg0: i32) -> (i32, i32) {
    %c0_i32 = arith.constant 0 : i32
    %c0_i32_0 = arith.constant 0 : i32
    %c0_i32_1 = arith.constant 0 : i32
    return %c0_i32, %c0_i32_0 : i32, i32
  }
}

</mosaic_0001>

<bundles_post_ra>
// kernel: tpu_custom_call.1
= control target key start
LH: loop header
LB: loop body
LE: loop exit
PB: predicated region body
PF: predicated region fallthrough
CT: control target
= control target key end

     0   :  { %s6082_s0 = inlined_call_operand.hbm [shape: f32[2,8,128], index: 0, kind: input, shape index: {}]   ;;  %s6083_s1 = inlined_call_operand.hbm [shape: f32[8,1,8], index: 1, kind: input, shape index: {}]   ;;  %s6084_s2 = inlined_call_operand.hbm [shape: bf16[128,128], index: 2, kind: input, shape index: {}]   ;;  %s6085_s3 = inlined_call_operand.vmem [shape: f32[1,128], index: 3, kind: input, shape index: {}]   ;;  %s6086_s4 = inlined_call_operand.hbm [shape: bf16[128,128], index: 4, kind: input, shape index: {}]   ;;  %s6087_s5 = inlined_call_operand.vmem [shape: f32[1,128], index: 5, kind: input, shape index: {}]   ;;  %s6088_s6 = inlined_call_operand.hbm [shape: bf16[128,128], index: 6, kind: input, shape index: {}]   ;;  %s6089_s7 = inlined_call_operand.vmem [shape: f32[1,128], index: 7, kind: input, shape index: {}]   ;;  %s6090_s8 = inlined_call_operand.hbm [shape: bf16[128,128], index: 8, kind: input, shape index: {}]   ;;  %s6091_s9 = inlined_call_operand.vmem [shape: f32[1,128], index: 9, kind: input, shape index: {}]   ;;  %s6092_s10 = inlined_call_operand.vmem [shape: f32[1,128], index: 10, kind: input, shape index: {}]   ;;  %s6093_s11 = inlined_call_operand.vmem [shape: f32[1,128], index: 11, kind: input, shape index: {}]   ;;  %s6094_s12 = inlined_call_operand.hbm [shape: bf16[128,256], index: 12, kind: input, shape index: {}]   ;;  %s6095_s13 = inlined_call_operand.vmem [shape: f32[1,256], index: 13, kind: input, shape index: {}]   ;;  %s6096_s14 = inlined_call_operand.hbm [shape: bf16[256,128], index: 14, kind: input, shape index: {}]   ;;  %s6097_s15 = inlined_call_operand.vmem [shape: f32[1,128], index: 15, kind: input, shape index: {}]   ;;  %s6098_s16 = inlined_call_operand.vmem [shape: f32[1,128], index: 16, kind: input, shape index: {}]   ;;  %s6099_s17 = inlined_call_operand.vmem [shape: f32[1,128], index: 17, kind: input, shape index: {}]   ;;  %s6100_s18 = inlined_call_operand.hbm [shape: bf16[128,128], index: 18, kind: input, shape index: {}]   ;;  %s6101_s19 = inlined_call_operand.vmem [shape: f32[1,128], index: 19, kind: input, shape index: {}]   ;;  %s6102_s20 = inlined_call_operand.vmem [shape: f32[1,128], index: 20, kind: input, shape index: {}]   ;;  %s6103_s21 = inlined_call_operand.<no memory space> [shape: f32[1,1], index: 21, kind: input, shape index: {}]   ;;  %s6104_s22 = inlined_call_operand.vmem [shape: f32[2,1], index: 22, kind: output, shape index: {}]  }
   0x1   :  { %6107 = sst [smem:[#allocation22_spill]] %s6082_s0  ;;  %v27_v0 = vstv %s6103_s21 }
   0x2   :  { %6108 = sst [smem:[#allocation23_spill]] %s6083_s1  ;;  %28 = vst [vmem:[#allocation2] sm:$0x1] %v27_v0 }
   0x3   :  { %6109 = sst [smem:[#allocation24_spill]] %s6084_s2 }
   0x4   :  { %6110 = sst [smem:[#allocation25_spill]] %s6085_s3 }
   0x5   :  { %6111 = sst [smem:[#allocation26_spill]] %s6086_s4 }
   0x6   :  { %6112 = sst [smem:[#allocation27_spill]] %s6087_s5 }
   0x7   :  { %6113 = sst [smem:[#allocation28_spill]] %s6088_s6 }
   0x8   :  { %29 = vsyncpa [#allocation4], 0 }
   0x9   :  { %30 = vsyncpa [#allocation6], 0 }
   0xa   :  { %31 = vsyncpa [#allocation9], 0 }
   0xb   :  { %32 = vsyncpa [#allocation12], 0 }
   0xc   :  { %33 = vsyncpa [#allocation15], 0  ;;  %s5378_s29 = smov [#allocation5]  }
   0xd   :  { %s51_s30 = sshll.u32 %s5378_s29, 4  ;;  %s52_s30 = int_to_ptr.vmem [resolvable:$true] %s51_s30 }
   0xe   :  { %s5196_s4 = scalar_lea.vmem %s52_s30, 128  ;;  %p5201_p1 = scmp.lt.s32.totalorder %s52_s30, %s52_s30 }
   0xf   :  { %p5197_p0 = scmp.ne.s32.totalorder %s52_s30, %s5196_s4  ;;  %p5202_p2 = scmp.lt.s32.totalorder %s5196_s4, %s5196_s4 }
  0x11   :  { %p5203_p3 = por %p5202_p2, %p5201_p1 }
  0x13   :  { %p5204_p4 = pnand %p5203_p3, %p5197_p0 }
  0x15   :  { %5207 = shalt.err (!%p5204_p4)
}
  0x16   :  { %s5379_s0 = smov 16   ;;  %s5380_s23 = smov 1  }
  0x17   :  { %s6114_s5 = sld [smem:[#allocation23_spill]]  ;;  %s5381_s24 = smov [#allocation8]  }
  0x18   :  { %s77_s6 = sshll.u32 %s5381_s24, 4  ;;  %s5382_s25 = smov [#allocation11]   ;;  %s78_s6 = int_to_ptr.vmem [resolvable:$true] %s77_s6 }
  0x19   :  { %s105_s26 = sshll.u32 %s5382_s25, 4  ;;  %s5216_s2 = scalar_lea.vmem %s78_s6, 1024  ;;  %s106_s26 = int_to_ptr.vmem [resolvable:$true] %s105_s26 }
  0x1a   :  { %p5217_p5 = scmp.ne.s32.totalorder %s78_s6, %s5216_s2  ;;  %p5221_p6 = scmp.lt.s32.totalorder %s78_s6, %s78_s6 }
  0x1b   :  { %p5222_p7 = scmp.lt.s32.totalorder %s5216_s2, %s5216_s2 }
  0x1d   :  { %57 = dma.hbm_to_vmem [thread:$0]  %s6114_s5, 128, %s52_s30, [#allocation6], %s5379_s0, %s5379_s0, %s5380_s23  }
  0x1e   :  { %p5223_p8 = por %p5222_p7, %p5221_p6 }
  0x20   :  { %p5224_p9 = pnand %p5223_p8, %p5217_p5 }
  0x22   :  { %5227 = shalt.err (!%p5224_p9)
}
  0x23   :  { %s5383_s27 = smov 64   ;;  %s5384_s3 = smov 4  }
  0x24   :  { %s6115_s30 = sld [smem:[#allocation26_spill]]  ;;  %s5236_s4 = scalar_lea.vmem %s106_s26, 1024 }
  0x25   :  { %p5237_p10 = scmp.ne.s32.totalorder %s106_s26, %s5236_s4  ;;  %p5241_p11 = scmp.lt.s32.totalorder %s106_s26, %s106_s26 }
  0x26   :  { %p5242_p12 = scmp.lt.s32.totalorder %s5236_s4, %s5236_s4 }
  0x28   :  { %p5243_p13 = por %p5242_p12, %p5241_p11 }
  0x2a   :  { %83 = dma.hbm_to_vmem [thread:$0]  %s6115_s30, 1024, %s78_s6, [#allocation9], %s5383_s27, %s5383_s27, %s5384_s3  }
  0x2b   :  { %p5244_p0 = pnand %p5243_p13, %p5237_p10 }
  0x2d   :  { %5247 = shalt.err (!%p5244_p0)
}
  0x2e   :  { %111 = dma.hbm_to_vmem [thread:$0]  %s6090_s8, 1024, %s106_s26, [#allocation12], %s5383_s27, %s5383_s27, %s5384_s3  }
  0x2f   :  { %s5385_s1 = smov [#allocation14]   ;;  %s5386_s5 = smov [#allocation3]  }
  0x30   :  { %s137_s21 = sshll.u32 %s5385_s1, 4  ;;  %s39_s24 = sshll.u32 %s5386_s5, 4  ;;  %s138_s21 = int_to_ptr.vmem [resolvable:$true] %s137_s21  ;;  %s40_s24 = int_to_ptr.vmem [resolvable:$true] %s39_s24 }
  0x31   :  { %s5256_s6 = scalar_lea.vmem %s138_s21, 2048  ;;  %p5261_p2 = scmp.lt.s32.totalorder %s138_s21, %s138_s21 }
  0x32   :  { %p5257_p1 = scmp.ne.s32.totalorder %s138_s21, %s5256_s6  ;;  %p5262_p3 = scmp.lt.s32.totalorder %s5256_s6, %s5256_s6 }
  0x34   :  { %p5263_p4 = por %p5262_p3, %p5261_p2 }
  0x36   :  { %p5264_p5 = pnand %p5263_p4, %p5257_p1 }
  0x38   :  { %5267 = shalt.err (!%p5264_p5)
}
  0x39   :  { %143 = dma.hbm_to_vmem [thread:$0]  %s6096_s14, 2048, %s138_s21, [#allocation15], %s5383_s27, %s5383_s27, %s5384_s3  }
  0x3a   :  { %s5276_s8 = scalar_lea.vmem %s40_s24, 256  ;;  %p5281_p7 = scmp.lt.s32.totalorder %s40_s24, %s40_s24 }
  0x3b   :  { %p5277_p6 = scmp.ne.s32.totalorder %s40_s24, %s5276_s8  ;;  %p5282_p8 = scmp.lt.s32.totalorder %s5276_s8, %s5276_s8 }
  0x3d   :  { %p5283_p9 = por %p5282_p8, %p5281_p7 }
  0x3f   :  { %p5284_p10 = pnand %p5283_p9, %p5277_p6 }
  0x41   :  { %5287 = shalt.err (!%p5284_p10)
}
  0x42   :  { %s5387_s26 = smov 128   ;;  %s5388_s28 = smov 8  }
  0x43   :  { %s6116_s4 = sld [smem:[#allocation22_spill]]  ;;  %s5389_s0 = smov [#allocation7]  }
  0x44   :  { %s63_s23 = sshll.u32 %s5389_s0, 4  ;;  %s5390_s14 = smov [#allocation10]   ;;  %s64_s23 = int_to_ptr.vmem [resolvable:$true] %s63_s23 }
  0x45   :  { %s91_s1 = sshll.u32 %s5390_s14, 4  ;;  %s5296_s21 = scalar_lea.vmem %s64_s23, 1024  ;;  %s92_s1 = int_to_ptr.vmem [resolvable:$true] %s91_s1 }
  0x46   :  { %p5297_p11 = scmp.ne.s32.totalorder %s64_s23, %s5296_s21  ;;  %p5301_p12 = scmp.lt.s32.totalorder %s64_s23, %s64_s23 }
  0x47   :  { %p5302_p13 = scmp.lt.s32.totalorder %s5296_s21, %s5296_s21 }
  0x49   :  { %45 = dma.hbm_to_vmem [thread:$0]  %s6116_s4, 256, %s40_s24, [#allocation4], %s5387_s26, %s5387_s26, %s5388_s28  }
  0x4a   :  { %p5303_p0 = por %p5302_p13, %p5301_p12 }
  0x4c   :  { %p5304_p1 = pnand %p5303_p0, %p5297_p11 }
  0x4e   :  { %5307 = shalt.err (!%p5304_p1)
}
  0x4f   :  { %s6117_s25 = sld [smem:[#allocation24_spill]]  ;;  %s5316_s24 = scalar_lea.vmem %s92_s1, 1024 }
  0x50   :  { %p5317_p2 = scmp.ne.s32.totalorder %s92_s1, %s5316_s24  ;;  %p5321_p3 = scmp.lt.s32.totalorder %s92_s1, %s92_s1 }
  0x51   :  { %p5322_p4 = scmp.lt.s32.totalorder %s5316_s24, %s5316_s24 }
  0x53   :  { %p5323_p5 = por %p5322_p4, %p5321_p3 }
  0x55   :  { %69 = dma.hbm_to_vmem [thread:$0]  %s6117_s25, 1024, %s64_s23, [#allocation6], %s5383_s27, %s5383_s27, %s5384_s3  }
  0x56   :  { %p5324_p6 = pnand %p5323_p5, %p5317_p2 }
  0x58   :  { %5327 = shalt.err (!%p5324_p6)
}
  0x59   :  { %s6118_s29 = sld [smem:[#allocation28_spill]]  ;;  %s5391_s30 = smov [#allocation13]  }
  0x5a   :  { %s123_s4 = sshll.u32 %s5391_s30, 4  ;;  %s5392_s0 = smov [#allocation16]   ;;  %s124_s4 = int_to_ptr.vmem [resolvable:$true] %s123_s4 }
  0x5b   :  { %s155_s23 = sshll.u32 %s5392_s0, 4  ;;  %s5336_s14 = scalar_lea.vmem %s124_s4, 2048  ;;  %s156_s23 = int_to_ptr.vmem [resolvable:$true] %s155_s23 }
  0x5c   :  { %p5337_p7 = scmp.ne.s32.totalorder %s124_s4, %s5336_s14  ;;  %p5341_p8 = scmp.lt.s32.totalorder %s124_s4, %s124_s4 }
  0x5d   :  { %p5342_p9 = scmp.lt.s32.totalorder %s5336_s14, %s5336_s14 }
  0x5f   :  { %97 = dma.hbm_to_vmem [thread:$0]  %s6118_s29, 1024, %s92_s1, [#allocation9], %s5383_s27, %s5383_s27, %s5384_s3  }
  0x60   :  { %p5343_p10 = por %p5342_p9, %p5341_p8 }
  0x62   :  { %p5344_p11 = pnand %p5343_p10, %p5337_p7 }
  0x64   :  { %5347 = shalt.err (!%p5344_p11)
}
  0x65   :  { %129 = dma.hbm_to_vmem [thread:$0]  %s6094_s12, 2048, %s124_s4, [#allocation12], %s5387_s26, %s5387_s26, %s5388_s28  }
  0x66   :  { %s5356_s1 = scalar_lea.vmem %s156_s23, 1024  ;;  %p5361_p13 = scmp.lt.s32.totalorder %s156_s23, %s156_s23 }
  0x67   :  { %p5357_p12 = scmp.ne.s32.totalorder %s156_s23, %s5356_s1  ;;  %p5362_p0 = scmp.lt.s32.totalorder %s5356_s1, %s5356_s1 }
  0x69   :  { %p5363_p1 = por %p5362_p0, %p5361_p13 }
  0x6b   :  { %p5364_p2 = pnand %p5363_p1, %p5357_p12 }
  0x6d   :  { %5367 = shalt.err (!%p5364_p2)
}
  0x6e   :  { %161 = dma.hbm_to_vmem [thread:$0]  %s6100_s18, 1024, %s156_s23, [#allocation15], %s5383_s27, %s5383_s27, %s5384_s3  }
  0x6f   :  { %5368 = dma.done.wait [#allocation4], 256  }
  0x70   :  { %5369 = vsyncadd [#allocation4], 4294967040 }
  0x71   :  { %5370 = dma.done.wait [#allocation6], 1152  }
  0x72   :  { %5371 = vsyncadd [#allocation6], 4294966144 }
  0x73   :  { %5372 = dma.done.wait [#allocation9], 2048  }
  0x74   :  { %5373 = vsyncadd [#allocation9], 4294965248 }
  0x75   :  { %5374 = dma.done.wait [#allocation12], 3072  }
  0x76   :  { %5375 = vsyncadd [#allocation12], 4294964224 }
  0x77   :  { %5376 = dma.done.wait [#allocation15], 3072  }
  0x78   :  { %5377 = vsyncadd [#allocation15], 4294964224  ;;  %v5393_v1 = vmov 0.0   ;;  %vm5394_vm0 = vmmov 0   ;;  %v4919_v2 = vld [vmem:[#allocation7 + $0x38] sm:$0xff]   ;;  %v4921_v4 = vld [vmem:[#allocation7 + $0x30] sm:$0xff]  }
  0x79   :  { %4412 = vmatprep.subr.bf16.mxu0 %v5393_v1  ;;  %4432 = vmatprep.subr.bf16.mxu1 %v5393_v1  ;;  %v4920_v3 = vld [vmem:[#allocation8 + $0x38] sm:$0xff]   ;;  %v4922_v5 = vld [vmem:[#allocation8 + $0x30] sm:$0xff]   ;;  %v4923_v6 = vld [vmem:[#allocation7 + $0x28] sm:$0xff]   ;;  %s6119_s3 = sld [smem:[#allocation25_spill]]  ;;  %vm684_vm1 = vcmask 261120   ;;  %s5395_s2 = smov 96  }
  0x7a   :  { %4428 = vmatprep.mubr.msk.bf16.mxu0 %vm5394_vm0, %v5393_v1  ;;  %4448 = vmatprep.mubr.msk.bf16.mxu1 %vm5394_vm0, %v5393_v1  ;;  %v4924_v7 = vld [vmem:[#allocation8 + $0x28] sm:$0xff]   ;;  %v4925_v8 = vld [vmem:[#allocation7 + $0x20] sm:$0xff]   ;;  %v4927_v10 = vld [vmem:[#allocation7 + $0x18] sm:$0xff]   ;;  %s6120_s24 = sld [smem:[#allocation27_spill]]  ;;  %s5396_s8 = smov 32   ;;  %vm1053_vm2 = vcmask 64512  }
  0x7b   :  { %4413 = vmatpush3.bf16.msra.mxu0 %v4919_v2  ;;  %4433 = vmatpush3.bf16.msra.mxu1 %v4920_v3  ;;  %v4926_v9 = vld [vmem:[#allocation8 + $0x20] sm:$0xff]   ;;  %v4928_v11 = vld [vmem:[#allocation8 + $0x18] sm:$0xff]   ;;  %v4929_v12 = vld [vmem:[#allocation7 + $0x10] sm:$0xff]   ;;  %vm1153_vm3 = vcmask 1043456   ;;  %vm1545_vm4 = vcmask 523264   ;;  %vm1548_vm5 = vcmask 785408  }
  0x7c   :  { %4414 = vmatprep.subr.bf16.mxu0 %v5393_v1  ;;  %4434 = vmatprep.subr.bf16.mxu1 %v5393_v1  ;;  %v4930_v13 = vld [vmem:[#allocation8 + $0x10] sm:$0xff]   ;;  %v4931_v14 = vld [vmem:[#allocation7 + $0x8] sm:$0xff]   ;;  %v4933_v16 = vld [vmem:[#allocation7] sm:$0xff]   ;;  %vm3911_vm6 = vcmask 1041409   ;;  %vm4012_vm7 = vcmask 1041408   ;;  %vm4024_vm8 = vcmask 1024  }
  0x7d   :  { %v4932_v15 = vld [vmem:[#allocation8 + $0x8] sm:$0xff]   ;;  %v215_v18 = vld [vmem:[#allocation3 + $0x8] sm:$0xff]  ;;  %v4934_v19 = vld [vmem:[#allocation8] sm:$0xff]  }
  0x7e   :  { %v214_v17 = vld [vmem:[#allocation3] sm:$0xff]  ;;  %v4935_v21 = vld [vmem:[#allocation10 + $0x38] sm:$0xff]   ;;  %v4936_v22 = vld [vmem:[#allocation10 + $0x30] sm:$0xff]  }
  0x7f   :  { %4415 = vmatpush3.bf16.msra.mxu0 %v4921_v4  ;;  %4435 = vmatpush3.bf16.msra.mxu1 %v4922_v5  ;;  %v216_v20 = vpack.c.bf16 %v215_v18, %v214_v17  ;;  %v4937_v23 = vld [vmem:[#allocation10 + $0x28] sm:$0xff]   ;;  %v4938_v24 = vld [vmem:[#allocation10 + $0x20] sm:$0xff]   ;;  %v4939_v25 = vld [vmem:[#allocation10 + $0x18] sm:$0xff]  }
  0x80   :  { %4416 = vmatprep.subr.bf16.mxu0 %v5393_v1  ;;  %4436 = vmatprep.subr.bf16.mxu1 %v5393_v1  ;;  %v4940_v26 = vld [vmem:[#allocation10 + $0x10] sm:$0xff]   ;;  %v4941_v27 = vld [vmem:[#allocation10 + $0x8] sm:$0xff]   ;;  %v4035_v28 = vld [vmem:[%s6119_s3] ss:$0 sm:$0xff] }
  0x81   :  { %v4044_v29 = vld [vmem:[%s6120_s24] ss:$0 sm:$0xff] }
  0x82   :  { %v4942_v31 = vld [vmem:[#allocation10] sm:$0xff]  }
  0x83   :  { %4417 = vmatpush3.bf16.msra.mxu0 %v4923_v6  ;;  %4437 = vmatpush3.bf16.msra.mxu1 %v4924_v7 }
  0x84   :  { %4418 = vmatprep.subr.bf16.mxu0 %v5393_v1  ;;  %4438 = vmatprep.subr.bf16.mxu1 %v5393_v1 }
  0x87   :  { %4419 = vmatpush3.bf16.msra.mxu0 %v4925_v8  ;;  %4439 = vmatpush3.bf16.msra.mxu1 %v4926_v9 }
  0x88   :  { %4420 = vmatprep.subr.bf16.mxu0 %v5393_v1  ;;  %4440 = vmatprep.subr.bf16.mxu1 %v5393_v1 }
  0x8b   :  { %4421 = vmatpush3.bf16.msra.mxu0 %v4927_v10  ;;  %4441 = vmatpush3.bf16.msra.mxu1 %v4928_v11 }
  0x8c   :  { %4422 = vmatprep.subr.bf16.mxu0 %v5393_v1  ;;  %4442 = vmatprep.subr.bf16.mxu1 %v5393_v1 }
  0x8f   :  { %4423 = vmatpush3.bf16.msra.mxu0 %v4929_v12  ;;  %4443 = vmatpush3.bf16.msra.mxu1 %v4930_v13 }
  0x90   :  { %4424 = vmatprep.subr.bf16.mxu0 %v5393_v1  ;;  %4444 = vmatprep.subr.bf16.mxu1 %v5393_v1 }
  0x93   :  { %4425 = vmatpush3.bf16.msra.mxu0 %v4931_v14  ;;  %4445 = vmatpush3.bf16.msra.mxu1 %v4932_v15 }
  0x94   :  { %4426 = vmatprep.subr.bf16.mxu0 %v5393_v1  ;;  %4446 = vmatprep.subr.bf16.mxu1 %v5393_v1 }
  0x97   :  { %4427 = vmatpush3.bf16.msra.mxu0 %v4933_v16  ;;  %4447 = vmatpush3.bf16.msra.mxu1 %v4934_v19 }
  0x98   :  { %4452 = vmatprep.subr.bf16.mxu0 %v5393_v1  ;;  %4472 = vmatprep.subr.bf16.mxu1 %v5393_v1 }
  0x9a   :  { %4429 = vmatmul.mubr.bf16.vlgmr.msra.gmra.mxu0 %v216_v20  ;;  %4449 = vmatmul.mubr.bf16.vlgmr.msra.gmra.mxu1 %v216_v20 }
  0x9b   :  { %4468 = vmatprep.mubr.msk.bf16.mxu0 %vm5394_vm0, %v5393_v1  ;;  %4474 = vmatprep.mubr.msk.bf16.mxu1 %vm5394_vm0, %v5393_v1 }
  0x9c   :  { %4453 = vmatpush3.bf16.msra.mxu0 %v4935_v21 }
  0x9d   :  { %4454 = vmatprep.subr.bf16.mxu0 %v5393_v1 }
  0xa0   :  { %4455 = vmatpush3.bf16.msra.mxu0 %v4936_v22 }
  0xa1   :  { %4456 = vmatprep.subr.bf16.mxu0 %v5393_v1 }
  0xa4   :  { %4457 = vmatpush3.bf16.msra.mxu0 %v4937_v23 }
  0xa5   :  { %4458 = vmatprep.subr.bf16.mxu0 %v5393_v1 }
  0xa8   :  { %4459 = vmatpush3.bf16.msra.mxu0 %v4938_v24 }
  0xa9   :  { %4460 = vmatprep.subr.bf16.mxu0 %v5393_v1 }
  0xac   :  { %4461 = vmatpush3.bf16.msra.mxu0 %v4939_v25 }
  0xad   :  { %4462 = vmatprep.subr.bf16.mxu0 %v5393_v1 }
  0xb0   :  { %4463 = vmatpush3.bf16.msra.mxu0 %v4940_v26 }
  0xb1   :  { %4464 = vmatprep.subr.bf16.mxu0 %v5393_v1 }
  0xb4   :  { %4465 = vmatpush3.bf16.msra.mxu0 %v4941_v27 }
  0xb5   :  { %4466 = vmatprep.subr.bf16.mxu0 %v5393_v1 }
  0xb8   :  { %4467 = vmatpush3.bf16.msra.mxu0 %v4942_v31 }
  0xb9   :  { %4496 = vmatprep.subr.bf16.mxu0 %v5393_v1 }
  0xbb   :  { %4469 = vmatmul.mubr.bf16.vlgmr.msra.gmra.mxu0 %v216_v20 }
  0xbc   :  { %4498 = vmatprep.mubr.msk.bf16.mxu0 %vm5394_vm0, %v5393_v1 }
 0x15a   :  { %v321_v30 = vpop.f32.mrf.mxu0  ;;  %v434_v33 = vpop.f32.mrf.mxu1 }
 0x15b   :  { %v322_v32 = vadd.f32 %v4035_v28, %v321_v30  ;;  %v435_v34 = vadd.f32 %v4044_v29, %v434_v33  ;;  %v4062_v30 = vld [vmem:[#allocation5] ss:$0 sm:$0xff] }
 0x15c   :  { %v4430_v35 = vpop.f32.mrf.mxu0  ;;  %v4450_v36 = vpop.f32.mrf.mxu1 }
 0x15d   :  { %v328_v37 = vmul.f32 0.17677669, %v322_v32  ;;  %582 = vrot.lane.b32.xlu0 %v435_v34, %s5395_s2  ;;  %v600_v39 = vpack.c.bf16 %v435_v34, %v435_v34 }
 0x15e   :  { %v324_v38 = vpop.f32.mrf.mxu0  ;;  %v437_v41 = vpop.f32.mrf.mxu1 }
 0x15f   :  { %v325_v40 = vadd.f32 %v4035_v28, %v324_v38  ;;  %v438_v42 = vadd.f32 %v4044_v29, %v437_v41  ;;  %v689_v44 = vsel %vm684_vm1, %v600_v39, 0  ;;  %v572_v50 = vpack.c.bf16 %v328_v37, %v328_v37 }
 0x160   :  { %v4431_v43 = vpop.f32.mrf.mxu0  ;;  %v4451_v46 = vpop.f32.mrf.mxu1  ;;  %4473 = vmatpush3.bf16.xpose.msra.mxu1 %v689_v44  ;;  %v4053_v44 = vld [vmem:[%s6089_s7] ss:$0 sm:$0xff] }
 0x161   :  { %v329_v45 = vmul.f32 0.17677669, %v325_v40  ;;  %v4804_v47 = vpack.i.bf16 %v438_v42, %v328_v37  ;;  %4478 = vmatprep.subr.bf16.mxu1 %v5393_v1  ;;  %v601_v48 = vpack.c.bf16 %v438_v42, %v438_v42  ;;  %v4809_v49 = vpack.i.bf16 %v438_v42, %v435_v34 }
 0x163   :  { %556 = vrot.lane.b32.xlu1 %v329_v45, %s5395_s2  ;;  %4805 = vrot.lane.b32.xlu0 %v4804_v47, %s5395_s2  ;;  %v4814_v51 = vpack.i.bf16 %v329_v45, %v328_v37  ;;  %v735_v52 = vsel %vm684_vm1, %v601_v48, 0  ;;  %v573_v53 = vpack.c.bf16 %v329_v45, %v329_v45  ;;  %v4063_v37 = vld [vmem:[#allocation5 + $0x1] ss:$0 sm:$0xff] }
 0x167   :  { %4810 = vrot.lane.b32.xlu1 %v4809_v49, %s5383_s27  ;;  %4815 = vrot.lane.b32.xlu0 %v4814_v51, %s5383_s27 }
 0x168   :  { %4475 = vmatmul.mubr.msk.bf16.vlgmr.msra.gmra.mxu1 %vm684_vm1, %v572_v50 }
 0x169   :  { %4479 = vmatpush3.bf16.xpose.msra.mxu1 %v735_v52  ;;  %4480 = vmatprep.mubr.msk.bf16.mxu1 %vm5394_vm0, %v5393_v1  ;;  %v4064_v52 = vld [vmem:[#allocation5 + $0x2] ss:$0 sm:$0xff] }
 0x16a   :  { %4484 = vmatprep.subr.bf16.mxu1 %v5393_v1 }
 0x16b   :  { %4820 = vrot.lane.b32.xlu1 %v4809_v49, %s5396_s8  ;;  %4825 = vrot.lane.b32.xlu0 %v4814_v51, %s5396_s8 }
 0x170   :  { %4481 = vmatmul.mubr.msk.bf16.vlgmr.msra.gmra.mxu1 %vm684_vm1, %v573_v53 }
 0x171   :  { %4486 = vmatprep.mubr.msk.bf16.mxu1 %vm5394_vm0, %v5393_v1 }
 0x17b   :  { %v545_v26 = vpop.f32.mrf.mxu0 }
 0x17c   :  { %v546_v45 = vadd.f32 %v4053_v44, %v545_v26 }
 0x17d   :  { %v4470_v27 = vpop.f32.mrf.mxu0 }
 0x17e   :  { %v628_v47 = vpack.c.bf16 %v546_v45, %v546_v45 }
 0x17f   :  { %v548_v28 = vpop.f32.mrf.mxu0 }
 0x180   :  { %v549_v46 = vadd.f32 %v4053_v44, %v548_v28  ;;  %v1155_v49 = vsel %vm1153_vm3, %v628_v47, 0 }
 0x181   :  { %v4471_v29 = vpop.f32.mrf.mxu0 }
 0x182   :  { %v629_v48 = vpack.c.bf16 %v549_v46, %v549_v46  ;;  %v5671_v51 = vpack.i.bf16 %v549_v46, %v546_v45 }
 0x184   :  { %v1201_v50 = vsel %vm1153_vm3, %v629_v48, 0 }
 0x1cf   :  { %v583_v54 = vpop.permute.xlu0 %582 }
 0x1d0   :  { %v602_v55 = vpack.c.bf16 %v583_v54, %v583_v54 }
 0x1d2   :  { %v781_v56 = vsel %vm684_vm1, %v602_v55, 0 }
 0x1d3   :  { %4485 = vmatpush3.bf16.xpose.msra.mxu1 %v781_v56 }
 0x1d4   :  { %4490 = vmatprep.subr.bf16.mxu1 %v5393_v1 }
 0x1d5   :  { %v557_v57 = vpop.permute.xlu1 %556  ;;  %v4806_v58 = vpop.permute.xlu0 %4805 }
 0x1d6   :  { %v4808_v59 = vunpack.i.h.bf16 %v4806_v58  ;;  %v4807_v60 = vunpack.i.l.bf16 %v4806_v58  ;;  %v575_v11 = vpack.c.bf16 %v557_v57, %v557_v57 }
 0x1d8   :  { %v603_v61 = vpack.c.bf16 %v4808_v59, %v4808_v59  ;;  %v574_v62 = vpack.c.bf16 %v4807_v60, %v4807_v60  ;;  %v4065_v59 = vld [vmem:[#allocation5 + $0x3] ss:$0 sm:$0xff] }
 0x1d9   :  { %v4811_v63 = vpop.permute.xlu1 %4810  ;;  %v4816_v5 = vpop.permute.xlu0 %4815 }
 0x1da   :  { %v4812_v0 = vunpack.i.l.bf16 %v4811_v63  ;;  %v4813_v2 = vunpack.i.h.bf16 %v4811_v63  ;;  %4487 = vmatmul.mubr.msk.bf16.vlgmr.msra.gmra.mxu1 %vm684_vm1, %v574_v62  ;;  %v827_v3 = vsel %vm684_vm1, %v603_v61, 0  ;;  %v4817_v10 = vunpack.i.l.bf16 %v4816_v5  ;;  %v4066_v62 = vld [vmem:[#allocation5 + $0x4] ss:$0 sm:$0xff] }
 0x1db   :  { %4491 = vmatpush3.bf16.xpose.msra.mxu1 %v827_v3  ;;  %4492 = vmatprep.mubr.msk.bf16.mxu1 %vm5394_vm0, %v5393_v1  ;;  %v4818_v16 = vunpack.i.h.bf16 %v4816_v5 }
 0x1dc   :  { %v604_v4 = vpack.c.bf16 %v4812_v0, %v4812_v0  ;;  %4502 = vmatprep.subr.bf16.mxu1 %v5393_v1  ;;  %v605_v9 = vpack.c.bf16 %v4813_v2, %v4813_v2  ;;  %v576_v15 = vpack.c.bf16 %v4817_v10, %v4817_v10 }
 0x1dd   :  { %v4821_v6 = vpop.permute.xlu1 %4820  ;;  %v4826_v17 = vpop.permute.xlu0 %4825  ;;  %v577_v21 = vpack.c.bf16 %v4818_v16, %v4818_v16 }
 0x1de   :  { %v4822_v7 = vunpack.i.l.bf16 %v4821_v6  ;;  %v873_v8 = vsel %vm684_vm1, %v604_v4, 0  ;;  %v4823_v13 = vunpack.i.h.bf16 %v4821_v6  ;;  %v919_v14 = vsel %vm684_vm1, %v605_v9, 0 }
 0x1df   :  { %4497 = vmatpush3.bf16.xpose.msra.mxu0 %v873_v8  ;;  %v4827_v20 = vunpack.i.l.bf16 %v4826_v17  ;;  %v4828_v24 = vunpack.i.h.bf16 %v4826_v17 }
 0x1e0   :  { %4508 = vmatprep.subr.bf16.mxu0 %v5393_v1  ;;  %v606_v12 = vpack.c.bf16 %v4822_v7, %v4822_v7  ;;  %v607_v19 = vpack.c.bf16 %v4823_v13, %v4823_v13  ;;  %v4067_v7 = vld [vmem:[#allocation5 + $0x5] ss:$0 sm:$0xff]  ;;  %v4068_v13 = vld [vmem:[#allocation5 + $0x6] ss:$0 sm:$0xff] }
 0x1e1   :  { %v578_v23 = vpack.c.bf16 %v4827_v20, %v4827_v20  ;;  %v579_v25 = vpack.c.bf16 %v4828_v24, %v4828_v24 }
 0x1e2   :  { %4493 = vmatmul.mubr.msk.bf16.vlgmr.msra.gmra.mxu1 %vm684_vm1, %v575_v11  ;;  %v965_v18 = vsel %vm684_vm1, %v606_v12, 0  ;;  %v1011_v22 = vsel %vm684_vm1, %v607_v19, 0 }
 0x1e3   :  { %4503 = vmatpush3.bf16.xpose.msra.mxu1 %v919_v14  ;;  %4504 = vmatprep.mubr.msk.bf16.mxu1 %vm5394_vm0, %v5393_v1 }
 0x1e4   :  { %4514 = vmatprep.subr.bf16.mxu1 %v5393_v1 }
 0x1e6   :  { %4499 = vmatmul.mubr.msk.bf16.vlgmr.msra.gmra.mxu0 %vm684_vm1, %v576_v15 }
 0x1e7   :  { %4509 = vmatpush3.bf16.xpose.msra.mxu0 %v965_v18  ;;  %4510 = vmatprep.mubr.msk.bf16.mxu0 %vm5394_vm0, %v5393_v1 }
 0x1e8   :  { %4520 = vmatprep.subr.bf16.mxu0 %v5393_v1 }
 0x1ea   :  { %4505 = vmatmul.mubr.msk.bf16.vlgmr.msra.gmra.mxu1 %vm684_vm1, %v577_v21  ;;  %v4069_v21 = vld [vmem:[#allocation5 + $0x7] ss:$0 sm:$0xff] }
 0x1eb   :  { %4515 = vmatpush3.bf16.xpose.msra.mxu1 %v1011_v22  ;;  %4516 = vmatprep.mubr.msk.bf16.mxu1 %vm5394_vm0, %v5393_v1 }
 0x1ec   :  { %4526 = vmatprep.subr.bf16.mxu1 %v5393_v1 }
 0x1ee   :  { %4511 = vmatmul.mubr.msk.bf16.vlgmr.msra.gmra.mxu0 %vm684_vm1, %v578_v23 }
 0x1ef   :  { %4522 = vmatprep.mubr.msk.bf16.mxu0 %vm5394_vm0, %v5393_v1  ;;  %4521 = vmatpush3.bf16.msra.mxu0 %v1155_v49 }
 0x1f0   :  { %4532 = vmatprep.subr.bf16.mxu0 %v5393_v1 }
 0x1f2   :  { %4517 = vmatmul.mubr.msk.bf16.vlgmr.msra.gmra.mxu1 %vm684_vm1, %v579_v25 }
 0x1f3   :  { %4528 = vmatprep.mubr.msk.bf16.mxu1 %vm5394_vm0, %v5393_v1  ;;  %4527 = vmatpush3.bf16.msra.mxu1 %v1201_v50 }
 0x1f4   :  { %4538 = vmatprep.subr.bf16.mxu1 %v5393_v1 }
 0x228   :  { %v725_v31 = vpop.f32.mrf.mxu1 }
 0x229   :  { %v5656_v32 = vadd.f32 %v4062_v30, %v725_v31 }
 0x22a   :  { %v4476_v33 = vpop.f32.mrf.mxu1 }
 0x22b   :  { %v1054_v34 = vsel %vm1053_vm2, %v5656_v32, -inf }
 0x22c   :  { %v728_v35 = vpop.f32.mrf.mxu1  ;;  %1055 = vmax.xlane.f32.xlu1 %v1054_v34 }
 0x22e   :  { %v4477_v36 = vpop.f32.mrf.mxu1 }
 0x230   :  { %v771_v38 = vpop.f32.mrf.mxu1 }
 0x231   :  { %v5660_v39 = vadd.f32 %v4063_v37, %v771_v38 }
 0x232   :  { %v4482_v40 = vpop.f32.mrf.mxu1 }
 0x233   :  { %v1057_v41 = vsel %vm1053_vm2, %v5660_v39, -inf }
 0x234   :  { %v774_v42 = vpop.f32.mrf.mxu1  ;;  %1058 = vmax.xlane.f32.xlu0 %v1057_v41 }
 0x236   :  { %v4483_v43 = vpop.f32.mrf.mxu1 }
 0x29a   :  { %v817_v53 = vpop.f32.mrf.mxu1 }
 0x29b   :  { %v818_v54 = vadd.f32 %v4064_v52, %v817_v53 }
 0x29c   :  { %v4488_v55 = vpop.f32.mrf.mxu1 }
 0x29d   :  { %v1060_v56 = vsel %vm1053_vm2, %v818_v54, -inf }
 0x29e   :  { %v820_v57 = vpop.f32.mrf.mxu1  ;;  %1061 = vmax.xlane.f32.xlu0 %v1060_v56 }
 0x2a0   :  { %v4489_v58 = vpop.f32.mrf.mxu1 }
 0x2a2   :  { %v863_v60 = vpop.f32.mrf.mxu1 }
 0x2a3   :  { %v864_v61 = vadd.f32 %v4065_v59, %v863_v60 }
 0x2a4   :  { %v4494_v63 = vpop.f32.mrf.mxu1 }
 0x2a5   :  { %v1063_v2 = vsel %vm1053_vm2, %v864_v61, -inf }
 0x2a6   :  { %v909_v0 = vpop.f32.mrf.mxu0  ;;  %v866_v3 = vpop.f32.mrf.mxu1  ;;  %1064 = vmax.xlane.f32.xlu1 %v1063_v2 }
 0x2a7   :  { %v910_v4 = vadd.f32 %v4066_v62, %v909_v0 }
 0x2a8   :  { %v4500_v5 = vpop.f32.mrf.mxu0  ;;  %v4495_v6 = vpop.f32.mrf.mxu1 }
 0x2a9   :  { %v1066_v8 = vsel %vm1053_vm2, %v910_v4, -inf }
 0x2aa   :  { %v912_v9 = vpop.f32.mrf.mxu0  ;;  %1067 = vmax.xlane.f32.xlu0 %v1066_v8  ;;  %v955_v10 = vpop.f32.mrf.mxu1 }
 0x2ab   :  { %v5676_v11 = vadd.f32 %v4067_v7, %v955_v10 }
 0x2ac   :  { %v4501_v12 = vpop.f32.mrf.mxu0  ;;  %v4506_v14 = vpop.f32.mrf.mxu1 }
 0x2ad   :  { %v1069_v16 = vsel %vm1053_vm2, %v5676_v11, -inf }
 0x2ae   :  { %v1001_v15 = vpop.f32.mrf.mxu0  ;;  %v958_v17 = vpop.f32.mrf.mxu1  ;;  %1070 = vmax.xlane.f32.xlu1 %v1069_v16 }
 0x2af   :  { %v1002_v18 = vadd.f32 %v4068_v13, %v1001_v15 }
 0x2b0   :  { %v4512_v19 = vpop.f32.mrf.mxu0  ;;  %v4507_v20 = vpop.f32.mrf.mxu1 }
 0x2b1   :  { %v1072_v22 = vsel %vm1053_vm2, %v1002_v18, -inf }
 0x2b2   :  { %v1004_v23 = vpop.f32.mrf.mxu0  ;;  %1073 = vmax.xlane.f32.xlu0 %v1072_v22  ;;  %v1047_v24 = vpop.f32.mrf.mxu1 }
 0x2b3   :  { %v5681_v25 = vadd.f32 %v4069_v21, %v1047_v24 }
 0x2b4   :  { %v4513_v26 = vpop.f32.mrf.mxu0  ;;  %v4518_v27 = vpop.f32.mrf.mxu1 }
 0x2b5   :  { %v1056_v28 = vpop.xlane.xlu1 %1055  ;;  %v1075_v30 = vsel %vm1053_vm2, %v5681_v25, -inf }
 0x2b6   :  { %v1078_v29 = vsub.f32 %v5656_v32, %v1056_v28  ;;  %v1050_v31 = vpop.f32.mrf.mxu1  ;;  %1076 = vmax.xlane.f32.xlu1 %v1075_v30 }
 0x2b8   :  { %v1086_v33 = vmul.f32 1.442695, %v1078_v29  ;;  %v4519_v34 = vpop.f32.mrf.mxu1 }
 0x2ba   :  { %5071 = vpow2.f32 %v1086_v33 }
 0x2bd   :  { %v1059_v35 = vpop.xlane.xlu0 %1058 }
 0x2be   :  { %v1079_v36 = vsub.f32 %v5660_v39, %v1059_v35 }
 0x2c0   :  { %v1088_v37 = vmul.f32 1.442695, %v1079_v36 }
 0x2c2   :  { %5073 = vpow2.f32 %v1088_v37 }
 0x2c7   :  { %v5072_v38 = vpop.eup %5071 }
 0x2c8   :  { %v1102_v40 = vsel %vm1053_vm2, %v5072_v38, 0.0 }
 0x2c9   :  { %1103 = vadd.xlane.f32.xlu0 %v1102_v40 }
 0x2cf   :  { %v5074_v41 = vpop.eup %5073 }
 0x2d0   :  { %v1105_v32 = vsel %vm1053_vm2, %v5074_v41, 0.0 }
 0x2d1   :  { %1106 = vadd.xlane.f32.xlu1 %v1105_v32 }
 0x327   :  { %v1062_v42 = vpop.xlane.xlu0 %1061 }
 0x328   :  { %v1080_v43 = vsub.f32 %v818_v54, %v1062_v42 }
 0x32a   :  { %v1090_v44 = vmul.f32 1.442695, %v1080_v43 }
 0x32c   :  { %5075 = vpow2.f32 %v1090_v44 }
 0x32f   :  { %v1065_v45 = vpop.xlane.xlu1 %1064 }
 0x330   :  { %v1081_v46 = vsub.f32 %v864_v61, %v1065_v45 }
 0x332   :  { %v1092_v47 = vmul.f32 1.442695, %v1081_v46 }
 0x333   :  { %v1068_v48 = vpop.xlane.xlu0 %1067 }
 0x334   :  { %v1082_v49 = vsub.f32 %v910_v4, %v1068_v48  ;;  %5077 = vpow2.f32 %v1092_v47 }
 0x336   :  { %v1094_v39 = vmul.f32 1.442695, %v1082_v49 }
 0x337   :  { %v1071_v62 = vpop.xlane.xlu1 %1070 }
 0x338   :  { %5079 = vpow2.f32 %v1094_v39  ;;  %v1083_v4 = vsub.f32 %v5676_v11, %v1071_v62 }
 0x339   :  { %v5689_v50 = vpop.eup %5075 }
 0x33a   :  { %v1108_v53 = vsel %vm1053_vm2, %v5689_v50, 0.0  ;;  %v1096_v7 = vmul.f32 1.442695, %v1083_v4 }
 0x33b   :  { %v1074_v52 = vpop.xlane.xlu0 %1073  ;;  %1109 = vadd.xlane.f32.xlu0 %v1108_v53 }
 0x33c   :  { %v1084_v55 = vsub.f32 %v1002_v18, %v1074_v52 }
 0x33e   :  { %v1098_v56 = vmul.f32 1.442695, %v1084_v55 }
 0x33f   :  { %v1077_v0 = vpop.xlane.xlu1 %1076 }
 0x340   :  { %5081 = vpow2.f32 %v1098_v56  ;;  %v1085_v8 = vsub.f32 %v5681_v25, %v1077_v0 }
 0x341   :  { %v5078_v54 = vpop.eup %5077 }
 0x342   :  { %v1111_v57 = vsel %vm1053_vm2, %v5078_v54, 0.0  ;;  %v1100_v10 = vmul.f32 1.442695, %v1085_v8  ;;  %v4944_v8 = vld [vmem:[#allocation11 + $0x30] sm:$0xff]  }
 0x343   :  { %1112 = vadd.xlane.f32.xlu1 %v1111_v57 }
 0x345   :  { %v5694_v58 = vpop.eup %5079 }
 0x346   :  { %v1114_v59 = vsel %vm1053_vm2, %v5694_v58, 0.0 }
 0x347   :  { %1115 = vadd.xlane.f32.xlu0 %v1114_v59 }
 0x34d   :  { %v5698_v60 = vpop.eup %5081 }
 0x34e   :  { %v1120_v61 = vsel %vm1053_vm2, %v5698_v60, 0.0 }
 0x34f   :  { %1121 = vadd.xlane.f32.xlu0 %v1120_v61 }
 0x352   :  { %v1104_v63 = vpop.xlane.xlu0 %1103 }
 0x353   :  { %5083 = vrcp.f32 %v1104_v63 }
 0x354   :  { %4835 = vrot.lane.b32.xlu1 %v5671_v51, %s5383_s27 }
 0x35a   :  { %v1107_v2 = vpop.xlane.xlu1 %1106 }
 0x35b   :  { %5085 = vrcp.f32 %v1107_v2 }
 0x35c   :  { %5087 = vpow2.f32 %v1096_v7  ;;  %v4943_v7 = vld [vmem:[#allocation11 + $0x38] sm:$0xff]  }
 0x35d   :  { %5089 = vpow2.f32 %v1100_v10 }
 0x360   :  { %v5084_v3 = vpop.eup %5083 }
 0x361   :  { %v1134_v5 = vmul.f32 %v5084_v3, %v5072_v38 }
 0x363   :  { %v1142_v6 = vpack.c.bf16 %v1134_v5, %v1134_v5 }
 0x365   :  { %4523 = vmatmul.mubr.msk.bf16.vlgmr.msra.gmra.mxu0 %vm1053_vm2, %v1142_v6  ;;  %4830 = vrot.lane.b32.xlu0 %v5671_v51, %s5395_s2 }
 0x366   :  { %4534 = vmatprep.mubr.msk.bf16.mxu0 %vm5394_vm0, %v5393_v1 }
 0x368   :  { %v5086_v9 = vpop.eup %5085 }
 0x369   :  { %v1135_v12 = vmul.f32 %v5086_v9, %v5074_v41  ;;  %v5714_v11 = vpop.eup %5087  ;;  %v4945_v9 = vld [vmem:[#allocation11 + $0x28] sm:$0xff]  }
 0x36a   :  { %v1117_v14 = vsel %vm1053_vm2, %v5714_v11, 0.0  ;;  %v5718_v15 = vpop.eup %5089 }
 0x36b   :  { %v1143_v13 = vpack.c.bf16 %v1135_v12, %v1135_v12  ;;  %v1123_v16 = vsel %vm1053_vm2, %v5718_v15, 0.0 }
 0x36d   :  { %4529 = vmatmul.mubr.msk.bf16.vlgmr.msra.gmra.mxu1 %vm1053_vm2, %v1143_v13 }
 0x36e   :  { %4540 = vmatprep.mubr.msk.bf16.mxu1 %vm5394_vm0, %v5393_v1 }
 0x378   :  { %1118 = vadd.xlane.f32.xlu1 %v1117_v14 }
 0x37c   :  { %1124 = vadd.xlane.f32.xlu1 %v1123_v16 }
 0x38d   :  { %4840 = vrot.lane.b32.xlu1 %v5671_v51, %s5396_s8 }
 0x3c4   :  { %v1110_v17 = vpop.xlane.xlu0 %1109 }
 0x3c5   :  { %5091 = vrcp.f32 %v1110_v17 }
 0x3cc   :  { %v1113_v18 = vpop.xlane.xlu1 %1112 }
 0x3cd   :  { %5093 = vrcp.f32 %v1113_v18 }
 0x3d0   :  { %v1116_v19 = vpop.xlane.xlu0 %1115  ;;  %v4836_v21 = vpop.permute.xlu1 %4835 }
 0x3d1   :  { %5095 = vrcp.f32 %v1116_v19  ;;  %v4838_v25 = vunpack.i.h.bf16 %v4836_v21  ;;  %v4837_v26 = vunpack.i.l.bf16 %v4836_v21 }
 0x3d2   :  { %v5092_v22 = vpop.eup %5091 }
 0x3d3   :  { %v1136_v31 = vmul.f32 %v5092_v22, %v5689_v50  ;;  %v633_v33 = vpack.c.bf16 %v4838_v25, %v4838_v25  ;;  %v632_v34 = vpack.c.bf16 %v4837_v26, %v4837_v26  ;;  %v4948_v25 = vld [vmem:[#allocation11 + $0x10] sm:$0xff]   ;;  %v4949_v26 = vld [vmem:[#allocation11 + $0x8] sm:$0xff]  }
 0x3d5   :  { %v1144_v37 = vpack.c.bf16 %v1136_v31, %v1136_v31  ;;  %v1339_v41 = vsel %vm1153_vm3, %v632_v34, 0  ;;  %v1385_v32 = vsel %vm1153_vm3, %v633_v33, 0 }
 0x3d8   :  { %v1122_v20 = vpop.xlane.xlu0 %1121 }
 0x3d9   :  { %5097 = vrcp.f32 %v1122_v20  ;;  %v4947_v20 = vld [vmem:[#allocation11 + $0x18] sm:$0xff]  }
 0x3da   :  { %v5094_v23 = vpop.eup %5093 }
 0x3db   :  { %v1137_v51 = vmul.f32 %v5094_v23, %v5078_v54 }
 0x3dc   :  { %v4831_v24 = vpop.permute.xlu0 %4830 }
 0x3dd   :  { %v4833_v27 = vunpack.i.h.bf16 %v4831_v24  ;;  %v4832_v28 = vunpack.i.l.bf16 %v4831_v24  ;;  %v1145_v38 = vpack.c.bf16 %v1137_v51, %v1137_v51 }
 0x3de   :  { %v5096_v40 = vpop.eup %5095 }
 0x3df   :  { %v631_v29 = vpack.c.bf16 %v4833_v27, %v4833_v27  ;;  %v630_v30 = vpack.c.bf16 %v4832_v28, %v4832_v28  ;;  %v1138_v42 = vmul.f32 %v5096_v40, %v5694_v58  ;;  %v4950_v28 = vld [vmem:[#allocation11] sm:$0xff]  }
 0x3e1   :  { %v1247_v35 = vsel %vm1153_vm3, %v630_v30, 0  ;;  %v1293_v36 = vsel %vm1153_vm3, %v631_v29, 0  ;;  %v1146_v43 = vpack.c.bf16 %v1138_v42, %v1138_v42 }
 0x3e2   :  { %4533 = vmatpush3.bf16.msra.mxu0 %v1247_v35  ;;  %4539 = vmatpush3.bf16.msra.mxu1 %v1293_v36 }
 0x3e3   :  { %4544 = vmatprep.subr.bf16.mxu0 %v5393_v1  ;;  %4550 = vmatprep.subr.bf16.mxu1 %v5393_v1 }
 0x3e5   :  { %4535 = vmatmul.mubr.msk.bf16.vlgmr.msra.gmra.mxu0 %vm1053_vm2, %v1144_v37  ;;  %4541 = vmatmul.mubr.msk.bf16.vlgmr.msra.gmra.mxu1 %vm1053_vm2, %v1145_v38 }
 0x3e6   :  { %4545 = vmatpush3.bf16.msra.mxu0 %v1339_v41  ;;  %4551 = vmatpush3.bf16.msra.mxu1 %v1385_v32  ;;  %v5098_v46 = vpop.eup %5097 }
 0x3e7   :  { %4546 = vmatprep.mubr.msk.bf16.mxu0 %vm5394_vm0, %v5393_v1  ;;  %4556 = vmatprep.subr.bf16.mxu0 %v5393_v1  ;;  %v1140_v50 = vmul.f32 %v5098_v46, %v5698_v60 }
 0x3e8   :  { %4552 = vmatprep.mubr.msk.bf16.mxu1 %vm5394_vm0, %v5393_v1  ;;  %4562 = vmatprep.subr.bf16.mxu1 %v5393_v1 }
 0x3e9   :  { %v1148_v56 = vpack.c.bf16 %v1140_v50, %v1140_v50 }
 0x3ed   :  { %4547 = vmatmul.mubr.msk.bf16.vlgmr.msra.gmra.mxu0 %vm1053_vm2, %v1146_v43 }
 0x3ee   :  { %4558 = vmatprep.mubr.msk.bf16.mxu0 %vm5394_vm0, %v5393_v1 }
 0x401   :  { %v1119_v44 = vpop.xlane.xlu1 %1118 }
 0x402   :  { %5099 = vrcp.f32 %v1119_v44 }
 0x405   :  { %v1125_v45 = vpop.xlane.xlu1 %1124 }
 0x406   :  { %5101 = vrcp.f32 %v1125_v45 }
 0x409   :  { %v4841_v47 = vpop.permute.xlu1 %4840 }
 0x40a   :  { %v4842_v48 = vunpack.i.l.bf16 %v4841_v47  ;;  %v4843_v49 = vunpack.i.h.bf16 %v4841_v47 }
 0x40c   :  { %v634_v39 = vpack.c.bf16 %v4842_v48, %v4842_v48  ;;  %v635_v55 = vpack.c.bf16 %v4843_v49, %v4843_v49 }
 0x40e   :  { %v1431_v52 = vsel %vm1153_vm3, %v634_v39, 0  ;;  %v1477_v59 = vsel %vm1153_vm3, %v635_v55, 0 }
 0x40f   :  { %v5100_v53 = vpop.eup %5099  ;;  %4557 = vmatpush3.bf16.msra.mxu0 %v1431_v52 }
 0x410   :  { %v1139_v54 = vmul.f32 %v5100_v53, %v5714_v11  ;;  %4568 = vmatprep.subr.bf16.mxu0 %v5393_v1 }
 0x412   :  { %4559 = vmatmul.mubr.msk.bf16.vlgmr.msra.gmra.mxu0 %vm1053_vm2, %v1148_v56  ;;  %v1147_v57 = vpack.c.bf16 %v1139_v54, %v1139_v54 }
 0x413   :  { %v5102_v58 = vpop.eup %5101  ;;  %4584 = vmatprep.mubr.msk.bf16.mxu0 %vm5394_vm0, %v5393_v1  ;;  %4569 = vmatpush3.bf16.msra.mxu0 %v4943_v7  ;;  %v4953_v7 = vld [vmem:[#allocation13 + $0x74] ss:$8 sps:$4 sm:$0xff]  }
 0x414   :  { %4553 = vmatmul.mubr.msk.bf16.vlgmr.msra.gmra.mxu1 %vm1053_vm2, %v1147_v57  ;;  %v1141_v60 = vmul.f32 %v5102_v58, %v5718_v15  ;;  %4570 = vmatprep.subr.bf16.mxu0 %v5393_v1  ;;  %v4946_v15 = vld [vmem:[#allocation11 + $0x20] sm:$0xff]  }
 0x415   :  { %4563 = vmatpush3.bf16.msra.mxu1 %v1477_v59  ;;  %4564 = vmatprep.mubr.msk.bf16.mxu1 %vm5394_vm0, %v5393_v1  ;;  %v4086_v58 = vld [vmem:[%s6091_s9] ss:$0 sm:$0xff] }
 0x416   :  { %v1149_v61 = vpack.c.bf16 %v1141_v60, %v1141_v60  ;;  %1812 = vmatprep.subr.bf16.mxu1 %v4953_v7 }
 0x417   :  { %4571 = vmatpush3.bf16.msra.mxu0 %v4944_v8 }
 0x418   :  { %4572 = vmatprep.subr.bf16.mxu0 %v5393_v1 }
 0x41b   :  { %4573 = vmatpush3.bf16.msra.mxu0 %v4945_v9 }
 0x41c   :  { %4565 = vmatmul.mubr.msk.bf16.vlgmr.msra.gmra.mxu1 %vm1053_vm2, %v1149_v61  ;;  %4574 = vmatprep.subr.bf16.mxu0 %v5393_v1 }
 0x41f   :  { %4575 = vmatpush3.bf16.msra.mxu0 %v4946_v15 }
 0x420   :  { %4576 = vmatprep.subr.bf16.mxu0 %v5393_v1 }
 0x423   :  { %4577 = vmatpush3.bf16.msra.mxu0 %v4947_v20  ;;  %v4960_v20 = vld [vmem:[#allocation13 + $0x40] ss:$8 sps:$4 sm:$0xff]  }
 0x424   :  { %4578 = vmatprep.subr.bf16.mxu0 %v5393_v1 }
 0x425   :  { %v5756_v62 = vpop.f32.mrf.mxu0 }
 0x427   :  { %v4524_v63 = vpop.f32.mrf.mxu0  ;;  %4579 = vmatpush3.bf16.msra.mxu0 %v4948_v25  ;;  %v4968_v25 = vld [vmem:[#allocation13 + $0x24] ss:$8 sps:$4 sm:$0xff]  }
 0x428   :  { %4580 = vmatprep.subr.bf16.mxu0 %v5393_v1 }
 0x429   :  { %v1194_v0 = vpop.f32.mrf.mxu0 }
 0x42b   :  { %v4525_v2 = vpop.f32.mrf.mxu0  ;;  %4581 = vmatpush3.bf16.msra.mxu0 %v4949_v26  ;;  %v4966_v26 = vld [vmem:[#allocation13 + $0x20] ss:$8 sps:$4 sm:$0xff]  }
 0x42c   :  { %4582 = vmatprep.subr.bf16.mxu0 %v5393_v1 }
 0x42d   :  { %v5758_v3 = vpop.f32.mrf.mxu1 }
 0x42f   :  { %v4530_v4 = vpop.f32.mrf.mxu1  ;;  %4583 = vmatpush3.bf16.msra.mxu0 %v4950_v28  ;;  %v4969_v28 = vld [vmem:[#allocation13 + $0x10] ss:$8 sps:$4 sm:$0xff]  }
 0x430   :  { %v5170_v4 = vld [vmem:[#allocation3 + $0x8] sm:$0xff] }
 0x431   :  { %v1240_v5 = vpop.f32.mrf.mxu1 }
 0x433   :  { %v4531_v6 = vpop.f32.mrf.mxu1 }
 0x434   :  { %v4951_v6 = vld [vmem:[#allocation13 + $0x70] ss:$8 sps:$4 sm:$0xff]  }
 0x435   :  { %1813 = vmatpush1.bf16.msra.mxu1 %v4951_v6 }
 0x4a5   :  { %v1283_v10 = vpop.f32.mrf.mxu0  ;;  %v1329_v12 = vpop.f32.mrf.mxu1 }
 0x4a6   :  { %v4844_v13 = vpack.i.bf16 %v1329_v12, %v1283_v10 }
 0x4a7   :  { %v4536_v11 = vpop.f32.mrf.mxu0  ;;  %v4542_v14 = vpop.f32.mrf.mxu1 }
 0x4a8   :  { %4845 = vrot.lane.b32.xlu0 %v4844_v13, %s5396_s8 }
 0x4a9   :  { %v1286_v16 = vpop.f32.mrf.mxu0  ;;  %v1332_v17 = vpop.f32.mrf.mxu1 }
 0x4aa   :  { %v4956_v16 = vld [vmem:[#allocation13 + $0x64] ss:$8 sps:$4 sm:$0xff]   ;;  %v4954_v17 = vld [vmem:[#allocation13 + $0x60] ss:$8 sps:$4 sm:$0xff]  }
 0x4ab   :  { %v4537_v18 = vpop.f32.mrf.mxu0  ;;  %v4543_v19 = vpop.f32.mrf.mxu1  ;;  %1814 = vmatprep.subr.bf16.mxu1 %v4956_v16 }
 0x4ac   :  { %1815 = vmatpush1.bf16.msra.mxu1 %v4954_v17  ;;  %v4959_v18 = vld [vmem:[#allocation13 + $0x54] ss:$8 sps:$4 sm:$0xff]   ;;  %v4957_v19 = vld [vmem:[#allocation13 + $0x50] ss:$8 sps:$4 sm:$0xff]  }
 0x4ad   :  { %v1375_v21 = vpop.f32.mrf.mxu0  ;;  %1816 = vmatprep.subr.bf16.mxu1 %v4959_v18 }
 0x4af   :  { %v4548_v22 = vpop.f32.mrf.mxu0 }
 0x4b0   :  { %1817 = vmatpush1.bf16.msra.mxu1 %v4957_v19  ;;  %v4965_v22 = vld [vmem:[#allocation13 + $0x34] ss:$8 sps:$4 sm:$0xff]  }
 0x4b1   :  { %v1378_v23 = vpop.f32.mrf.mxu0 }
 0x4b2   :  { %v4963_v23 = vld [vmem:[#allocation13 + $0x30] ss:$8 sps:$4 sm:$0xff]  }
 0x4b3   :  { %v4549_v24 = vpop.f32.mrf.mxu0 }
 0x4b4   :  { %v5397_v24 = vmov 0  }
 0x4b5   :  { %1844 = vmatprep.mubr.bf16.mxu1 %v5397_v24 }
 0x4d2   :  { %v1467_v27 = vpop.f32.mrf.mxu0 }
 0x4d4   :  { %v1421_v29 = vpop.f32.mrf.mxu1  ;;  %v4560_v30 = vpop.f32.mrf.mxu0 }
 0x4d5   :  { %v4849_v31 = vpack.i.bf16 %v1421_v29, %v1375_v21  ;;  %v4962_v21 = vld [vmem:[#allocation13 + $0x44] ss:$8 sps:$4 sm:$0xff]   ;;  %v4972_v30 = vld [vmem:[#allocation13] ss:$8 sps:$4 sm:$0xff]  }
 0x4d6   :  { %v4554_v51 = vpop.f32.mrf.mxu1  ;;  %v1470_v33 = vpop.f32.mrf.mxu0  ;;  %1818 = vmatprep.subr.bf16.mxu1 %v4962_v21  ;;  %v4974_v29 = vld [vmem:[#allocation13 + $0x4] ss:$8 sps:$4 sm:$0xff]  }
 0x4d7   :  { %4850 = vrot.lane.b32.xlu1 %v4849_v31, %s5383_s27  ;;  %1819 = vmatpush1.bf16.msra.mxu1 %v4960_v20 }
 0x4d8   :  { %v1424_v34 = vpop.f32.mrf.mxu1  ;;  %v4561_v35 = vpop.f32.mrf.mxu0  ;;  %1820 = vmatprep.subr.bf16.mxu1 %v4965_v22 }
 0x4da   :  { %v4555_v36 = vpop.f32.mrf.mxu1 }
 0x4db   :  { %1821 = vmatpush1.bf16.msra.mxu1 %v4963_v23 }
 0x4dc   :  { %v1513_v37 = vpop.f32.mrf.mxu1  ;;  %1822 = vmatprep.subr.bf16.mxu1 %v4968_v25 }
 0x4dd   :  { %v4854_v38 = vpack.i.bf16 %v1513_v37, %v1467_v27  ;;  %v4971_v27 = vld [vmem:[#allocation13 + $0x14] ss:$8 sps:$4 sm:$0xff]  }
 0x4de   :  { %v4566_v40 = vpop.f32.mrf.mxu1 }
 0x4df   :  { %4855 = vrot.lane.b32.xlu0 %v4854_v38, %s5395_s2  ;;  %1823 = vmatpush1.bf16.msra.mxu1 %v4966_v26  ;;  %v4095_v40 = vld [vmem:[%s6092_s10] ss:$0 sm:$0xff] }
 0x4e0   :  { %v1516_v41 = vpop.f32.mrf.mxu1  ;;  %1824 = vmatprep.subr.bf16.mxu1 %v4971_v27 }
 0x4e2   :  { %v4567_v32 = vpop.f32.mrf.mxu1 }
 0x4e3   :  { %1825 = vmatpush1.bf16.msra.mxu1 %v4969_v28 }
 0x4e4   :  { %1826 = vmatprep.subr.bf16.mxu1 %v4974_v29 }
 0x4e7   :  { %1827 = vmatpush1.bf16.msra.mxu1 %v4972_v30 }
 0x4e8   :  { %4588 = vmatprep.subr.bf16.mxu1 %v5393_v1 }
 0x51a   :  { %v4846_v42 = vpop.permute.xlu0 %4845 }
 0x51b   :  { %v4848_v44 = vunpack.i.h.bf16 %v4846_v42  ;;  %v4847_v45 = vunpack.i.l.bf16 %v4846_v42 }
 0x51d   :  { %v1544_v49 = vsel %vm684_vm1, %v5758_v3, %v4848_v44  ;;  %v1543_v39 = vsel %vm684_vm1, %v5756_v62, %v4847_v45  ;;  %v5169_v62 = vld [vmem:[#allocation3] sm:$0xff] }
 0x549   :  { %v4851_v43 = vpop.permute.xlu1 %4850 }
 0x54a   :  { %v4853_v46 = vunpack.i.h.bf16 %v4851_v43  ;;  %v4852_v47 = vunpack.i.l.bf16 %v4851_v43  ;;  %v4096_v43 = vld [vmem:[%s6093_s11] ss:$0 sm:$0xff] }
 0x54c   :  { %v1547_v53 = vsel %vm1545_vm4, %v1544_v49, %v4853_v46  ;;  %v1546_v55 = vsel %vm1545_vm4, %v1543_v39, %v4852_v47  ;;  %v4976_v49 = vld [vmem:[#allocation14 + $0x38] sm:$0xff]   ;;  %v4977_v39 = vld [vmem:[#allocation14 + $0x70] sm:$0xff]  }
 0x551   :  { %v4856_v48 = vpop.permute.xlu0 %4855 }
 0x552   :  { %v4858_v50 = vunpack.i.h.bf16 %v4856_v48  ;;  %v4857_v52 = vunpack.i.l.bf16 %v4856_v48  ;;  %v4975_v48 = vld [vmem:[#allocation14 + $0x78] sm:$0xff]  }
 0x553   :  { %4291 = vmatprep.subr.bf16.mxu0 %v4975_v48 }
 0x554   :  { %v1550_v56 = vsel %vm1548_vm5, %v1547_v53, %v4858_v50  ;;  %v1549_v54 = vsel %vm1548_vm5, %v1546_v55, %v4857_v52  ;;  %v4978_v50 = vld [vmem:[#allocation14 + $0x30] sm:$0xff]   ;;  %v4979_v52 = vld [vmem:[#allocation14 + $0x68] sm:$0xff]   ;;  %v4981_v55 = vld [vmem:[#allocation14 + $0x60] sm:$0xff]  }
 0x555   :  { %v1551_v57 = vpack.c.bf16 %v1550_v56, %v1549_v54  ;;  %v4980_v53 = vld [vmem:[#allocation14 + $0x28] sm:$0xff]   ;;  %v4982_v56 = vld [vmem:[#allocation14 + $0x20] sm:$0xff]   ;;  %v4983_v54 = vld [vmem:[#allocation14 + $0x58] sm:$0xff]  }
 0x557   :  { %4585 = vmatmul.mubr.bf16.vlgmr.msra.gmra.mxu0 %v1551_v57  ;;  %v4984_v57 = vld [vmem:[#allocation14 + $0x18] sm:$0xff]  }
 0x558   :  { %4292 = vmatpush3.bf16.msra.mxu0 %v4976_v49 }
 0x559   :  { %4293 = vmatprep.subr.bf16.mxu0 %v4977_v39 }
 0x55c   :  { %4294 = vmatpush3.bf16.msra.mxu0 %v4978_v50 }
 0x55d   :  { %4295 = vmatprep.subr.bf16.mxu0 %v4979_v52 }
 0x560   :  { %4296 = vmatpush3.bf16.msra.mxu0 %v4980_v53 }
 0x561   :  { %4297 = vmatprep.subr.bf16.mxu0 %v4981_v55 }
 0x564   :  { %4298 = vmatpush3.bf16.msra.mxu0 %v4982_v56 }
 0x565   :  { %4299 = vmatprep.subr.bf16.mxu0 %v4983_v54 }
 0x568   :  { %4300 = vmatpush3.bf16.msra.mxu0 %v4984_v57 }
 0x617   :  { %v1656_v59 = vpop.f32.mrf.mxu0 }
 0x618   :  { %v1657_v60 = vadd.f32 %v4086_v58, %v1656_v59  ;;  %v4986_v59 = vld [vmem:[#allocation14 + $0x10] sm:$0xff]  }
 0x619   :  { %v4586_v61 = vpop.f32.mrf.mxu0 }
 0x61a   :  { %v1663_v63 = vadd.f32 %v5169_v62, %v1657_v60  ;;  %v4987_v60 = vld [vmem:[#allocation14 + $0x48] sm:$0xff]   ;;  %v4989_v62 = vld [vmem:[#allocation14 + $0x40] sm:$0xff]  }
 0x61b   :  { %v1659_v0 = vpop.f32.mrf.mxu0  ;;  %v4988_v61 = vld [vmem:[#allocation14 + $0x8] sm:$0xff]  }
 0x61c   :  { %v1660_v2 = vadd.f32 %v4086_v58, %v1659_v0  ;;  %1665 = vadd.xlane.f32.xlu1 %v1663_v63  ;;  %v4985_v58 = vld [vmem:[#allocation14 + $0x50] sm:$0xff]   ;;  %v1722_v0 = vlaneseq }
 0x61d   :  { %v4587_v3 = vpop.f32.mrf.mxu0  ;;  %4301 = vmatprep.subr.bf16.mxu0 %v4985_v58  ;;  %v4113_v58 = vld [vmem:[%s6097_s15] ss:$0 sm:$0xff] }
 0x61e   :  { %v1664_v5 = vadd.f32 %v5170_v4, %v1660_v2  ;;  %4302 = vmatpush3.bf16.msra.mxu0 %v4986_v59  ;;  %v1723_v2 = vshrl.u32 %v1722_v0, 7  ;;  %v210_v4 = vld [vmem:[%s6095_s13] sm:$0x3] }
 0x61f   :  { %4303 = vmatprep.subr.bf16.mxu0 %v4987_v60 }
 0x620   :  { %1667 = vadd.xlane.f32.xlu0 %v1664_v5  ;;  %v1724_v3 = vsub.s32 0, %v1723_v2 }
 0x622   :  { %4304 = vmatpush3.bf16.msra.mxu0 %v4988_v61  ;;  %v5801_v6 = vrot.slane %v210_v4, %v1724_v3 }
 0x623   :  { %4305 = vmatprep.subr.bf16.mxu0 %v4989_v62 }
 0x6a5   :  { %v1666_v8 = vpop.xlane.xlu1 %1665 }
 0x6a6   :  { %v1670_v9 = vmul.f32 0.0078125, %v1666_v8 }
 0x6a8   :  { %v1672_v10 = vsub.f32 %v1663_v63, %v1670_v9  ;;  %v4990_v63 = vld [vmem:[#allocation14] sm:$0xff]  }
 0x6a9   :  { %v1668_v12 = vpop.xlane.xlu0 %1667  ;;  %4306 = vmatpush3.bf16.msra.mxu0 %v4990_v63 }
 0x6aa   :  { %v1671_v13 = vmul.f32 0.0078125, %v1668_v12  ;;  %v1674_v11 = vmul.f32 %v1672_v10, %v1672_v10  ;;  %4608 = vmatprep.subr.bf16.mxu0 %v5393_v1 }
 0x6ac   :  { %v1673_v14 = vsub.f32 %v1664_v5, %v1671_v13  ;;  %1676 = vadd.xlane.f32.xlu0 %v1674_v11  ;;  %v1728_v5 = vsub.s32 1, %v1723_v2 }
 0x6ae   :  { %v1675_v15 = vmul.f32 %v1673_v14, %v1673_v14  ;;  %v5803_v7 = vrot.slane %v210_v4, %v1728_v5  ;;  %v4991_v5 = vld [vmem:[#allocation7 + $0x38] sm:$0xff]  }
 0x6b0   :  { %1678 = vadd.xlane.f32.xlu1 %v1675_v15 }
 0x735   :  { %v1677_v31 = vpop.xlane.xlu0 %1676 }
 0x736   :  { %v1680_v51 = vmul.f32 0.0078125, %v1677_v31 }
 0x738   :  { %v1682_v33 = vadd.f32 1e-12, %v1680_v51 }
 0x739   :  { %v1679_v34 = vpop.xlane.xlu1 %1678 }
 0x73a   :  { %5103 = vrsqrt.f32 %v1682_v33  ;;  %v1681_v35 = vmul.f32 0.0078125, %v1679_v34 }
 0x73c   :  { %v1683_v36 = vadd.f32 1e-12, %v1681_v35 }
 0x73e   :  { %5105 = vrsqrt.f32 %v1683_v36 }
 0x747   :  { %v5104_v37 = vpop.eup %5103 }
 0x748   :  { %v1686_v38 = vmul.f32 %v5104_v37, %v1672_v10 }
 0x74a   :  { %v1694_v42 = vmul.f32 %v4095_v40, %v1686_v38 }
 0x74b   :  { %v5106_v41 = vpop.eup %5105 }
 0x74c   :  { %v1687_v32 = vmul.f32 %v5106_v41, %v1673_v14  ;;  %v5789_v45 = vadd.f32 %v4096_v43, %v1694_v42 }
 0x74e   :  { %v1695_v44 = vmul.f32 %v4095_v40, %v1687_v32 }
 0x750   :  { %v5791_v46 = vadd.f32 %v4096_v43, %v1695_v44 }
 0x752   :  { %v1704_v47 = vpack.c.bf16 %v5791_v46, %v5789_v45 }
 0x754   :  { %1845 = vmatmul.mubr.bf16.vlgmr.msra.gmra.mxu1 %v1704_v47 }
 0x755   :  { %4604 = vmatprep.mubr.msk.bf16.mxu1 %vm5394_vm0, %v5393_v1  ;;  %4589 = vmatpush3.bf16.msra.mxu1 %v4991_v5 }
 0x756   :  { %4590 = vmatprep.subr.bf16.mxu1 %v5393_v1 }
 0x814   :  { %v1846_v8 = vpop.f32.mrf.mxu1 }
 0x815   :  { %v1847_v9 = vadd.f32 %v1846_v8, %v5801_v6  ;;  %v4992_v8 = vld [vmem:[#allocation8 + $0x38] sm:$0xff]  }
 0x816   :  { %v1848_v10 = vpop.f32.mrf.mxu1 }
 0x817   :  { %v1855_v12 = vmul.f32 %v1847_v9, %v1847_v9  ;;  %v1849_v13 = vadd.f32 %v1848_v10, %v5803_v7 }
 0x818   :  { %v1850_v11 = vpop.f32.mrf.mxu1 }
 0x819   :  { %v1859_v14 = vmul.f32 %v1855_v12, %v1847_v9  ;;  %v1856_v15 = vmul.f32 %v1849_v13, %v1849_v13  ;;  %v1851_v16 = vadd.f32 %v1850_v11, %v5801_v6 }
 0x81a   :  { %v1852_v17 = vpop.f32.mrf.mxu1 }
 0x81b   :  { %v1863_v18 = vmul.f32 0.044715, %v1859_v14  ;;  %v1860_v19 = vmul.f32 %v1856_v15, %v1849_v13  ;;  %v1857_v20 = vmul.f32 %v1851_v16, %v1851_v16  ;;  %v1853_v21 = vadd.f32 %v1852_v17, %v5803_v7  ;;  %v4995_v17 = vld [vmem:[#allocation7 + $0x28] sm:$0xff]  }
 0x81d   :  { %v1867_v22 = vadd.f32 %v1863_v18, %v1847_v9  ;;  %v1864_v23 = vmul.f32 0.044715, %v1860_v19  ;;  %v1861_v25 = vmul.f32 %v1857_v20, %v1851_v16  ;;  %v1858_v26 = vmul.f32 %v1853_v21, %v1853_v21  ;;  %v4996_v18 = vld [vmem:[#allocation8 + $0x28] sm:$0xff]   ;;  %v4997_v19 = vld [vmem:[#allocation7 + $0x20] sm:$0xff]  }
 0x81e   :  { %v4998_v20 = vld [vmem:[#allocation8 + $0x20] sm:$0xff]  }
 0x81f   :  { %v1871_v27 = vmul.f32 0.7978846, %v1867_v22  ;;  %v1868_v28 = vadd.f32 %v1864_v23, %v1849_v13  ;;  %v1865_v29 = vmul.f32 0.044715, %v1861_v25  ;;  %v1862_v30 = vmul.f32 %v1858_v26, %v1853_v21  ;;  %v5000_v22 = vld [vmem:[#allocation8 + $0x18] sm:$0xff]   ;;  %v5001_v23 = vld [vmem:[#allocation7 + $0x10] sm:$0xff]  }
 0x820   :  { %v5002_v25 = vld [vmem:[#allocation8 + $0x10] sm:$0xff]   ;;  %v5003_v26 = vld [vmem:[#allocation7 + $0x8] sm:$0xff]  }
 0x821   :  { %v1872_v31 = vmul.f32 0.7978846, %v1868_v28  ;;  %v1869_v51 = vadd.f32 %v1865_v29, %v1851_v16  ;;  %v1866_v33 = vmul.f32 0.044715, %v1862_v30  ;;  %5107 = vtanh.f32 %v1871_v27  ;;  %v5004_v27 = vld [vmem:[#allocation8 + $0x8] sm:$0xff]   ;;  %v5005_v28 = vld [vmem:[#allocation7] sm:$0xff]  }
 0x822   :  { %v5006_v29 = vld [vmem:[#allocation8] sm:$0xff]  }
 0x823   :  { %5109 = vtanh.f32 %v1872_v31  ;;  %v1873_v34 = vmul.f32 0.7978846, %v1869_v51  ;;  %v1870_v35 = vadd.f32 %v1866_v33, %v1853_v21 }
 0x825   :  { %5111 = vtanh.f32 %v1873_v34  ;;  %v1874_v36 = vmul.f32 0.7978846, %v1870_v35 }
 0x827   :  { %5113 = vtanh.f32 %v1874_v36 }
 0x82e   :  { %v5108_v37 = vpop.eup %5107 }
 0x82f   :  { %v1879_v32 = vadd.f32 1.0, %v5108_v37 }
 0x830   :  { %v5110_v38 = vpop.eup %5109 }
 0x831   :  { %v1880_v40 = vadd.f32 1.0, %v5110_v38  ;;  %v1883_v49 = vmul.f32 0.5, %v1879_v32  ;;  %v4130_v38 = vld [vmem:[%s6098_s16] ss:$0 sm:$0xff] }
 0x832   :  { %v5112_v41 = vpop.eup %5111 }
 0x833   :  { %v1881_v42 = vadd.f32 1.0, %v5112_v41  ;;  %v1884_v48 = vmul.f32 0.5, %v1880_v40  ;;  %v1887_v55 = vmul.f32 %v1883_v49, %v1847_v9 }
 0x834   :  { %v5114_v43 = vpop.eup %5113 }
 0x835   :  { %v1885_v44 = vmul.f32 0.5, %v1881_v42  ;;  %v1882_v47 = vadd.f32 1.0, %v5114_v43  ;;  %v1888_v52 = vmul.f32 %v1884_v48, %v1849_v13  ;;  %v4131_v42 = vld [vmem:[%s6099_s17] ss:$0 sm:$0xff]  ;;  %v5007_v48 = vld [vmem:[#allocation10 + $0x38] sm:$0xff]  }
 0x837   :  { %v1886_v39 = vmul.f32 0.5, %v1882_v47  ;;  %v1889_v50 = vmul.f32 %v1885_v44, %v1851_v16  ;;  %v4994_v16 = vld [vmem:[#allocation8 + $0x30] sm:$0xff]  }
 0x839   :  { %v1890_v53 = vmul.f32 %v1886_v39, %v1853_v21  ;;  %v1891_v54 = vpack.c.bf16 %v1889_v50, %v1887_v55  ;;  %v4999_v21 = vld [vmem:[#allocation7 + $0x18] sm:$0xff]   ;;  %v5008_v39 = vld [vmem:[#allocation10 + $0x30] sm:$0xff]   ;;  %v5009_v50 = vld [vmem:[#allocation10 + $0x28] sm:$0xff]  }
 0x83a   :  { %v5012_v55 = vld [vmem:[#allocation10 + $0x10] sm:$0xff]  }
 0x83b   :  { %v1892_v56 = vpack.c.bf16 %v1890_v53, %v1888_v52  ;;  %v5010_v52 = vld [vmem:[#allocation10 + $0x20] sm:$0xff]   ;;  %v5011_v53 = vld [vmem:[#allocation10 + $0x18] sm:$0xff]  }
 0x83d   :  { %2059 = vmatprep.mubr.bf16.mxu0 %v1892_v56  ;;  %v5013_v56 = vld [vmem:[#allocation10 + $0x8] sm:$0xff]  }
 0x83e   :  { %2060 = vmatmul.mubr.bf16.vlgmr.msra.gmra.mxu0 %v1891_v54  ;;  %v5014_v54 = vld [vmem:[#allocation10] sm:$0xff]  }
 0x83f   :  { %4624 = vmatprep.mubr.msk.bf16.mxu0 %vm5394_vm0, %v5393_v1  ;;  %4609 = vmatpush3.bf16.msra.mxu0 %v4992_v8 }
 0x840   :  { %4610 = vmatprep.subr.bf16.mxu0 %v5393_v1 }
 0x843   :  { %4611 = vmatpush3.bf16.msra.mxu0 %v4994_v16 }
 0x844   :  { %4612 = vmatprep.subr.bf16.mxu0 %v5393_v1 }
 0x847   :  { %4613 = vmatpush3.bf16.msra.mxu0 %v4996_v18 }
 0x848   :  { %4614 = vmatprep.subr.bf16.mxu0 %v5393_v1 }
 0x84b   :  { %4615 = vmatpush3.bf16.msra.mxu0 %v4998_v20 }
 0x84c   :  { %4616 = vmatprep.subr.bf16.mxu0 %v5393_v1 }
 0x84f   :  { %4617 = vmatpush3.bf16.msra.mxu0 %v5000_v22 }
 0x850   :  { %4618 = vmatprep.subr.bf16.mxu0 %v5393_v1 }
 0x853   :  { %4619 = vmatpush3.bf16.msra.mxu0 %v5002_v25 }
 0x854   :  { %4620 = vmatprep.subr.bf16.mxu0 %v5393_v1 }
 0x857   :  { %4621 = vmatpush3.bf16.msra.mxu0 %v5004_v27 }
 0x858   :  { %4622 = vmatprep.subr.bf16.mxu0 %v5393_v1 }
 0x85b   :  { %4623 = vmatpush3.bf16.msra.mxu0 %v5006_v29 }
 0x85c   :  { %4648 = vmatprep.subr.bf16.mxu0 %v5393_v1 }
 0x8fe   :  { %v4307_v57 = vpop.f32.mrf.mxu0 }
 0x900   :  { %v4308_v59 = vpop.f32.mrf.mxu0 }
 0x901   :  { %v4309_v60 = vadd.f32 %v4308_v59, %v4307_v57  ;;  %v5171_v59 = vld [vmem:[%s6120_s24] ss:$0 sm:$0xff] }
 0x902   :  { %v4310_v61 = vpop.f32.mrf.mxu0 }
 0x903   :  { %v2062_v62 = vadd.f32 %v4309_v60, %v4113_v58 }
 0x904   :  { %v4311_v63 = vpop.f32.mrf.mxu0 }
 0x905   :  { %v4312_v0 = vadd.f32 %v4311_v63, %v4310_v61  ;;  %v2068_v2 = vadd.f32 %v2062_v62, %v5789_v45  ;;  %v5172_v63 = vld [vmem:[%s6119_s3] ss:$0 sm:$0xff] }
 0x907   :  { %v2065_v3 = vadd.f32 %v4312_v0, %v4113_v58  ;;  %2070 = vadd.xlane.f32.xlu0 %v2068_v2 }
 0x909   :  { %v2069_v4 = vadd.f32 %v2065_v3, %v5791_v46  ;;  %v4993_v46 = vld [vmem:[#allocation7 + $0x30] sm:$0xff]  }
 0x90a   :  { %4591 = vmatpush3.bf16.msra.mxu1 %v4993_v46 }
 0x90b   :  { %2072 = vadd.xlane.f32.xlu1 %v2069_v4  ;;  %4592 = vmatprep.subr.bf16.mxu1 %v5393_v1 }
 0x90e   :  { %4593 = vmatpush3.bf16.msra.mxu1 %v4995_v17 }
 0x90f   :  { %4594 = vmatprep.subr.bf16.mxu1 %v5393_v1 }
 0x912   :  { %4595 = vmatpush3.bf16.msra.mxu1 %v4997_v19 }
 0x913   :  { %4596 = vmatprep.subr.bf16.mxu1 %v5393_v1 }
 0x916   :  { %4597 = vmatpush3.bf16.msra.mxu1 %v4999_v21  ;;  %v5173_v21 = vld [vmem:[%s6089_s7] ss:$0 sm:$0xff] }
 0x917   :  { %4598 = vmatprep.subr.bf16.mxu1 %v5393_v1 }
 0x91a   :  { %4599 = vmatpush3.bf16.msra.mxu1 %v5001_v23 }
 0x91b   :  { %4600 = vmatprep.subr.bf16.mxu1 %v5393_v1 }
 0x91e   :  { %4601 = vmatpush3.bf16.msra.mxu1 %v5003_v26 }
 0x91f   :  { %4602 = vmatprep.subr.bf16.mxu1 %v5393_v1 }
 0x922   :  { %4603 = vmatpush3.bf16.msra.mxu1 %v5005_v28 }
 0x923   :  { %4628 = vmatprep.subr.bf16.mxu1 %v5393_v1 }
 0x990   :  { %v2071_v9 = vpop.xlane.xlu0 %2070 }
 0x991   :  { %v2074_v10 = vmul.f32 0.0078125, %v2071_v9 }
 0x993   :  { %v2076_v12 = vsub.f32 %v2068_v2, %v2074_v10 }
 0x994   :  { %v2073_v13 = vpop.xlane.xlu1 %2072 }
 0x995   :  { %v2075_v11 = vmul.f32 0.0078125, %v2073_v13  ;;  %v2078_v14 = vmul.f32 %v2076_v12, %v2076_v12 }
 0x997   :  { %v2077_v45 = vsub.f32 %v2069_v4, %v2075_v11  ;;  %2080 = vadd.xlane.f32.xlu0 %v2078_v14 }
 0x999   :  { %v2079_v15 = vmul.f32 %v2077_v45, %v2077_v45 }
 0x99b   :  { %2082 = vadd.xlane.f32.xlu1 %v2079_v15 }
 0xa20   :  { %v2081_v30 = vpop.xlane.xlu0 %2080 }
 0xa21   :  { %v2084_v31 = vmul.f32 0.0078125, %v2081_v30 }
 0xa23   :  { %v2086_v51 = vadd.f32 1e-12, %v2084_v31 }
 0xa24   :  { %v2083_v33 = vpop.xlane.xlu1 %2082 }
 0xa25   :  { %5115 = vrsqrt.f32 %v2086_v51  ;;  %v2085_v34 = vmul.f32 0.0078125, %v2083_v33 }
 0xa27   :  { %v2087_v35 = vadd.f32 1e-12, %v2085_v34 }
 0xa29   :  { %5117 = vrsqrt.f32 %v2087_v35 }
 0xa32   :  { %v5116_v36 = vpop.eup %5115 }
 0xa33   :  { %v2090_v37 = vmul.f32 %v5116_v36, %v2076_v12 }
 0xa35   :  { %v2098_v32 = vmul.f32 %v4130_v38, %v2090_v37 }
 0xa36   :  { %v5118_v40 = vpop.eup %5117 }
 0xa37   :  { %v2091_v41 = vmul.f32 %v5118_v40, %v2077_v45  ;;  %v5838_v44 = vadd.f32 %v4131_v42, %v2098_v32 }
 0xa39   :  { %v2099_v43 = vmul.f32 %v4130_v38, %v2091_v41 }
 0xa3b   :  { %v5840_v47 = vadd.f32 %v4131_v42, %v2099_v43 }
 0xa3d   :  { %v2108_v49 = vpack.c.bf16 %v5840_v47, %v5838_v44 }
 0xa3f   :  { %4605 = vmatmul.mubr.bf16.vlgmr.msra.gmra.mxu1 %v2108_v49  ;;  %4625 = vmatmul.mubr.bf16.vlgmr.msra.gmra.mxu0 %v2108_v49 }
 0xa40   :  { %4629 = vmatpush3.bf16.msra.mxu1 %v5007_v48  ;;  %4644 = vmatprep.mubr.msk.bf16.mxu1 %vm5394_vm0, %v5393_v1 }
 0xa41   :  { %4630 = vmatprep.subr.bf16.mxu1 %v5393_v1  ;;  %4650 = vmatprep.mubr.msk.bf16.mxu0 %vm5394_vm0, %v5393_v1 }
 0xa44   :  { %4631 = vmatpush3.bf16.msra.mxu1 %v5008_v39 }
 0xa45   :  { %4632 = vmatprep.subr.bf16.mxu1 %v5393_v1 }
 0xa48   :  { %4633 = vmatpush3.bf16.msra.mxu1 %v5009_v50 }
 0xa49   :  { %4634 = vmatprep.subr.bf16.mxu1 %v5393_v1 }
 0xa4c   :  { %4635 = vmatpush3.bf16.msra.mxu1 %v5010_v52 }
 0xa4d   :  { %4636 = vmatprep.subr.bf16.mxu1 %v5393_v1 }
 0xa50   :  { %4637 = vmatpush3.bf16.msra.mxu1 %v5011_v53 }
 0xa51   :  { %4638 = vmatprep.subr.bf16.mxu1 %v5393_v1 }
 0xa54   :  { %4639 = vmatpush3.bf16.msra.mxu1 %v5012_v55 }
 0xa55   :  { %4640 = vmatprep.subr.bf16.mxu1 %v5393_v1 }
 0xa58   :  { %4641 = vmatpush3.bf16.msra.mxu1 %v5013_v56 }
 0xa59   :  { %4642 = vmatprep.subr.bf16.mxu1 %v5393_v1 }
 0xa5c   :  { %4643 = vmatpush3.bf16.msra.mxu1 %v5014_v54 }
 0xa5d   :  { %4654 = vmatprep.subr.bf16.mxu1 %v5393_v1 }
 0xa5f   :  { %4645 = vmatmul.mubr.bf16.vlgmr.msra.gmra.mxu1 %v2108_v49 }
 0xa60   :  { %4656 = vmatprep.mubr.msk.bf16.mxu1 %vm5394_vm0, %v5393_v1 }
 0xaff   :  { %v2207_v57 = vpop.f32.mrf.mxu1  ;;  %v2314_v58 = vpop.f32.mrf.mxu0 }
 0xb00   :  { %v2315_v60 = vadd.f32 %v5171_v59, %v2314_v58  ;;  %v2208_v0 = vadd.f32 %v5172_v63, %v2207_v57 }
 0xb01   :  { %v4606_v61 = vpop.f32.mrf.mxu1  ;;  %v4626_v62 = vpop.f32.mrf.mxu0 }
 0xb02   :  { %v2474_v2 = vpack.c.bf16 %v2315_v60, %v2315_v60  ;;  %v2214_v13 = vmul.f32 0.17677669, %v2208_v0 }
 0xb03   :  { %v2210_v3 = vpop.f32.mrf.mxu1  ;;  %v2317_v4 = vpop.f32.mrf.mxu0 }
 0xb04   :  { %v2211_v5 = vadd.f32 %v5172_v63, %v2210_v3  ;;  %v2318_v8 = vadd.f32 %v5171_v59, %v2317_v4  ;;  %v2514_v9 = vsel %vm684_vm1, %v2474_v2, 0  ;;  %v2446_v16 = vpack.c.bf16 %v2214_v13, %v2214_v13 }
 0xb05   :  { %v4607_v10 = vpop.f32.mrf.mxu1  ;;  %v4627_v12 = vpop.f32.mrf.mxu0  ;;  %4649 = vmatpush3.bf16.xpose.msra.mxu0 %v2514_v9 }
 0xb06   :  { %v2215_v11 = vmul.f32 0.17677669, %v2211_v5  ;;  %v4859_v14 = vpack.i.bf16 %v2318_v8, %v2315_v60  ;;  %v2475_v45 = vpack.c.bf16 %v2318_v8, %v2318_v8  ;;  %4660 = vmatprep.subr.bf16.mxu0 %v5393_v1  ;;  %v5174_v12 = vld [vmem:[#allocation5] ss:$0 sm:$0xff] }
 0xb08   :  { %4860 = vrot.lane.b32.xlu0 %v4859_v14, %s5395_s2  ;;  %v2560_v15 = vsel %vm684_vm1, %v2475_v45, 0  ;;  %v4864_v46 = vpack.i.bf16 %v2215_v11, %v2214_v13  ;;  %v2447_v17 = vpack.c.bf16 %v2215_v11, %v2215_v11 }
 0xb09   :  { %4655 = vmatpush3.bf16.xpose.msra.mxu1 %v2560_v15 }
 0xb0a   :  { %4865 = vrot.lane.b32.xlu1 %v4864_v46, %s5395_s2  ;;  %4666 = vmatprep.subr.bf16.mxu1 %v5393_v1 }
 0xb0c   :  { %4651 = vmatmul.mubr.msk.bf16.vlgmr.msra.gmra.mxu0 %vm684_vm1, %v2446_v16  ;;  %4875 = vrot.lane.b32.xlu0 %v4864_v46, %s5383_s27 }
 0xb0d   :  { %4662 = vmatprep.mubr.msk.bf16.mxu0 %vm5394_vm0, %v5393_v1 }
 0xb0e   :  { %4870 = vrot.lane.b32.xlu1 %v4859_v14, %s5383_s27 }
 0xb10   :  { %4885 = vrot.lane.b32.xlu0 %v4864_v46, %s5396_s8  ;;  %4657 = vmatmul.mubr.msk.bf16.vlgmr.msra.gmra.mxu1 %vm684_vm1, %v2447_v17  ;;  %v5175_v46 = vld [vmem:[#allocation5 + $0x1] ss:$0 sm:$0xff] }
 0xb11   :  { %4668 = vmatprep.mubr.msk.bf16.mxu1 %vm5394_vm0, %v5393_v1 }
 0xb12   :  { %4880 = vrot.lane.b32.xlu1 %v4859_v14, %s5396_s8 }
 0xb1f   :  { %v2419_v18 = vpop.f32.mrf.mxu1 }
 0xb20   :  { %v5883_v22 = vadd.f32 %v5173_v21, %v2419_v18 }
 0xb21   :  { %v4646_v19 = vpop.f32.mrf.mxu1 }
 0xb22   :  { %v2502_v2 = vpack.c.bf16 %v5883_v22, %v5883_v22 }
 0xb23   :  { %v2422_v20 = vpop.f32.mrf.mxu1 }
 0xb24   :  { %v5885_v23 = vadd.f32 %v5173_v21, %v2422_v20  ;;  %v2978_v8 = vsel %vm1153_vm3, %v2502_v2, 0 }
 0xb25   :  { %v4647_v25 = vpop.f32.mrf.mxu1 }
 0xb26   :  { %v5889_v26 = vpack.i.bf16 %v5885_v23, %v5883_v22  ;;  %v2503_v3 = vpack.c.bf16 %v5885_v23, %v5885_v23  ;;  %v5176_v25 = vld [vmem:[#allocation5 + $0x2] ss:$0 sm:$0xff] }
 0xb28   :  { %v3024_v9 = vsel %vm1153_vm3, %v2503_v3, 0 }
 0xb7a   :  { %v4861_v27 = vpop.permute.xlu0 %4860 }
 0xb7b   :  { %v4863_v28 = vunpack.i.h.bf16 %v4861_v27  ;;  %v4862_v29 = vunpack.i.l.bf16 %v4861_v27 }
 0xb7c   :  { %v4866_v30 = vpop.permute.xlu1 %4865 }
 0xb7d   :  { %v2477_v31 = vpack.c.bf16 %v4863_v28, %v4863_v28  ;;  %v2476_v51 = vpack.c.bf16 %v4862_v29, %v4862_v29  ;;  %v4868_v38 = vunpack.i.h.bf16 %v4866_v30  ;;  %v4867_v40 = vunpack.i.l.bf16 %v4866_v30  ;;  %v5177_v28 = vld [vmem:[#allocation5 + $0x3] ss:$0 sm:$0xff] }
 0xb7e   :  { %v4876_v49 = vpop.permute.xlu0 %4875 }
 0xb7f   :  { %v2606_v33 = vsel %vm684_vm1, %v2476_v51, 0  ;;  %v2652_v35 = vsel %vm684_vm1, %v2477_v31, 0  ;;  %v2449_v43 = vpack.c.bf16 %v4868_v38, %v4868_v38  ;;  %v2448_v48 = vpack.c.bf16 %v4867_v40, %v4867_v40 }
 0xb80   :  { %v4871_v34 = vpop.permute.xlu1 %4870  ;;  %4661 = vmatpush3.bf16.xpose.msra.mxu0 %v2606_v33  ;;  %4667 = vmatpush3.bf16.xpose.msra.mxu1 %v2652_v35  ;;  %v4878_v55 = vunpack.i.h.bf16 %v4876_v49  ;;  %v4877_v56 = vunpack.i.l.bf16 %v4876_v49 }
 0xb81   :  { %v4873_v36 = vunpack.i.h.bf16 %v4871_v34  ;;  %v4872_v37 = vunpack.i.l.bf16 %v4871_v34  ;;  %4672 = vmatprep.subr.bf16.mxu0 %v5393_v1  ;;  %4678 = vmatprep.subr.bf16.mxu1 %v5393_v1 }
 0xb82   :  { %v2451_v58 = vpack.c.bf16 %v4878_v55, %v4878_v55  ;;  %v2450_v59 = vpack.c.bf16 %v4877_v56, %v4877_v56  ;;  %v4886_v60 = vpop.permute.xlu0 %4885 }
 0xb83   :  { %v2479_v41 = vpack.c.bf16 %v4873_v36, %v4873_v36  ;;  %v2478_v32 = vpack.c.bf16 %v4872_v37, %v4872_v37  ;;  %v4888_v63 = vunpack.i.h.bf16 %v4886_v60  ;;  %v4887_v0 = vunpack.i.l.bf16 %v4886_v60  ;;  %v5181_v60 = vld [vmem:[#allocation5 + $0x7] ss:$0 sm:$0xff] }
 0xb84   :  { %v4881_v42 = vpop.permute.xlu1 %4880 }
 0xb85   :  { %v4883_v39 = vunpack.i.h.bf16 %v4881_v42  ;;  %v4882_v50 = vunpack.i.l.bf16 %v4881_v42  ;;  %v2698_v52 = vsel %vm684_vm1, %v2478_v32, 0  ;;  %v2744_v53 = vsel %vm684_vm1, %v2479_v41, 0  ;;  %v5178_v41 = vld [vmem:[#allocation5 + $0x4] ss:$0 sm:$0xff]  ;;  %v5179_v42 = vld [vmem:[#allocation5 + $0x5] ss:$0 sm:$0xff] }
 0xb86   :  { %v2453_v4 = vpack.c.bf16 %v4888_v63, %v4888_v63  ;;  %v2452_v5 = vpack.c.bf16 %v4887_v0, %v4887_v0 }
 0xb87   :  { %4663 = vmatmul.mubr.msk.bf16.vlgmr.msra.gmra.mxu0 %vm684_vm1, %v2448_v48  ;;  %4669 = vmatmul.mubr.msk.bf16.vlgmr.msra.gmra.mxu1 %vm684_vm1, %v2449_v43  ;;  %v2481_v54 = vpack.c.bf16 %v4883_v39, %v4883_v39  ;;  %v2480_v57 = vpack.c.bf16 %v4882_v50, %v4882_v50 }
 0xb88   :  { %4673 = vmatpush3.bf16.xpose.msra.mxu0 %v2698_v52  ;;  %4679 = vmatpush3.bf16.xpose.msra.mxu1 %v2744_v53 }
 0xb89   :  { %4674 = vmatprep.mubr.msk.bf16.mxu0 %vm5394_vm0, %v5393_v1  ;;  %4680 = vmatprep.mubr.msk.bf16.mxu1 %vm5394_vm0, %v5393_v1  ;;  %v2790_v61 = vsel %vm684_vm1, %v2480_v57, 0  ;;  %v2836_v62 = vsel %vm684_vm1, %v2481_v54, 0 }
 0xb8a   :  { %4684 = vmatprep.subr.bf16.mxu0 %v5393_v1  ;;  %4690 = vmatprep.subr.bf16.mxu1 %v5393_v1 }
 0xb8f   :  { %4675 = vmatmul.mubr.msk.bf16.vlgmr.msra.gmra.mxu0 %vm684_vm1, %v2450_v59  ;;  %4681 = vmatmul.mubr.msk.bf16.vlgmr.msra.gmra.mxu1 %vm684_vm1, %v2451_v58  ;;  %v5180_v58 = vld [vmem:[#allocation5 + $0x6] ss:$0 sm:$0xff] }
 0xb90   :  { %4685 = vmatpush3.bf16.xpose.msra.mxu0 %v2790_v61  ;;  %4691 = vmatpush3.bf16.xpose.msra.mxu1 %v2836_v62 }
 0xb91   :  { %4686 = vmatprep.mubr.msk.bf16.mxu0 %vm5394_vm0, %v5393_v1  ;;  %4692 = vmatprep.mubr.msk.bf16.mxu1 %vm5394_vm0, %v5393_v1 }
 0xb92   :  { %4696 = vmatprep.subr.bf16.mxu0 %v5393_v1  ;;  %4702 = vmatprep.subr.bf16.mxu1 %v5393_v1 }
 0xb97   :  { %4687 = vmatmul.mubr.msk.bf16.vlgmr.msra.gmra.mxu0 %vm684_vm1, %v2452_v5  ;;  %4693 = vmatmul.mubr.msk.bf16.vlgmr.msra.gmra.mxu1 %vm684_vm1, %v2453_v4 }
 0xb98   :  { %4697 = vmatpush3.bf16.msra.mxu0 %v2978_v8  ;;  %4703 = vmatpush3.bf16.msra.mxu1 %v3024_v9 }
 0xb99   :  { %4698 = vmatprep.mubr.msk.bf16.mxu0 %vm5394_vm0, %v5393_v1  ;;  %4704 = vmatprep.mubr.msk.bf16.mxu1 %vm5394_vm0, %v5393_v1 }
 0xb9a   :  { %4708 = vmatprep.subr.bf16.mxu0 %v5393_v1  ;;  %4714 = vmatprep.subr.bf16.mxu1 %v5393_v1 }
 0xbcc   :  { %v2550_v10 = vpop.f32.mrf.mxu0 }
 0xbcd   :  { %v2551_v13 = vadd.f32 %v5174_v12, %v2550_v10 }
 0xbce   :  { %v4652_v11 = vpop.f32.mrf.mxu0 }
 0xbcf   :  { %v2878_v14 = vsel %vm1053_vm2, %v2551_v13, -inf }
 0xbd0   :  { %v2553_v45 = vpop.f32.mrf.mxu0  ;;  %2879 = vmax.xlane.f32.xlu1 %v2878_v14  ;;  %v2596_v15 = vpop.f32.mrf.mxu1 }
 0xbd1   :  { %v2597_v16 = vadd.f32 %v5175_v46, %v2596_v15 }
 0xbd2   :  { %v4653_v17 = vpop.f32.mrf.mxu0  ;;  %v4658_v18 = vpop.f32.mrf.mxu1 }
 0xbd3   :  { %v2881_v19 = vsel %vm1053_vm2, %v2597_v16, -inf }
 0xbd4   :  { %2882 = vmax.xlane.f32.xlu0 %v2881_v19  ;;  %v2599_v20 = vpop.f32.mrf.mxu1 }
 0xbd6   :  { %v4659_v21 = vpop.f32.mrf.mxu1 }
 0xc47   :  { %v2642_v22 = vpop.f32.mrf.mxu0  ;;  %v2688_v23 = vpop.f32.mrf.mxu1 }
 0xc48   :  { %v5931_v27 = vadd.f32 %v5176_v25, %v2642_v22  ;;  %v2689_v29 = vadd.f32 %v5177_v28, %v2688_v23 }
 0xc49   :  { %v4664_v30 = vpop.f32.mrf.mxu0  ;;  %v4670_v31 = vpop.f32.mrf.mxu1 }
 0xc4a   :  { %v2884_v51 = vsel %vm1053_vm2, %v5931_v27, -inf  ;;  %v2887_v33 = vsel %vm1053_vm2, %v2689_v29, -inf }
 0xc4b   :  { %v2645_v34 = vpop.f32.mrf.mxu0  ;;  %2885 = vmax.xlane.f32.xlu0 %v2884_v51  ;;  %2888 = vmax.xlane.f32.xlu1 %v2887_v33  ;;  %v2691_v35 = vpop.f32.mrf.mxu1 }
 0xc4d   :  { %v4665_v36 = vpop.f32.mrf.mxu0  ;;  %v4671_v37 = vpop.f32.mrf.mxu1 }
 0xc4f   :  { %v2734_v38 = vpop.f32.mrf.mxu0  ;;  %v2780_v40 = vpop.f32.mrf.mxu1 }
 0xc50   :  { %v2735_v32 = vadd.f32 %v5178_v41, %v2734_v38  ;;  %v2781_v43 = vadd.f32 %v5179_v42, %v2780_v40 }
 0xc51   :  { %v4676_v48 = vpop.f32.mrf.mxu0  ;;  %v4682_v49 = vpop.f32.mrf.mxu1 }
 0xc52   :  { %v2890_v39 = vsel %vm1053_vm2, %v2735_v32, -inf  ;;  %v2893_v50 = vsel %vm1053_vm2, %v2781_v43, -inf }
 0xc53   :  { %v2737_v52 = vpop.f32.mrf.mxu0  ;;  %2891 = vmax.xlane.f32.xlu0 %v2890_v39  ;;  %2894 = vmax.xlane.f32.xlu1 %v2893_v50  ;;  %v2783_v53 = vpop.f32.mrf.mxu1 }
 0xc55   :  { %v4677_v55 = vpop.f32.mrf.mxu0  ;;  %v4683_v56 = vpop.f32.mrf.mxu1 }
 0xc57   :  { %v2826_v54 = vpop.f32.mrf.mxu0  ;;  %v2872_v57 = vpop.f32.mrf.mxu1 }
 0xc58   :  { %v2827_v59 = vadd.f32 %v5180_v58, %v2826_v54  ;;  %v5938_v61 = vadd.f32 %v5181_v60, %v2872_v57 }
 0xc59   :  { %v2880_v62 = vpop.xlane.xlu1 %2879  ;;  %v4688_v0 = vpop.f32.mrf.mxu0 }
 0xc5a   :  { %v2902_v63 = vsub.f32 %v2551_v13, %v2880_v62  ;;  %v4694_v2 = vpop.f32.mrf.mxu1  ;;  %v2896_v3 = vsel %vm1053_vm2, %v2827_v59, -inf  ;;  %v2899_v4 = vsel %vm1053_vm2, %v5938_v61, -inf }
 0xc5b   :  { %v2829_v8 = vpop.f32.mrf.mxu0  ;;  %2897 = vmax.xlane.f32.xlu0 %v2896_v3  ;;  %2900 = vmax.xlane.f32.xlu1 %v2899_v4 }
 0xc5c   :  { %v2910_v5 = vmul.f32 1.442695, %v2902_v63  ;;  %v2875_v9 = vpop.f32.mrf.mxu1 }
 0xc5d   :  { %v2883_v10 = vpop.xlane.xlu0 %2882  ;;  %v4689_v12 = vpop.f32.mrf.mxu0 }
 0xc5e   :  { %5119 = vpow2.f32 %v2910_v5  ;;  %v2903_v11 = vsub.f32 %v2597_v16, %v2883_v10  ;;  %v4695_v14 = vpop.f32.mrf.mxu1 }
 0xc60   :  { %v2912_v45 = vmul.f32 1.442695, %v2903_v11 }
 0xc62   :  { %5121 = vpow2.f32 %v2912_v45 }
 0xc6b   :  { %v5120_v13 = vpop.eup %5119 }
 0xc6c   :  { %v2926_v15 = vsel %vm1053_vm2, %v5120_v13, 0.0 }
 0xc6d   :  { %2927 = vadd.xlane.f32.xlu0 %v2926_v15 }
 0xc6f   :  { %v5122_v46 = vpop.eup %5121 }
 0xc70   :  { %v2929_v17 = vsel %vm1053_vm2, %v5122_v46, 0.0 }
 0xc71   :  { %2930 = vadd.xlane.f32.xlu1 %v2929_v17 }
 0xcd4   :  { %v2886_v18 = vpop.xlane.xlu0 %2885  ;;  %v2889_v19 = vpop.xlane.xlu1 %2888 }
 0xcd5   :  { %v2904_v20 = vsub.f32 %v5931_v27, %v2886_v18  ;;  %v2905_v21 = vsub.f32 %v2689_v29, %v2889_v19 }
 0xcd7   :  { %v2914_v22 = vmul.f32 1.442695, %v2904_v20  ;;  %v2916_v23 = vmul.f32 1.442695, %v2905_v21 }
 0xcd9   :  { %5123 = vpow2.f32 %v2914_v22 }
 0xcda   :  { %5125 = vpow2.f32 %v2916_v23 }
 0xcdc   :  { %v2892_v16 = vpop.xlane.xlu0 %2891  ;;  %v2895_v25 = vpop.xlane.xlu1 %2894 }
 0xcdd   :  { %v2906_v28 = vsub.f32 %v2735_v32, %v2892_v16  ;;  %v2907_v30 = vsub.f32 %v2781_v43, %v2895_v25 }
 0xcdf   :  { %v2918_v31 = vmul.f32 1.442695, %v2906_v28  ;;  %v2920_v51 = vmul.f32 1.442695, %v2907_v30 }
 0xce1   :  { %5127 = vpow2.f32 %v2918_v31 }
 0xce2   :  { %5129 = vpow2.f32 %v2920_v51 }
 0xce4   :  { %v2898_v33 = vpop.xlane.xlu0 %2897  ;;  %v2901_v42 = vpop.xlane.xlu1 %2900 }
 0xce5   :  { %v2908_v34 = vsub.f32 %v2827_v59, %v2898_v33  ;;  %v2909_v57 = vsub.f32 %v5938_v61, %v2901_v42 }
 0xce6   :  { %v5124_v35 = vpop.eup %5123 }
 0xce7   :  { %v5126_v36 = vpop.eup %5125  ;;  %v2922_v37 = vmul.f32 1.442695, %v2908_v34  ;;  %v2932_v27 = vsel %vm1053_vm2, %v5124_v35, 0.0  ;;  %v2924_v58 = vmul.f32 1.442695, %v2909_v57 }
 0xce8   :  { %2933 = vadd.xlane.f32.xlu0 %v2932_v27  ;;  %v2935_v29 = vsel %vm1053_vm2, %v5126_v36, 0.0 }
 0xce9   :  { %5131 = vpow2.f32 %v2922_v37  ;;  %2936 = vadd.xlane.f32.xlu1 %v2935_v29 }
 0xcee   :  { %v5948_v38 = vpop.eup %5127 }
 0xcef   :  { %v5950_v40 = vpop.eup %5129  ;;  %v2938_v41 = vsel %vm1053_vm2, %v5948_v38, 0.0 }
 0xcf0   :  { %2939 = vadd.xlane.f32.xlu0 %v2938_v41  ;;  %v2941_v32 = vsel %vm1053_vm2, %v5950_v40, 0.0 }
 0xcf1   :  { %2942 = vadd.xlane.f32.xlu1 %v2941_v32 }
 0xcf6   :  { %v2928_v43 = vpop.xlane.xlu0 %2927  ;;  %v5956_v48 = vpop.eup %5131 }
 0xcf7   :  { %5133 = vrcp.f32 %v2928_v43  ;;  %v2944_v49 = vsel %vm1053_vm2, %v5956_v48, 0.0 }
 0xcf8   :  { %2945 = vadd.xlane.f32.xlu0 %v2944_v49 }
 0xcfa   :  { %v2931_v39 = vpop.xlane.xlu1 %2930 }
 0xcfb   :  { %5135 = vrcp.f32 %v2931_v39 }
 0xcfc   :  { %5137 = vpow2.f32 %v2924_v58  ;;  %v5015_v58 = vld [vmem:[#allocation11 + $0x38] sm:$0xff]  }
 0xd02   :  { %4895 = vrot.lane.b32.xlu1 %v5889_v26, %s5383_s27 }
 0xd04   :  { %v5134_v50 = vpop.eup %5133 }
 0xd05   :  { %v2958_v52 = vmul.f32 %v5134_v50, %v5120_v13 }
 0xd07   :  { %v2966_v53 = vpack.c.bf16 %v2958_v52, %v2958_v52 }
 0xd08   :  { %v5136_v55 = vpop.eup %5135 }
 0xd09   :  { %4699 = vmatmul.mubr.msk.bf16.vlgmr.msra.gmra.mxu0 %vm1053_vm2, %v2966_v53  ;;  %v2959_v56 = vmul.f32 %v5136_v55, %v5122_v46  ;;  %v5971_v59 = vpop.eup %5137 }
 0xd0a   :  { %4710 = vmatprep.mubr.msk.bf16.mxu0 %vm5394_vm0, %v5393_v1  ;;  %v2947_v60 = vsel %vm1053_vm2, %v5971_v59, 0.0 }
 0xd0b   :  { %v2967_v54 = vpack.c.bf16 %v2959_v56, %v2959_v56 }
 0xd0d   :  { %4705 = vmatmul.mubr.msk.bf16.vlgmr.msra.gmra.mxu1 %vm1053_vm2, %v2967_v54 }
 0xd0e   :  { %4716 = vmatprep.mubr.msk.bf16.mxu1 %vm5394_vm0, %v5393_v1  ;;  %4890 = vrot.lane.b32.xlu0 %v5889_v26, %s5395_s2 }
 0xd26   :  { %2948 = vadd.xlane.f32.xlu1 %v2947_v60 }
 0xd37   :  { %4900 = vrot.lane.b32.xlu1 %v5889_v26, %s5396_s8 }
 0xd71   :  { %v2934_v62 = vpop.xlane.xlu0 %2933 }
 0xd72   :  { %v2937_v63 = vpop.xlane.xlu1 %2936  ;;  %5139 = vrcp.f32 %v2934_v62 }
 0xd73   :  { %5141 = vrcp.f32 %v2937_v63  ;;  %v5016_v63 = vld [vmem:[#allocation11 + $0x30] sm:$0xff]  }
 0xd79   :  { %v2940_v61 = vpop.xlane.xlu0 %2939 }
 0xd7a   :  { %v2943_v0 = vpop.xlane.xlu1 %2942  ;;  %5143 = vrcp.f32 %v2940_v61 }
 0xd7b   :  { %5145 = vrcp.f32 %v2943_v0 }
 0xd7e   :  { %v4896_v3 = vpop.permute.xlu1 %4895 }
 0xd7f   :  { %v5140_v4 = vpop.eup %5139  ;;  %v4898_v9 = vunpack.i.h.bf16 %v4896_v3  ;;  %v4897_v10 = vunpack.i.l.bf16 %v4896_v3  ;;  %v5017_v3 = vld [vmem:[#allocation11 + $0x28] sm:$0xff]  }
 0xd80   :  { %v5142_v5 = vpop.eup %5141  ;;  %v2960_v26 = vmul.f32 %v5140_v4, %v5124_v35 }
 0xd81   :  { %v2946_v2 = vpop.xlane.xlu0 %2945  ;;  %v2961_v13 = vmul.f32 %v5142_v5, %v5126_v36  ;;  %v2507_v15 = vpack.c.bf16 %v4898_v9, %v4898_v9  ;;  %v2506_v46 = vpack.c.bf16 %v4897_v10, %v4897_v10 }
 0xd82   :  { %v2968_v20 = vpack.c.bf16 %v2960_v26, %v2960_v26  ;;  %5147 = vrcp.f32 %v2946_v2 }
 0xd83   :  { %v2969_v21 = vpack.c.bf16 %v2961_v13, %v2961_v13  ;;  %v3162_v23 = vsel %vm1153_vm3, %v2506_v46, 0  ;;  %v3208_v16 = vsel %vm1153_vm3, %v2507_v15, 0  ;;  %v5019_v13 = vld [vmem:[#allocation11 + $0x18] sm:$0xff]   ;;  %v5020_v15 = vld [vmem:[#allocation11 + $0x10] sm:$0xff]   ;;  %v5021_v46 = vld [vmem:[#allocation11 + $0x8] sm:$0xff]  }
 0xd85   :  { %v4891_v8 = vpop.permute.xlu0 %4890 }
 0xd86   :  { %v4893_v12 = vunpack.i.h.bf16 %v4891_v8  ;;  %v4892_v11 = vunpack.i.l.bf16 %v4891_v8 }
 0xd87   :  { %v5144_v19 = vpop.eup %5143 }
 0xd88   :  { %v2505_v14 = vpack.c.bf16 %v4893_v12, %v4893_v12  ;;  %v2504_v45 = vpack.c.bf16 %v4892_v11, %v4892_v11  ;;  %v5146_v22 = vpop.eup %5145  ;;  %v2962_v25 = vmul.f32 %v5144_v19, %v5948_v38  ;;  %v5018_v12 = vld [vmem:[#allocation11 + $0x20] sm:$0xff]  }
 0xd89   :  { %v2963_v28 = vmul.f32 %v5146_v22, %v5950_v40 }
 0xd8a   :  { %v3070_v17 = vsel %vm1153_vm3, %v2504_v45, 0  ;;  %v3116_v18 = vsel %vm1153_vm3, %v2505_v14, 0  ;;  %v2970_v30 = vpack.c.bf16 %v2962_v25, %v2962_v25 }
 0xd8b   :  { %4709 = vmatpush3.bf16.msra.mxu0 %v3070_v17  ;;  %4715 = vmatpush3.bf16.msra.mxu1 %v3116_v18  ;;  %v2971_v31 = vpack.c.bf16 %v2963_v28, %v2963_v28  ;;  %v5022_v17 = vld [vmem:[#allocation11] sm:$0xff]  }
 0xd8c   :  { %4720 = vmatprep.subr.bf16.mxu0 %v5393_v1  ;;  %4726 = vmatprep.subr.bf16.mxu1 %v5393_v1 }
 0xd8e   :  { %4711 = vmatmul.mubr.msk.bf16.vlgmr.msra.gmra.mxu0 %vm1053_vm2, %v2968_v20  ;;  %4717 = vmatmul.mubr.msk.bf16.vlgmr.msra.gmra.mxu1 %vm1053_vm2, %v2969_v21 }
 0xd8f   :  { %4721 = vmatpush3.bf16.msra.mxu0 %v3162_v23  ;;  %4727 = vmatpush3.bf16.msra.mxu1 %v3208_v16  ;;  %v5148_v33 = vpop.eup %5147 }
 0xd90   :  { %4722 = vmatprep.mubr.msk.bf16.mxu0 %vm5394_vm0, %v5393_v1  ;;  %4728 = vmatprep.mubr.msk.bf16.mxu1 %vm5394_vm0, %v5393_v1  ;;  %v2964_v29 = vmul.f32 %v5148_v33, %v5956_v48 }
 0xd91   :  { %4732 = vmatprep.subr.bf16.mxu0 %v5393_v1  ;;  %4738 = vmatprep.subr.bf16.mxu1 %v5393_v1 }
 0xd92   :  { %v2972_v41 = vpack.c.bf16 %v2964_v29, %v2964_v29 }
 0xd96   :  { %4723 = vmatmul.mubr.msk.bf16.vlgmr.msra.gmra.mxu0 %vm1053_vm2, %v2970_v30  ;;  %4729 = vmatmul.mubr.msk.bf16.vlgmr.msra.gmra.mxu1 %vm1053_vm2, %v2971_v31 }
 0xd97   :  { %4734 = vmatprep.mubr.msk.bf16.mxu0 %vm5394_vm0, %v5393_v1  ;;  %4740 = vmatprep.mubr.msk.bf16.mxu1 %vm5394_vm0, %v5393_v1 }
 0xdaf   :  { %v2949_v51 = vpop.xlane.xlu1 %2948 }
 0xdb0   :  { %5149 = vrcp.f32 %v2949_v51 }
 0xdb3   :  { %v4901_v34 = vpop.permute.xlu1 %4900 }
 0xdb4   :  { %v4903_v35 = vunpack.i.h.bf16 %v4901_v34  ;;  %v4902_v36 = vunpack.i.l.bf16 %v4901_v34 }
 0xdb6   :  { %v2509_v37 = vpack.c.bf16 %v4903_v35, %v4903_v35  ;;  %v2508_v27 = vpack.c.bf16 %v4902_v36, %v4902_v36 }
 0xdb8   :  { %v3254_v38 = vsel %vm1153_vm3, %v2508_v27, 0  ;;  %v3300_v40 = vsel %vm1153_vm3, %v2509_v37, 0 }
 0xdb9   :  { %4733 = vmatpush3.bf16.msra.mxu0 %v3254_v38  ;;  %4739 = vmatpush3.bf16.msra.mxu1 %v3300_v40 }
 0xdba   :  { %4744 = vmatprep.subr.bf16.mxu0 %v5393_v1 }
 0xdbc   :  { %4735 = vmatmul.mubr.msk.bf16.vlgmr.msra.gmra.mxu0 %vm1053_vm2, %v2972_v41 }
 0xdbd   :  { %v5150_v32 = vpop.eup %5149  ;;  %4760 = vmatprep.mubr.msk.bf16.mxu0 %vm5394_vm0, %v5393_v1  ;;  %4745 = vmatpush3.bf16.msra.mxu0 %v5015_v58  ;;  %v5025_v58 = vld [vmem:[#allocation13 + $0x74] ss:$8 sps:$4 sm:$0xff]  }
 0xdbe   :  { %v2965_v42 = vmul.f32 %v5150_v32, %v5971_v59  ;;  %4746 = vmatprep.subr.bf16.mxu0 %v5393_v1  ;;  %3603 = vmatprep.subr.bf16.mxu1 %v5025_v58 }
 0xdc0   :  { %v2973_v43 = vpack.c.bf16 %v2965_v42, %v2965_v42 }
 0xdc1   :  { %4747 = vmatpush3.bf16.msra.mxu0 %v5016_v63 }
 0xdc2   :  { %4741 = vmatmul.mubr.msk.bf16.vlgmr.msra.gmra.mxu1 %vm1053_vm2, %v2973_v43  ;;  %4748 = vmatprep.subr.bf16.mxu0 %v5393_v1 }
 0xdc3   :  { %3635 = vmatprep.mubr.bf16.mxu1 %v5397_v24 }
 0xdc5   :  { %4749 = vmatpush3.bf16.msra.mxu0 %v5017_v3  ;;  %v5026_v3 = vld [vmem:[#allocation13 + $0x60] ss:$8 sps:$4 sm:$0xff]  }
 0xdc6   :  { %4750 = vmatprep.subr.bf16.mxu0 %v5393_v1 }
 0xdc9   :  { %v6009_v48 = vpop.f32.mrf.mxu0  ;;  %4751 = vmatpush3.bf16.msra.mxu0 %v5018_v12  ;;  %v5040_v12 = vld [vmem:[#allocation13 + $0x24] ss:$8 sps:$4 sm:$0xff]  }
 0xdca   :  { %4752 = vmatprep.subr.bf16.mxu0 %v5393_v1 }
 0xdcb   :  { %v4700_v49 = vpop.f32.mrf.mxu0 }
 0xdcd   :  { %v3017_v39 = vpop.f32.mrf.mxu0  ;;  %v6011_v50 = vpop.f32.mrf.mxu1  ;;  %4753 = vmatpush3.bf16.msra.mxu0 %v5019_v13  ;;  %v5044_v13 = vld [vmem:[#allocation13] ss:$8 sps:$4 sm:$0xff]  }
 0xdce   :  { %4754 = vmatprep.subr.bf16.mxu0 %v5393_v1  ;;  %v5182_v39 = vld [vmem:[%s6091_s9] ss:$0 sm:$0xff] }
 0xdcf   :  { %v4701_v52 = vpop.f32.mrf.mxu0  ;;  %v4706_v53 = vpop.f32.mrf.mxu1 }
 0xdd1   :  { %v3063_v55 = vpop.f32.mrf.mxu1  ;;  %4755 = vmatpush3.bf16.msra.mxu0 %v5020_v15 }
 0xdd2   :  { %4756 = vmatprep.subr.bf16.mxu0 %v5393_v1 }
 0xdd3   :  { %v4707_v56 = vpop.f32.mrf.mxu1 }
 0xdd5   :  { %4757 = vmatpush3.bf16.msra.mxu0 %v5021_v46 }
 0xdd6   :  { %4758 = vmatprep.subr.bf16.mxu0 %v5393_v1 }
 0xdd9   :  { %4759 = vmatpush3.bf16.msra.mxu0 %v5022_v17 }
 0xe4e   :  { %v3106_v54 = vpop.f32.mrf.mxu0  ;;  %v3152_v57 = vpop.f32.mrf.mxu1 }
 0xe4f   :  { %v4904_v60 = vpack.i.bf16 %v3152_v57, %v3106_v54  ;;  %v5023_v57 = vld [vmem:[#allocation13 + $0x70] ss:$8 sps:$4 sm:$0xff]  }
 0xe50   :  { %v4712_v59 = vpop.f32.mrf.mxu0  ;;  %v4718_v62 = vpop.f32.mrf.mxu1  ;;  %3604 = vmatpush1.bf16.msra.mxu1 %v5023_v57 }
 0xe51   :  { %4905 = vrot.lane.b32.xlu0 %v4904_v60, %s5396_s8 }
 0xe52   :  { %v3109_v24 = vpop.f32.mrf.mxu0  ;;  %v3155_v61 = vpop.f32.mrf.mxu1 }
 0xe54   :  { %v4713_v0 = vpop.f32.mrf.mxu0  ;;  %v4719_v2 = vpop.f32.mrf.mxu1 }
 0xe55   :  { %v5028_v2 = vld [vmem:[#allocation13 + $0x64] ss:$8 sps:$4 sm:$0xff]  }
 0xe56   :  { %v3198_v4 = vpop.f32.mrf.mxu0  ;;  %v3244_v5 = vpop.f32.mrf.mxu1  ;;  %3605 = vmatprep.subr.bf16.mxu1 %v5028_v2 }
 0xe57   :  { %v4909_v8 = vpack.i.bf16 %v3244_v5, %v3198_v4  ;;  %3606 = vmatpush1.bf16.msra.mxu1 %v5026_v3  ;;  %v5029_v4 = vld [vmem:[#allocation13 + $0x50] ss:$8 sps:$4 sm:$0xff]   ;;  %v5032_v5 = vld [vmem:[#allocation13 + $0x40] ss:$8 sps:$4 sm:$0xff]  }
 0xe58   :  { %v4724_v9 = vpop.f32.mrf.mxu0  ;;  %v4730_v10 = vpop.f32.mrf.mxu1 }
 0xe59   :  { %4910 = vrot.lane.b32.xlu1 %v4909_v8, %s5383_s27  ;;  %v5034_v8 = vld [vmem:[#allocation13 + $0x44] ss:$8 sps:$4 sm:$0xff]   ;;  %v5037_v9 = vld [vmem:[#allocation13 + $0x34] ss:$8 sps:$4 sm:$0xff]   ;;  %v5035_v10 = vld [vmem:[#allocation13 + $0x30] ss:$8 sps:$4 sm:$0xff]  }
 0xe5a   :  { %v3201_v11 = vpop.f32.mrf.mxu0  ;;  %v3247_v14 = vpop.f32.mrf.mxu1 }
 0xe5b   :  { %v5038_v11 = vld [vmem:[#allocation13 + $0x20] ss:$8 sps:$4 sm:$0xff]   ;;  %v5043_v14 = vld [vmem:[#allocation13 + $0x14] ss:$8 sps:$4 sm:$0xff]  }
 0xe5c   :  { %v4725_v45 = vpop.f32.mrf.mxu0  ;;  %v4731_v26 = vpop.f32.mrf.mxu1 }
 0xe5d   :  { %v5041_v45 = vld [vmem:[#allocation13 + $0x10] ss:$8 sps:$4 sm:$0xff]   ;;  %v5046_v26 = vld [vmem:[#allocation13 + $0x4] ss:$8 sps:$4 sm:$0xff]  }
 0xe7c   :  { %v3290_v18 = vpop.f32.mrf.mxu0 }
 0xe7e   :  { %v4736_v19 = vpop.f32.mrf.mxu0 }
 0xe80   :  { %v3293_v20 = vpop.f32.mrf.mxu0 }
 0xe82   :  { %v4737_v21 = vpop.f32.mrf.mxu0  ;;  %v3336_v22 = vpop.f32.mrf.mxu1 }
 0xe83   :  { %v4914_v23 = vpack.i.bf16 %v3336_v22, %v3290_v18 }
 0xe84   :  { %v4742_v16 = vpop.f32.mrf.mxu1 }
 0xe85   :  { %4915 = vrot.lane.b32.xlu0 %v4914_v23, %s5395_s2 }
 0xe86   :  { %v3339_v25 = vpop.f32.mrf.mxu1 }
 0xe87   :  { %v5183_v25 = vld [vmem:[%s6092_s10] ss:$0 sm:$0xff] }
 0xe88   :  { %v4743_v28 = vpop.f32.mrf.mxu1 }
 0xec3   :  { %v4906_v30 = vpop.permute.xlu0 %4905 }
 0xec4   :  { %v4908_v51 = vunpack.i.h.bf16 %v4906_v30  ;;  %v4907_v33 = vunpack.i.l.bf16 %v4906_v30 }
 0xec6   :  { %v3367_v37 = vsel %vm684_vm1, %v6011_v50, %v4908_v51  ;;  %v3366_v27 = vsel %vm684_vm1, %v6009_v48, %v4907_v33 }
 0xecb   :  { %v4911_v31 = vpop.permute.xlu1 %4910 }
 0xecc   :  { %v4913_v34 = vunpack.i.h.bf16 %v4911_v31  ;;  %v4912_v35 = vunpack.i.l.bf16 %v4911_v31  ;;  %v5184_v31 = vld [vmem:[%s6093_s11] ss:$0 sm:$0xff] }
 0xece   :  { %v3369_v40 = vsel %vm1545_vm4, %v3367_v37, %v4913_v34  ;;  %v3368_v41 = vsel %vm1545_vm4, %v3366_v27, %v4912_v35  ;;  %v5047_v35 = vld [vmem:[#allocation14 + $0x78] sm:$0xff]   ;;  %v5049_v37 = vld [vmem:[#allocation14 + $0x70] sm:$0xff]  }
 0xecf   :  { %4381 = vmatprep.subr.bf16.mxu0 %v5047_v35  ;;  %v5050_v27 = vld [vmem:[#allocation14 + $0x30] sm:$0xff]  }
 0xef7   :  { %v4916_v36 = vpop.permute.xlu0 %4915 }
 0xef8   :  { %v4918_v29 = vunpack.i.h.bf16 %v4916_v36  ;;  %v4917_v38 = vunpack.i.l.bf16 %v4916_v36  ;;  %v5048_v36 = vld [vmem:[#allocation14 + $0x38] sm:$0xff]  }
 0xefa   :  { %v3371_v32 = vsel %vm1548_vm5, %v3369_v40, %v4918_v29  ;;  %v3370_v42 = vsel %vm1548_vm5, %v3368_v41, %v4917_v38  ;;  %v5051_v29 = vld [vmem:[#allocation14 + $0x68] sm:$0xff]   ;;  %v5053_v40 = vld [vmem:[#allocation14 + $0x60] sm:$0xff]  }
 0xefb   :  { %v3372_v43 = vpack.c.bf16 %v3371_v32, %v3370_v42  ;;  %v5052_v38 = vld [vmem:[#allocation14 + $0x28] sm:$0xff]   ;;  %v5054_v41 = vld [vmem:[#allocation14 + $0x20] sm:$0xff]   ;;  %v5055_v32 = vld [vmem:[#allocation14 + $0x58] sm:$0xff]  }
 0xefc   :  { %v5056_v42 = vld [vmem:[#allocation14 + $0x18] sm:$0xff]  }
 0xefd   :  { %4761 = vmatmul.mubr.bf16.vlgmr.msra.gmra.mxu0 %v3372_v43  ;;  %v5057_v43 = vld [vmem:[#allocation14 + $0x50] sm:$0xff]  }
 0xefe   :  { %4382 = vmatpush3.bf16.msra.mxu0 %v5048_v36 }
 0xeff   :  { %4383 = vmatprep.subr.bf16.mxu0 %v5049_v37 }
 0xf02   :  { %4384 = vmatpush3.bf16.msra.mxu0 %v5050_v27 }
 0xf03   :  { %4385 = vmatprep.subr.bf16.mxu0 %v5051_v29 }
 0xf06   :  { %4386 = vmatpush3.bf16.msra.mxu0 %v5052_v38  ;;  %v5185_v38 = vld [vmem:[%s6097_s15] ss:$0 sm:$0xff] }
 0xf07   :  { %4387 = vmatprep.subr.bf16.mxu0 %v5053_v40 }
 0xf0a   :  { %4388 = vmatpush3.bf16.msra.mxu0 %v5054_v41 }
 0xf0b   :  { %4389 = vmatprep.subr.bf16.mxu0 %v5055_v32 }
 0xf0e   :  { %4390 = vmatpush3.bf16.msra.mxu0 %v5056_v42 }
 0xf0f   :  { %4391 = vmatprep.subr.bf16.mxu0 %v5057_v43 }
 0xfbd   :  { %v3471_v49 = vpop.f32.mrf.mxu0 }
 0xfbe   :  { %v3472_v50 = vadd.f32 %v5182_v39, %v3471_v49  ;;  %v5058_v49 = vld [vmem:[#allocation14 + $0x10] sm:$0xff]  }
 0xfbf   :  { %v4762_v52 = vpop.f32.mrf.mxu0  ;;  %4392 = vmatpush3.bf16.msra.mxu0 %v5058_v49 }
 0xfc0   :  { %v3478_v48 = vadd.f32 %v3472_v50, %v5838_v44  ;;  %v5060_v50 = vld [vmem:[#allocation14 + $0x8] sm:$0xff]   ;;  %v5061_v52 = vld [vmem:[#allocation14 + $0x40] sm:$0xff]  }
 0xfc1   :  { %v3474_v53 = vpop.f32.mrf.mxu0 }
 0xfc2   :  { %v3475_v55 = vadd.f32 %v5182_v39, %v3474_v53  ;;  %3480 = vadd.xlane.f32.xlu1 %v3478_v48  ;;  %v5059_v39 = vld [vmem:[#allocation14 + $0x48] sm:$0xff]  }
 0xfc3   :  { %v4763_v56 = vpop.f32.mrf.mxu0  ;;  %4393 = vmatprep.subr.bf16.mxu0 %v5059_v39 }
 0xfc4   :  { %v3479_v54 = vadd.f32 %v3475_v55, %v5840_v47  ;;  %v5031_v47 = vld [vmem:[#allocation13 + $0x54] ss:$8 sps:$4 sm:$0xff]   ;;  %4394 = vmatpush3.bf16.msra.mxu0 %v5060_v50 }
 0xfc5   :  { %3607 = vmatprep.subr.bf16.mxu1 %v5031_v47  ;;  %4395 = vmatprep.subr.bf16.mxu0 %v5061_v52 }
 0xfc6   :  { %3482 = vadd.xlane.f32.xlu0 %v3479_v54  ;;  %3608 = vmatpush1.bf16.msra.mxu1 %v5029_v4 }
 0xfc7   :  { %3609 = vmatprep.subr.bf16.mxu1 %v5034_v8 }
 0xfca   :  { %3610 = vmatpush1.bf16.msra.mxu1 %v5032_v5 }
 0xfcb   :  { %3611 = vmatprep.subr.bf16.mxu1 %v5037_v9 }
 0xfce   :  { %3612 = vmatpush1.bf16.msra.mxu1 %v5035_v10 }
 0xfcf   :  { %3613 = vmatprep.subr.bf16.mxu1 %v5040_v12 }
 0xfd2   :  { %3614 = vmatpush1.bf16.msra.mxu1 %v5038_v11 }
 0xfd3   :  { %3615 = vmatprep.subr.bf16.mxu1 %v5043_v14 }
 0xfd6   :  { %3616 = vmatpush1.bf16.msra.mxu1 %v5041_v45 }
 0xfd7   :  { %3617 = vmatprep.subr.bf16.mxu1 %v5046_v26 }
 0xfda   :  { %3618 = vmatpush1.bf16.msra.mxu1 %v5044_v13 }
 0xfdb   :  { %4764 = vmatprep.subr.bf16.mxu1 %v5393_v1 }
0x104b   :  { %v3481_v60 = vpop.xlane.xlu1 %3480 }
0x104c   :  { %v3484_v59 = vmul.f32 0.0078125, %v3481_v60 }
0x104e   :  { %v3486_v62 = vsub.f32 %v3478_v48, %v3484_v59  ;;  %v5062_v48 = vld [vmem:[#allocation14] sm:$0xff]  }
0x104f   :  { %v3483_v63 = vpop.xlane.xlu0 %3482  ;;  %4396 = vmatpush3.bf16.msra.mxu0 %v5062_v48 }
0x1050   :  { %v3485_v24 = vmul.f32 0.0078125, %v3483_v63  ;;  %v3488_v61 = vmul.f32 %v3486_v62, %v3486_v62 }
0x1052   :  { %v3487_v0 = vsub.f32 %v3479_v54, %v3485_v24  ;;  %3490 = vadd.xlane.f32.xlu0 %v3488_v61 }
0x1054   :  { %v3489_v44 = vmul.f32 %v3487_v0, %v3487_v0 }
0x1056   :  { %3492 = vadd.xlane.f32.xlu1 %v3489_v44 }
0x10db   :  { %v3491_v15 = vpop.xlane.xlu0 %3490 }
0x10dc   :  { %v3494_v46 = vmul.f32 0.0078125, %v3491_v15 }
0x10de   :  { %v3496_v17 = vadd.f32 1e-12, %v3494_v46 }
0x10df   :  { %v3493_v18 = vpop.xlane.xlu1 %3492 }
0x10e0   :  { %5151 = vrsqrt.f32 %v3496_v17  ;;  %v3495_v19 = vmul.f32 0.0078125, %v3493_v18 }
0x10e2   :  { %v3497_v20 = vadd.f32 1e-12, %v3495_v19 }
0x10e4   :  { %5153 = vrsqrt.f32 %v3497_v20 }
0x10ed   :  { %v5152_v21 = vpop.eup %5151 }
0x10ee   :  { %v3500_v22 = vmul.f32 %v5152_v21, %v3486_v62 }
0x10f0   :  { %v3502_v28 = vmul.f32 %v5183_v25, %v3500_v22 }
0x10f1   :  { %v5154_v23 = vpop.eup %5153 }
0x10f2   :  { %v3501_v16 = vmul.f32 %v5154_v23, %v3487_v0  ;;  %v6043_v51 = vadd.f32 %v5184_v31, %v3502_v28 }
0x10f4   :  { %v3503_v30 = vmul.f32 %v5183_v25, %v3501_v16 }
0x10f6   :  { %v6045_v33 = vadd.f32 %v5184_v31, %v3503_v30 }
0x10f8   :  { %v3506_v34 = vpack.c.bf16 %v6045_v33, %v6043_v51 }
0x10fa   :  { %3636 = vmatmul.mubr.bf16.vlgmr.msra.gmra.mxu1 %v3506_v34 }
0x10fb   :  { %4780 = vmatprep.mubr.msk.bf16.mxu1 %vm5394_vm0, %v5393_v1 }
0x11ba   :  { %v3637_v53 = vpop.f32.mrf.mxu1 }
0x11bb   :  { %v3638_v55 = vadd.f32 %v3637_v53, %v5801_v6 }
0x11bc   :  { %v3639_v56 = vpop.f32.mrf.mxu1 }
0x11bd   :  { %v3646_v54 = vmul.f32 %v3638_v55, %v3638_v55  ;;  %v3640_v57 = vadd.f32 %v3639_v56, %v5803_v7 }
0x11be   :  { %v3641_v58 = vpop.f32.mrf.mxu1 }
0x11bf   :  { %v3650_v60 = vmul.f32 %v3646_v54, %v3638_v55  ;;  %v3647_v59 = vmul.f32 %v3640_v57, %v3640_v57  ;;  %v3642_v62 = vadd.f32 %v3641_v58, %v5801_v6  ;;  %v5066_v58 = vld [vmem:[#allocation16 + $0x20] sm:$0xff]  }
0x11c0   :  { %v3643_v63 = vpop.f32.mrf.mxu1 }
0x11c1   :  { %v3654_v24 = vmul.f32 0.044715, %v3650_v60  ;;  %v3651_v61 = vmul.f32 %v3647_v59, %v3640_v57  ;;  %v3648_v0 = vmul.f32 %v3642_v62, %v3642_v62  ;;  %v3644_v44 = vadd.f32 %v3643_v63, %v5803_v7  ;;  %v5067_v60 = vld [vmem:[#allocation16 + $0x18] sm:$0xff]   ;;  %v5068_v59 = vld [vmem:[#allocation16 + $0x10] sm:$0xff]   ;;  %v5070_v63 = vld [vmem:[#allocation16] sm:$0xff]  }
0x11c3   :  { %v3658_v2 = vadd.f32 %v3654_v24, %v3638_v55  ;;  %v3655_v3 = vmul.f32 0.044715, %v3651_v61  ;;  %v3652_v47 = vmul.f32 %v3648_v0, %v3642_v62  ;;  %v3649_v4 = vmul.f32 %v3644_v44, %v3644_v44 }
0x11c5   :  { %v3662_v5 = vmul.f32 0.7978846, %v3658_v2  ;;  %v3659_v8 = vadd.f32 %v3655_v3, %v3640_v57  ;;  %v3656_v9 = vmul.f32 0.044715, %v3652_v47  ;;  %v3653_v10 = vmul.f32 %v3649_v4, %v3644_v44 }
0x11c7   :  { %v3663_v12 = vmul.f32 0.7978846, %v3659_v8  ;;  %v3660_v11 = vadd.f32 %v3656_v9, %v3642_v62  ;;  %v3657_v14 = vmul.f32 0.044715, %v3653_v10  ;;  %5155 = vtanh.f32 %v3662_v5  ;;  %v5186_v5 = vld [vmem:[%s6098_s16] ss:$0 sm:$0xff] }
0x11c9   :  { %5157 = vtanh.f32 %v3663_v12  ;;  %v3664_v6 = vmul.f32 0.7978846, %v3660_v11  ;;  %v3661_v45 = vadd.f32 %v3657_v14, %v3644_v44 }
0x11cb   :  { %5159 = vtanh.f32 %v3664_v6  ;;  %v3665_v26 = vmul.f32 0.7978846, %v3661_v45 }
0x11cd   :  { %5161 = vtanh.f32 %v3665_v26 }
0x11d4   :  { %v5156_v13 = vpop.eup %5155 }
0x11d5   :  { %v3670_v17 = vadd.f32 1.0, %v5156_v13 }
0x11d6   :  { %v5158_v7 = vpop.eup %5157 }
0x11d7   :  { %v3671_v15 = vadd.f32 1.0, %v5158_v7  ;;  %v3674_v23 = vmul.f32 0.5, %v3670_v17  ;;  %v4212_v17 = vld [vmem:[%s6101_s19] ss:$0 sm:$0xff] }
0x11d8   :  { %v5160_v46 = vpop.eup %5159 }
0x11d9   :  { %v3672_v18 = vadd.f32 1.0, %v5160_v46  ;;  %v3675_v22 = vmul.f32 0.5, %v3671_v15  ;;  %v3678_v31 = vmul.f32 %v3674_v23, %v3638_v55  ;;  %v4221_v23 = vld [vmem:[%s6102_s20] ss:$0 sm:$0xff] }
0x11da   :  { %v5162_v19 = vpop.eup %5161 }
0x11db   :  { %v3676_v20 = vmul.f32 0.5, %v3672_v18  ;;  %v3673_v21 = vadd.f32 1.0, %v5162_v19  ;;  %v3679_v28 = vmul.f32 %v3675_v22, %v3640_v57  ;;  %v5063_v57 = vld [vmem:[#allocation16 + $0x38] sm:$0xff]  }
0x11dc   :  { %4765 = vmatpush3.bf16.msra.mxu1 %v5063_v57 }
0x11dd   :  { %v3677_v16 = vmul.f32 0.5, %v3673_v21  ;;  %v3680_v25 = vmul.f32 %v3676_v20, %v3642_v62  ;;  %4766 = vmatprep.subr.bf16.mxu1 %v5393_v1  ;;  %v5069_v62 = vld [vmem:[#allocation16 + $0x8] sm:$0xff]  }
0x11df   :  { %v3681_v30 = vmul.f32 %v3677_v16, %v3644_v44  ;;  %v3682_v35 = vpack.c.bf16 %v3680_v25, %v3678_v31 }
0x11e1   :  { %v3683_v34 = vpack.c.bf16 %v3681_v30, %v3679_v28  ;;  %v4222_v30 = vld [vmem:[#allocation2] ss:$0 sm:$0xff] }
0x11e3   :  { %3844 = vmatprep.mubr.bf16.mxu0 %v3683_v34 }
0x11e4   :  { %3845 = vmatmul.mubr.bf16.vlgmr.msra.gmra.mxu0 %v3682_v35 }
0x12a4   :  { %v4397_v36 = vpop.f32.mrf.mxu0 }
0x12a6   :  { %v4398_v37 = vpop.f32.mrf.mxu0 }
0x12a7   :  { %v4399_v27 = vadd.f32 %v4398_v37, %v4397_v36 }
0x12a8   :  { %v4400_v29 = vpop.f32.mrf.mxu0 }
0x12a9   :  { %v3847_v40 = vadd.f32 %v5185_v38, %v4399_v27 }
0x12aa   :  { %v4401_v41 = vpop.f32.mrf.mxu0 }
0x12ab   :  { %v4402_v32 = vadd.f32 %v4401_v41, %v4400_v29  ;;  %v3853_v42 = vadd.f32 %v3847_v40, %v6043_v51  ;;  %v5064_v51 = vld [vmem:[#allocation16 + $0x30] sm:$0xff]  }
0x12ac   :  { %4767 = vmatpush3.bf16.msra.mxu1 %v5064_v51 }
0x12ad   :  { %v3850_v43 = vadd.f32 %v5185_v38, %v4402_v32  ;;  %3855 = vadd.xlane.f32.xlu1 %v3853_v42  ;;  %4768 = vmatprep.subr.bf16.mxu1 %v5393_v1 }
0x12af   :  { %v3854_v49 = vadd.f32 %v3850_v43, %v6045_v33  ;;  %v5065_v33 = vld [vmem:[#allocation16 + $0x28] sm:$0xff]  }
0x12b0   :  { %4769 = vmatpush3.bf16.msra.mxu1 %v5065_v33 }
0x12b1   :  { %3857 = vadd.xlane.f32.xlu0 %v3854_v49  ;;  %4770 = vmatprep.subr.bf16.mxu1 %v5393_v1 }
0x12b4   :  { %4771 = vmatpush3.bf16.msra.mxu1 %v5066_v58 }
0x12b5   :  { %4772 = vmatprep.subr.bf16.mxu1 %v5393_v1 }
0x12b8   :  { %4773 = vmatpush3.bf16.msra.mxu1 %v5067_v60 }
0x12b9   :  { %4774 = vmatprep.subr.bf16.mxu1 %v5393_v1 }
0x12bc   :  { %4775 = vmatpush3.bf16.msra.mxu1 %v5068_v59 }
0x12bd   :  { %4776 = vmatprep.subr.bf16.mxu1 %v5393_v1 }
0x12c0   :  { %4777 = vmatpush3.bf16.msra.mxu1 %v5069_v62 }
0x12c1   :  { %4778 = vmatprep.subr.bf16.mxu1 %v5393_v1  ;;  %v5187_v1 = vld [vmem:[%s6099_s17] ss:$0 sm:$0xff] }
0x12c4   :  { %4779 = vmatpush3.bf16.msra.mxu1 %v5070_v63 }
0x1336   :  { %v3856_v39 = vpop.xlane.xlu1 %3855 }
0x1337   :  { %v3859_v50 = vmul.f32 0.0078125, %v3856_v39 }
0x1339   :  { %v3861_v52 = vsub.f32 %v3853_v42, %v3859_v50 }
0x133a   :  { %v3858_v48 = vpop.xlane.xlu0 %3857 }
0x133b   :  { %v3860_v53 = vmul.f32 0.0078125, %v3858_v48  ;;  %v3863_v55 = vmul.f32 %v3861_v52, %v3861_v52 }
0x133d   :  { %v3862_v56 = vsub.f32 %v3854_v49, %v3860_v53  ;;  %3865 = vadd.xlane.f32.xlu1 %v3863_v55 }
0x133f   :  { %v3864_v54 = vmul.f32 %v3862_v56, %v3862_v56 }
0x1341   :  { %3867 = vadd.xlane.f32.xlu0 %v3864_v54 }
0x13c6   :  { %v3866_v24 = vpop.xlane.xlu1 %3865 }
0x13c7   :  { %v3869_v61 = vmul.f32 0.0078125, %v3866_v24 }
0x13c9   :  { %v3871_v0 = vadd.f32 1e-12, %v3869_v61 }
0x13ca   :  { %v3868_v44 = vpop.xlane.xlu0 %3867 }
0x13cb   :  { %5163 = vrsqrt.f32 %v3871_v0  ;;  %v3870_v2 = vmul.f32 0.0078125, %v3868_v44 }
0x13cd   :  { %v3872_v3 = vadd.f32 1e-12, %v3870_v2 }
0x13cf   :  { %5165 = vrsqrt.f32 %v3872_v3 }
0x13d8   :  { %v5164_v47 = vpop.eup %5163 }
0x13d9   :  { %v3875_v4 = vmul.f32 %v5164_v47, %v3861_v52 }
0x13db   :  { %v3877_v8 = vmul.f32 %v5186_v5, %v3875_v4 }
0x13dc   :  { %v5166_v9 = vpop.eup %5165 }
0x13dd   :  { %v3876_v10 = vmul.f32 %v5166_v9, %v3862_v56  ;;  %v3879_v11 = vadd.f32 %v5187_v1, %v3877_v8 }
0x13df   :  { %v3878_v12 = vmul.f32 %v5186_v5, %v3876_v10  ;;  %v3881_v6 = vpack.c.bf16 %v3879_v11, %v3879_v11 }
0x13e1   :  { %v3880_v14 = vadd.f32 %v5187_v1, %v3878_v12  ;;  %v3908_v13 = vunpack.c.l.b16 %v3881_v6 }
0x13e3   :  { %v3882_v45 = vpack.c.bf16 %v3880_v14, %v3880_v14 }
0x13e5   :  { %v3909_v26 = vunpack.c.l.b16 %v3882_v45 }
0x13e7   :  { %v3910_v7 = vrot.slane %v3909_v26, 7 }
0x13e9   :  { %v3912_v15 = vsel %vm3911_vm6, %v3910_v7, %v3908_v13 }
0x13ea   :  { %v3913_v46 = vpack.c.b16 %v3912_v15, %v3912_v15 }
0x13ec   :  { %4781 = vmatmul.mubr.bf16.vlgmr.msra.gmra.mxu1 %v3913_v46 }
0x14ac   :  { %v3997_v18 = vpop.f32.mrf.mxu1 }
0x14ad   :  { %v3998_v19 = vadd.f32 %v4212_v17, %v3997_v18 }
0x14ae   :  { %v4782_v20 = vpop.f32.mrf.mxu1 }
0x14af   :  { %5167 = vtanh.f32 %v3998_v19 }
0x14b0   :  { %v4000_v21 = vpop.f32.mrf.mxu1 }
0x14b2   :  { %v4783_v22 = vpop.f32.mrf.mxu1 }
0x14bc   :  { %v5168_v16 = vpop.eup %5167 }
0x14bd   :  { %v4011_v25 = vmul.f32 %v5168_v16, %v4221_v23 }
0x14bf   :  { %v4013_v28 = vsel %vm4012_vm7, %v4011_v25, 0.0 }
0x14c0   :  { %4014 = vadd.xlane.f32.xlu0 %v4013_v28 }
0x1549   :  { %v4015_v31 = vpop.xlane.xlu0 %4014 }
0x154a   :  { %v4023_v34 = vadd.f32 %v4222_v30, %v4015_v31 }
0x154c   :  { %4025 = vst.msk [vmem:[%s6104_s22] sm:$0x3] %vm4024_vm8, %v4023_v34 }
0x154d   :  { %4030 = vsyncpa [#allocation4], 1 }
0x154e   :  { %4031 = vsyncpa [#allocation6], 1 }
0x154f   :  { %4032 = vsyncpa [#allocation9], 1 }
0x1550   :  { %4033 = vsyncpa [#allocation12], 1 }
0x1551   :  { %4034 = vsyncpa [#allocation15], 1 }

</bundles_post_ra>
